<compile_context>
chip_gen: v6e
topology: v6e:2x2x1
jax: 0.10.0
libtpu: 0.0.40
codegen_flags: <defaults>
</compile_context>

<pallas_src>
import math
import functools

import jax
import jax.numpy as jnp
from jax.experimental import pallas as pl
from jax.experimental.pallas import tpu as pltpu

SEQ_LEN = 20  # the module repeats a 2-D state 20x along time


# ----------------------------- kernel helpers ------------------------------ #

def _sigmoid(x):
    # EUP exp + EUP approx reciprocal (keeps the divide off the VALU).
    return pl.reciprocal(1.0 + jnp.exp(-x), approx=True)


def _layernorm(y, g, b, eps=1e-5):
    mu = jnp.mean(y, axis=-1, keepdims=True)
    var = jnp.mean((y - mu) * (y - mu), axis=-1, keepdims=True)
    return (y - mu) * jax.lax.rsqrt(var + eps) * g + b


def _softmax_last(x):
    m = jnp.max(x, axis=-1, keepdims=True)
    e = jnp.exp(x - m)
    return e * pl.reciprocal(jnp.sum(e, axis=-1, keepdims=True), approx=True)


# ----------------------------- Pallas kernel ------------------------------- #

def twin_lstm_q_kernel(x_ref,
                       wih0_ref, whh0_ref, b0_ref,
                       w1_ref, b1_ref,
                       ln_g_ref, ln_b_ref,
                       rw1_ref, rb1_ref, rw2_ref, rb2_ref,
                       wq_ref, bq_ref, wk_ref, bk_ref, wv_ref, bv_ref,
                       wa1_ref, ba1_ref, lna_g_ref, lna_b_ref, wa2_ref, ba2_ref,
                       wv1_ref, bv1_ref, lnv_g_ref, lnv_b_ref, wv2_ref, bv2_ref,
                       out_ref, *, seq_len):
    f32 = jnp.float32
    x = x_ref[...].astype(f32)           # (B, D) -- single timestep (replicated in time)
    B = x.shape[0]
    H = whh0_ref.shape[0]                # whh0 is (H, 4H)

    whh0 = whh0_ref[...]
    w1 = w1_ref[...]                     # (2H, 4H) == concat([Wih1; Whh1])
    b1 = b1_ref[...]

    # Loop-invariant layer-0 input projection (x_t identical for all t).
    xproj0 = jnp.dot(x, wih0_ref[...], preferred_element_type=f32) + b0_ref[...]

    def gate_apply(gates, c):
        # gate columns are [ i | f | o | g ]  (reordered from PyTorch's [i,f,g,o])
        sig = _sigmoid(gates[:, :3 * H])          # one EUP exp for i, f, o
        i = sig[:, 0 * H:1 * H]
        f = sig[:, 1 * H:2 * H]
        o = sig[:, 2 * H:3 * H]
        g = jnp.tanh(gates[:, 3 * H:])
        c_new = f * c + i * g
        h_new = o * jnp.tanh(c_new)
        return h_new, c_new

    # 2-layer LSTM, zero initial state; only the final top-layer hidden state
    # is used downstream.  seq_len is static -> unrolled.
    h0 = jnp.zeros((B, H), f32); c0 = jnp.zeros((B, H), f32)
    h1 = jnp.zeros((B, H), f32); c1 = jnp.zeros((B, H), f32)
    for _ in range(seq_len):
        gates0 = xproj0 + jnp.dot(h0, whh0, preferred_element_type=f32)
        h0, c0 = gate_apply(gates0, c0)
        gates1 = jnp.dot(jnp.concatenate([h0, h1], axis=-1), w1,
                         preferred_element_type=f32) + b1
        h1, c1 = gate_apply(gates1, c1)
    lstm_out = h1                          # == lstm_out[:, -1, :]  (B, H)

    # LayerNorm(hidden_dim)
    y = _layernorm(lstm_out, ln_g_ref[...], ln_b_ref[...])

    # ResidualBlock (shortcut == Identity since in_dim == out_dim)
    r = jnp.dot(y, rw1_ref[...], preferred_element_type=f32) + rb1_ref[...]
    r = jnp.maximum(r, 0.0)
    r = jnp.dot(r, rw2_ref[...], preferred_element_type=f32) + rb2_ref[...]
    r = jnp.maximum(r + y, 0.0)            # (B, H)

    # Attention over the batch axis (x is 2-D here, so scores are (B, B),
    # scaled by 1/sqrt(hidden_dim)) -- faithful to the PyTorch module.
    q = jnp.dot(r, wq_ref[...], preferred_element_type=f32) + bq_ref[...]
    k = jnp.dot(r, wk_ref[...], preferred_element_type=f32) + bk_ref[...]
    v = jnp.dot(r, wv_ref[...], preferred_element_type=f32) + bv_ref[...]
    scores = jax.lax.dot_general(q, k, (((1,), (1,)), ((), ())),
                                 preferred_element_type=f32) * (1.0 / math.sqrt(H))
    attn = _softmax_last(scores)           # (B, B)
    feat = jnp.dot(attn, v, preferred_element_type=f32)   # (B, H)

    # Dueling heads: Linear -> LayerNorm -> ReLU -> Linear
    a = jnp.dot(feat, wa1_ref[...], preferred_element_type=f32) + ba1_ref[...]
    a = jnp.maximum(_layernorm(a, lna_g_ref[...], lna_b_ref[...]), 0.0)
    adv = jnp.dot(a, wa2_ref[...], preferred_element_type=f32) + ba2_ref[...]   # (B, A)

    w = jnp.dot(feat, wv1_ref[...], preferred_element_type=f32) + bv1_ref[...]
    w = jnp.maximum(_layernorm(w, lnv_g_ref[...], lnv_b_ref[...]), 0.0)
    val = jnp.dot(w, wv2_ref[...], preferred_element_type=f32) + bv2_ref[...]   # (B, 1)

    q_values = val + adv - jnp.mean(adv, axis=1, keepdims=True)
    out_ref[...] = q_values.astype(out_ref.dtype)


# ------------------------------ JAX wrapper -------------------------------- #

PARAM_ORDER = [
    "wih0", "whh0", "b0",
    "w1cat", "b1",
    "ln_g", "ln_b",
    "rw1", "rb1", "rw2", "rb2",
    "wq", "bq", "wk", "bk", "wv", "bv",
    "wa1", "ba1", "lna_g", "lna_b", "wa2", "ba2",
    "wv1", "bv1", "lnv_g", "lnv_b", "wv2", "bv2",
]


def init_lstm_qnet_params(key, input_dim, num_actions, hidden_dim):
    """Deterministic synthetic init (PyTorch-like fan-in uniform weights, zero
    biases, ones/zeros LayerNorm affine).  LSTM weights stored transposed with
    gate columns in [i, f, o, g] order; b = bias_ih + bias_hh (zero here)."""
    D, H, A = input_dim, hidden_dim, num_actions
    ks = jax.random.split(key, 13)

    def w(k, shape, fan_in):
        bound = 1.0 / math.sqrt(fan_in)
        return jax.random.uniform(k, shape, jnp.float32, -bound, bound)

    z = lambda s: jnp.zeros(s, jnp.float32)
    o = lambda s: jnp.ones(s, jnp.float32)

    return {
        # LSTM layer 0 / 1 (transposed: act @ W; gates [i,f,o,g])
        "wih0": w(ks[0], (D, 4 * H), D), "whh0": w(ks[1], (H, 4 * H), H),
        "b0": z((1, 4 * H)),
        "wih1": w(ks[2], (H, 4 * H), H), "whh1": w(ks[3], (H, 4 * H), H),
        "b1": z((1, 4 * H)),
        # LayerNorm(hidden_dim)
        "ln_g": o((1, H)), "ln_b": z((1, H)),
        # ResidualBlock
        "rw1": w(ks[4], (H, H), H), "rb1": z((1, H)),
        "rw2": w(ks[5], (H, H), H), "rb2": z((1, H)),
        # Attention
        "wq": w(ks[6], (H, H), H), "bq": z((1, H)),
        "wk": w(ks[7], (H, H), H), "bk": z((1, H)),
        "wv": w(ks[8], (H, H), H), "bv": z((1, H)),
        # a_head
        "wa1": w(ks[9], (H, 512), H), "ba1": z((1, 512)),
        "lna_g": o((1, 512)), "lna_b": z((1, 512)),
        "wa2": w(ks[10], (512, A), 512), "ba2": z((1, A)),
        # v_head
        "wv1": w(ks[11], (H, 512), H), "bv1": z((1, 512)),
        "lnv_g": o((1, 512)), "lnv_b": z((1, 512)),
        "wv2": w(ks[12], (512, 1), 512), "bv2": z((1, 1)),
    }


def pack_twin_params(params_q1, params_q2):
    """Fuse layer-1 ih/hh weights and stack both networks along a leading
    axis of 2 (one grid step per Q network)."""
    def fuse(p):
        q = dict(p)
        q["w1cat"] = jnp.concatenate([q.pop("wih1"), q.pop("whh1")], axis=0)
        return q
    f1, f2 = fuse(params_q1), fuse(params_q2)
    return [jnp.stack([f1[name], f2[name]], axis=0) for name in PARAM_ORDER]


def twinned_q_forward(states, packed_params, num_actions, seq_len=SEQ_LEN):
    # TODO(synk): only the 2-D state path (the module's SAC-D use; state is
    # replicated along T=20) is kernelized; a genuinely time-varying (B, T, D)
    # input would need the per-step x_t projection reinstated in the LSTM loop.
    assert states.ndim == 2, "kernel implements the 2-D state path of the module"
    x = states.astype(jnp.float32)
    B, D = x.shape

    param_specs = [
        pl.BlockSpec((None,) + tuple(p.shape[1:]), lambda n: (n, 0, 0))
        for p in packed_params
    ]

    out = pl.pallas_call(
        functools.partial(twin_lstm_q_kernel, seq_len=seq_len),
        out_shape=jax.ShapeDtypeStruct((2, B, num_actions), jnp.float32),
        grid=(2,),
        in_specs=[pl.BlockSpec((B, D), lambda n: (0, 0))] + param_specs,
        out_specs=pl.BlockSpec((None, B, num_actions), lambda n: (n, 0, 0)),
        compiler_params=pltpu.CompilerParams(
            dimension_semantics=("parallel",)),
    )(x, *packed_params)
    return out[0], out[1]


# --------------------------------- main ------------------------------------ #

if __name__ == "__main__":
    B, D, H, A = 2, 8, 32, 4   # batch, input_dim, hidden_dim, num_actions

    root = jax.random.PRNGKey(0)
    k_x, k_q1, k_q2 = jax.random.split(root, 3)

    states = jax.random.normal(k_x, (B, D), jnp.float32)
    params_q1 = init_lstm_qnet_params(k_q1, D, A, H)
    params_q2 = init_lstm_qnet_params(k_q2, D, A, H)
    packed = pack_twin_params(params_q1, params_q2)

    fwd = jax.jit(functools.partial(twinned_q_forward, num_actions=A))
    q1, q2 = fwd(states, packed)
    jax.block_until_ready((q1, q2))

    assert q1.shape == (B, A) and q2.shape == (B, A)
    assert bool(jnp.all(jnp.isfinite(q1))) and bool(jnp.all(jnp.isfinite(q2)))
    print("KERNEL_OK")
</pallas_src>

<mosaic_0001>
module attributes {stable_mosaic.version = 11 : i64} {
  func.func @twin_lstm_q_kernel(%arg0: i32, %arg1: memref<2x8xf32, #tpu.memory_space<vmem>>, %arg2: memref<1x8x128xf32, #tpu.memory_space<vmem>>, %arg3: memref<1x32x128xf32, #tpu.memory_space<vmem>>, %arg4: memref<1x1x128xf32, #tpu.memory_space<vmem>>, %arg5: memref<1x64x128xf32, #tpu.memory_space<vmem>>, %arg6: memref<1x1x128xf32, #tpu.memory_space<vmem>>, %arg7: memref<1x1x32xf32, #tpu.memory_space<vmem>>, %arg8: memref<1x1x32xf32, #tpu.memory_space<vmem>>, %arg9: memref<1x32x32xf32, #tpu.memory_space<vmem>>, %arg10: memref<1x1x32xf32, #tpu.memory_space<vmem>>, %arg11: memref<1x32x32xf32, #tpu.memory_space<vmem>>, %arg12: memref<1x1x32xf32, #tpu.memory_space<vmem>>, %arg13: memref<1x32x32xf32, #tpu.memory_space<vmem>>, %arg14: memref<1x1x32xf32, #tpu.memory_space<vmem>>, %arg15: memref<1x32x32xf32, #tpu.memory_space<vmem>>, %arg16: memref<1x1x32xf32, #tpu.memory_space<vmem>>, %arg17: memref<1x32x32xf32, #tpu.memory_space<vmem>>, %arg18: memref<1x1x32xf32, #tpu.memory_space<vmem>>, %arg19: memref<1x32x512xf32, #tpu.memory_space<vmem>>, %arg20: memref<1x1x512xf32, #tpu.memory_space<vmem>>, %arg21: memref<1x1x512xf32, #tpu.memory_space<vmem>>, %arg22: memref<1x1x512xf32, #tpu.memory_space<vmem>>, %arg23: memref<1x512x4xf32, #tpu.memory_space<vmem>>, %arg24: memref<1x1x4xf32, #tpu.memory_space<vmem>>, %arg25: memref<1x32x512xf32, #tpu.memory_space<vmem>>, %arg26: memref<1x1x512xf32, #tpu.memory_space<vmem>>, %arg27: memref<1x1x512xf32, #tpu.memory_space<vmem>>, %arg28: memref<1x1x512xf32, #tpu.memory_space<vmem>>, %arg29: memref<1x512x1xf32, #tpu.memory_space<vmem>>, %arg30: memref<1x1x1xf32, #tpu.memory_space<vmem>>, %arg31: memref<1x2x4xf32, #tpu.memory_space<vmem>>) attributes {dimension_semantics = [#tpu.dimension_semantics<parallel>], iteration_bounds = array<i64: 2>, scalar_prefetch = 0 : i64, scratch_operands = 0 : i64, tpu.core_type = #tpu.core_type<tc>, window_params = [{pipeline_mode = #tpu.pipeline_mode<synchronous>, transform_indices = @transform_0, window_bounds = array<i64: 2, 8>}, {transform_indices = @transform_1, window_bounds = array<i64: 1, 8, 128>}, {transform_indices = @transform_2, window_bounds = array<i64: 1, 32, 128>}, {transform_indices = @transform_3, window_bounds = array<i64: 1, 1, 128>}, {transform_indices = @transform_4, window_bounds = array<i64: 1, 64, 128>}, {transform_indices = @transform_5, window_bounds = array<i64: 1, 1, 128>}, {transform_indices = @transform_6, window_bounds = array<i64: 1, 1, 32>}, {transform_indices = @transform_7, window_bounds = array<i64: 1, 1, 32>}, {transform_indices = @transform_8, window_bounds = array<i64: 1, 32, 32>}, {transform_indices = @transform_9, window_bounds = array<i64: 1, 1, 32>}, {transform_indices = @transform_10, window_bounds = array<i64: 1, 32, 32>}, {transform_indices = @transform_11, window_bounds = array<i64: 1, 1, 32>}, {transform_indices = @transform_12, window_bounds = array<i64: 1, 32, 32>}, {transform_indices = @transform_13, window_bounds = array<i64: 1, 1, 32>}, {transform_indices = @transform_14, window_bounds = array<i64: 1, 32, 32>}, {transform_indices = @transform_15, window_bounds = array<i64: 1, 1, 32>}, {transform_indices = @transform_16, window_bounds = array<i64: 1, 32, 32>}, {transform_indices = @transform_17, window_bounds = array<i64: 1, 1, 32>}, {transform_indices = @transform_18, window_bounds = array<i64: 1, 32, 512>}, {transform_indices = @transform_19, window_bounds = array<i64: 1, 1, 512>}, {transform_indices = @transform_20, window_bounds = array<i64: 1, 1, 512>}, {transform_indices = @transform_21, window_bounds = array<i64: 1, 1, 512>}, {transform_indices = @transform_22, window_bounds = array<i64: 1, 512, 4>}, {transform_indices = @transform_23, window_bounds = array<i64: 1, 1, 4>}, {transform_indices = @transform_24, window_bounds = array<i64: 1, 32, 512>}, {transform_indices = @transform_25, window_bounds = array<i64: 1, 1, 512>}, {transform_indices = @transform_26, window_bounds = array<i64: 1, 1, 512>}, {transform_indices = @transform_27, window_bounds = array<i64: 1, 1, 512>}, {transform_indices = @transform_28, window_bounds = array<i64: 1, 512, 1>}, {transform_indices = @transform_29, window_bounds = array<i64: 1, 1, 1>}, {transform_indices = @transform_30, window_bounds = array<i64: 1, 2, 4>}]} {
    %c0 = arith.constant 0 : index
    %c0_0 = arith.constant 0 : index
    %0 = vector.load %arg1[%c0, %c0_0] : memref<2x8xf32, #tpu.memory_space<vmem>>, vector<2x8xf32>
    %c0_1 = arith.constant 0 : index
    %c0_2 = arith.constant 0 : index
    %c0_3 = arith.constant 0 : index
    %1 = vector.load %arg3[%c0_1, %c0_2, %c0_3] : memref<1x32x128xf32, #tpu.memory_space<vmem>>, vector<1x32x128xf32>
    %2 = vector.shape_cast %1 : vector<1x32x128xf32> to vector<32x128xf32>
    %c0_4 = arith.constant 0 : index
    %c0_5 = arith.constant 0 : index
    %c0_6 = arith.constant 0 : index
    %3 = vector.load %arg5[%c0_4, %c0_5, %c0_6] : memref<1x64x128xf32, #tpu.memory_space<vmem>>, vector<1x64x128xf32>
    %4 = vector.shape_cast %3 : vector<1x64x128xf32> to vector<64x128xf32>
    %c0_7 = arith.constant 0 : index
    %c0_8 = arith.constant 0 : index
    %c0_9 = arith.constant 0 : index
    %5 = vector.load %arg6[%c0_7, %c0_8, %c0_9] : memref<1x1x128xf32, #tpu.memory_space<vmem>>, vector<1x1x128xf32>
    %6 = vector.shape_cast %5 : vector<1x1x128xf32> to vector<1x128xf32>
    %c0_10 = arith.constant 0 : index
    %c0_11 = arith.constant 0 : index
    %c0_12 = arith.constant 0 : index
    %7 = vector.load %arg2[%c0_10, %c0_11, %c0_12] : memref<1x8x128xf32, #tpu.memory_space<vmem>>, vector<1x8x128xf32>
    %8 = vector.shape_cast %7 : vector<1x8x128xf32> to vector<8x128xf32>
    %cst = arith.constant dense<0.000000e+00> : vector<2x128xf32>
    %9 = tpu.matmul %0, %8, %cst {dimension_numbers = #tpu.dot_dimension_numbers<[1], [0], [0], [1], [0, 0, 1, 1], [], []>} : vector<2x8xf32>, vector<8x128xf32>, vector<2x128xf32> -> vector<2x128xf32>
    %c0_13 = arith.constant 0 : index
    %c0_14 = arith.constant 0 : index
    %c0_15 = arith.constant 0 : index
    %10 = vector.load %arg4[%c0_13, %c0_14, %c0_15] : memref<1x1x128xf32, #tpu.memory_space<vmem>>, vector<1x1x128xf32>
    %11 = vector.shape_cast %10 : vector<1x1x128xf32> to vector<1x128xf32>
    %12 = vector.broadcast %11 : vector<1x128xf32> to vector<2x128xf32>
    %13 = arith.addf %9, %12 : vector<2x128xf32>
    %cst_16 = arith.constant 0.000000e+00 : f32
    %14 = vector.broadcast %cst_16 : f32 to vector<2x32xf32>
    %cst_17 = arith.constant 0.000000e+00 : f32
    %15 = vector.broadcast %cst_17 : f32 to vector<2x32xf32>
    %cst_18 = arith.constant 0.000000e+00 : f32
    %16 = vector.broadcast %cst_18 : f32 to vector<2x32xf32>
    %cst_19 = arith.constant 0.000000e+00 : f32
    %17 = vector.broadcast %cst_19 : f32 to vector<2x32xf32>
    %cst_20 = arith.constant dense<0.000000e+00> : vector<2x128xf32>
    %18 = tpu.matmul %14, %2, %cst_20 {dimension_numbers = #tpu.dot_dimension_numbers<[1], [0], [0], [1], [0, 0, 1, 1], [], []>} : vector<2x32xf32>, vector<32x128xf32>, vector<2x128xf32> -> vector<2x128xf32>
    %19 = arith.addf %13, %18 : vector<2x128xf32>
    %20 = vector.extract_strided_slice %19 {offsets = [0, 0], sizes = [2, 96], strides = [1, 1]} : vector<2x128xf32> to vector<2x96xf32>
    %cst_21 = arith.constant 0.000000e+00 : f32
    %21 = vector.broadcast %cst_21 : f32 to vector<2x96xf32>
    %22 = arith.subf %21, %20 : vector<2x96xf32>
    %23 = math.exp %22 : vector<2x96xf32>
    %cst_22 = arith.constant 1.000000e+00 : f32
    %24 = vector.broadcast %cst_22 : f32 to vector<2x96xf32>
    %25 = arith.addf %24, %23 : vector<2x96xf32>
    %26 = tpu.reciprocal %25 {approx = true} : vector<2x96xf32> -> vector<2x96xf32>
    %27 = vector.extract_strided_slice %26 {offsets = [0, 0], sizes = [2, 32], strides = [1, 1]} : vector<2x96xf32> to vector<2x32xf32>
    %28 = vector.extract_strided_slice %26 {offsets = [0, 32], sizes = [2, 32], strides = [1, 1]} : vector<2x96xf32> to vector<2x32xf32>
    %29 = vector.extract_strided_slice %26 {offsets = [0, 64], sizes = [2, 32], strides = [1, 1]} : vector<2x96xf32> to vector<2x32xf32>
    %30 = vector.extract_strided_slice %19 {offsets = [0, 96], sizes = [2, 32], strides = [1, 1]} : vector<2x128xf32> to vector<2x32xf32>
    %31 = math.tanh %30 : vector<2x32xf32>
    %32 = arith.mulf %28, %15 : vector<2x32xf32>
    %33 = arith.mulf %27, %31 : vector<2x32xf32>
    %34 = arith.addf %32, %33 : vector<2x32xf32>
    %35 = math.tanh %34 : vector<2x32xf32>
    %36 = arith.mulf %29, %35 : vector<2x32xf32>
    %37 = tpu.concatenate %36, %16 in 1 : vector<2x32xf32>, vector<2x32xf32> -> vector<2x64xf32>
    %cst_23 = arith.constant dense<0.000000e+00> : vector<2x128xf32>
    %38 = tpu.matmul %37, %4, %cst_23 {dimension_numbers = #tpu.dot_dimension_numbers<[1], [0], [0], [1], [0, 0, 1, 1], [], []>} : vector<2x64xf32>, vector<64x128xf32>, vector<2x128xf32> -> vector<2x128xf32>
    %39 = vector.broadcast %6 : vector<1x128xf32> to vector<2x128xf32>
    %40 = arith.addf %38, %39 : vector<2x128xf32>
    %41 = vector.extract_strided_slice %40 {offsets = [0, 0], sizes = [2, 96], strides = [1, 1]} : vector<2x128xf32> to vector<2x96xf32>
    %cst_24 = arith.constant 0.000000e+00 : f32
    %42 = vector.broadcast %cst_24 : f32 to vector<2x96xf32>
    %43 = arith.subf %42, %41 : vector<2x96xf32>
    %44 = math.exp %43 : vector<2x96xf32>
    %cst_25 = arith.constant 1.000000e+00 : f32
    %45 = vector.broadcast %cst_25 : f32 to vector<2x96xf32>
    %46 = arith.addf %45, %44 : vector<2x96xf32>
    %47 = tpu.reciprocal %46 {approx = true} : vector<2x96xf32> -> vector<2x96xf32>
    %48 = vector.extract_strided_slice %47 {offsets = [0, 0], sizes = [2, 32], strides = [1, 1]} : vector<2x96xf32> to vector<2x32xf32>
    %49 = vector.extract_strided_slice %47 {offsets = [0, 32], sizes = [2, 32], strides = [1, 1]} : vector<2x96xf32> to vector<2x32xf32>
    %50 = vector.extract_strided_slice %47 {offsets = [0, 64], sizes = [2, 32], strides = [1, 1]} : vector<2x96xf32> to vector<2x32xf32>
    %51 = vector.extract_strided_slice %40 {offsets = [0, 96], sizes = [2, 32], strides = [1, 1]} : vector<2x128xf32> to vector<2x32xf32>
    %52 = math.tanh %51 : vector<2x32xf32>
    %53 = arith.mulf %49, %17 : vector<2x32xf32>
    %54 = arith.mulf %48, %52 : vector<2x32xf32>
    %55 = arith.addf %53, %54 : vector<2x32xf32>
    %56 = math.tanh %55 : vector<2x32xf32>
    %57 = arith.mulf %50, %56 : vector<2x32xf32>
    %cst_26 = arith.constant dense<0.000000e+00> : vector<2x128xf32>
    %58 = tpu.matmul %36, %2, %cst_26 {dimension_numbers = #tpu.dot_dimension_numbers<[1], [0], [0], [1], [0, 0, 1, 1], [], []>} : vector<2x32xf32>, vector<32x128xf32>, vector<2x128xf32> -> vector<2x128xf32>
    %59 = arith.addf %13, %58 : vector<2x128xf32>
    %60 = vector.extract_strided_slice %59 {offsets = [0, 0], sizes = [2, 96], strides = [1, 1]} : vector<2x128xf32> to vector<2x96xf32>
    %cst_27 = arith.constant 0.000000e+00 : f32
    %61 = vector.broadcast %cst_27 : f32 to vector<2x96xf32>
    %62 = arith.subf %61, %60 : vector<2x96xf32>
    %63 = math.exp %62 : vector<2x96xf32>
    %cst_28 = arith.constant 1.000000e+00 : f32
    %64 = vector.broadcast %cst_28 : f32 to vector<2x96xf32>
    %65 = arith.addf %64, %63 : vector<2x96xf32>
    %66 = tpu.reciprocal %65 {approx = true} : vector<2x96xf32> -> vector<2x96xf32>
    %67 = vector.extract_strided_slice %66 {offsets = [0, 0], sizes = [2, 32], strides = [1, 1]} : vector<2x96xf32> to vector<2x32xf32>
    %68 = vector.extract_strided_slice %66 {offsets = [0, 32], sizes = [2, 32], strides = [1, 1]} : vector<2x96xf32> to vector<2x32xf32>
    %69 = vector.extract_strided_slice %66 {offsets = [0, 64], sizes = [2, 32], strides = [1, 1]} : vector<2x96xf32> to vector<2x32xf32>
    %70 = vector.extract_strided_slice %59 {offsets = [0, 96], sizes = [2, 32], strides = [1, 1]} : vector<2x128xf32> to vector<2x32xf32>
    %71 = math.tanh %70 : vector<2x32xf32>
    %72 = arith.mulf %68, %34 : vector<2x32xf32>
    %73 = arith.mulf %67, %71 : vector<2x32xf32>
    %74 = arith.addf %72, %73 : vector<2x32xf32>
    %75 = math.tanh %74 : vector<2x32xf32>
    %76 = arith.mulf %69, %75 : vector<2x32xf32>
    %77 = tpu.concatenate %76, %57 in 1 : vector<2x32xf32>, vector<2x32xf32> -> vector<2x64xf32>
    %cst_29 = arith.constant dense<0.000000e+00> : vector<2x128xf32>
    %78 = tpu.matmul %77, %4, %cst_29 {dimension_numbers = #tpu.dot_dimension_numbers<[1], [0], [0], [1], [0, 0, 1, 1], [], []>} : vector<2x64xf32>, vector<64x128xf32>, vector<2x128xf32> -> vector<2x128xf32>
    %79 = vector.broadcast %6 : vector<1x128xf32> to vector<2x128xf32>
    %80 = arith.addf %78, %79 : vector<2x128xf32>
    %81 = vector.extract_strided_slice %80 {offsets = [0, 0], sizes = [2, 96], strides = [1, 1]} : vector<2x128xf32> to vector<2x96xf32>
    %cst_30 = arith.constant 0.000000e+00 : f32
    %82 = vector.broadcast %cst_30 : f32 to vector<2x96xf32>
    %83 = arith.subf %82, %81 : vector<2x96xf32>
    %84 = math.exp %83 : vector<2x96xf32>
    %cst_31 = arith.constant 1.000000e+00 : f32
    %85 = vector.broadcast %cst_31 : f32 to vector<2x96xf32>
    %86 = arith.addf %85, %84 : vector<2x96xf32>
    %87 = tpu.reciprocal %86 {approx = true} : vector<2x96xf32> -> vector<2x96xf32>
    %88 = vector.extract_strided_slice %87 {offsets = [0, 0], sizes = [2, 32], strides = [1, 1]} : vector<2x96xf32> to vector<2x32xf32>
    %89 = vector.extract_strided_slice %87 {offsets = [0, 32], sizes = [2, 32], strides = [1, 1]} : vector<2x96xf32> to vector<2x32xf32>
    %90 = vector.extract_strided_slice %87 {offsets = [0, 64], sizes = [2, 32], strides = [1, 1]} : vector<2x96xf32> to vector<2x32xf32>
    %91 = vector.extract_strided_slice %80 {offsets = [0, 96], sizes = [2, 32], strides = [1, 1]} : vector<2x128xf32> to vector<2x32xf32>
    %92 = math.tanh %91 : vector<2x32xf32>
    %93 = arith.mulf %89, %55 : vector<2x32xf32>
    %94 = arith.mulf %88, %92 : vector<2x32xf32>
    %95 = arith.addf %93, %94 : vector<2x32xf32>
    %96 = math.tanh %95 : vector<2x32xf32>
    %97 = arith.mulf %90, %96 : vector<2x32xf32>
    %cst_32 = arith.constant dense<0.000000e+00> : vector<2x128xf32>
    %98 = tpu.matmul %76, %2, %cst_32 {dimension_numbers = #tpu.dot_dimension_numbers<[1], [0], [0], [1], [0, 0, 1, 1], [], []>} : vector<2x32xf32>, vector<32x128xf32>, vector<2x128xf32> -> vector<2x128xf32>
    %99 = arith.addf %13, %98 : vector<2x128xf32>
    %100 = vector.extract_strided_slice %99 {offsets = [0, 0], sizes = [2, 96], strides = [1, 1]} : vector<2x128xf32> to vector<2x96xf32>
    %cst_33 = arith.constant 0.000000e+00 : f32
    %101 = vector.broadcast %cst_33 : f32 to vector<2x96xf32>
    %102 = arith.subf %101, %100 : vector<2x96xf32>
    %103 = math.exp %102 : vector<2x96xf32>
    %cst_34 = arith.constant 1.000000e+00 : f32
    %104 = vector.broadcast %cst_34 : f32 to vector<2x96xf32>
    %105 = arith.addf %104, %103 : vector<2x96xf32>
    %106 = tpu.reciprocal %105 {approx = true} : vector<2x96xf32> -> vector<2x96xf32>
    %107 = vector.extract_strided_slice %106 {offsets = [0, 0], sizes = [2, 32], strides = [1, 1]} : vector<2x96xf32> to vector<2x32xf32>
    %108 = vector.extract_strided_slice %106 {offsets = [0, 32], sizes = [2, 32], strides = [1, 1]} : vector<2x96xf32> to vector<2x32xf32>
    %109 = vector.extract_strided_slice %106 {offsets = [0, 64], sizes = [2, 32], strides = [1, 1]} : vector<2x96xf32> to vector<2x32xf32>
    %110 = vector.extract_strided_slice %99 {offsets = [0, 96], sizes = [2, 32], strides = [1, 1]} : vector<2x128xf32> to vector<2x32xf32>
    %111 = math.tanh %110 : vector<2x32xf32>
    %112 = arith.mulf %108, %74 : vector<2x32xf32>
    %113 = arith.mulf %107, %111 : vector<2x32xf32>
    %114 = arith.addf %112, %113 : vector<2x32xf32>
    %115 = math.tanh %114 : vector<2x32xf32>
    %116 = arith.mulf %109, %115 : vector<2x32xf32>
    %117 = tpu.concatenate %116, %97 in 1 : vector<2x32xf32>, vector<2x32xf32> -> vector<2x64xf32>
    %cst_35 = arith.constant dense<0.000000e+00> : vector<2x128xf32>
    %118 = tpu.matmul %117, %4, %cst_35 {dimension_numbers = #tpu.dot_dimension_numbers<[1], [0], [0], [1], [0, 0, 1, 1], [], []>} : vector<2x64xf32>, vector<64x128xf32>, vector<2x128xf32> -> vector<2x128xf32>
    %119 = vector.broadcast %6 : vector<1x128xf32> to vector<2x128xf32>
    %120 = arith.addf %118, %119 : vector<2x128xf32>
    %121 = vector.extract_strided_slice %120 {offsets = [0, 0], sizes = [2, 96], strides = [1, 1]} : vector<2x128xf32> to vector<2x96xf32>
    %cst_36 = arith.constant 0.000000e+00 : f32
    %122 = vector.broadcast %cst_36 : f32 to vector<2x96xf32>
    %123 = arith.subf %122, %121 : vector<2x96xf32>
    %124 = math.exp %123 : vector<2x96xf32>
    %cst_37 = arith.constant 1.000000e+00 : f32
    %125 = vector.broadcast %cst_37 : f32 to vector<2x96xf32>
    %126 = arith.addf %125, %124 : vector<2x96xf32>
    %127 = tpu.reciprocal %126 {approx = true} : vector<2x96xf32> -> vector<2x96xf32>
    %128 = vector.extract_strided_slice %127 {offsets = [0, 0], sizes = [2, 32], strides = [1, 1]} : vector<2x96xf32> to vector<2x32xf32>
    %129 = vector.extract_strided_slice %127 {offsets = [0, 32], sizes = [2, 32], strides = [1, 1]} : vector<2x96xf32> to vector<2x32xf32>
    %130 = vector.extract_strided_slice %127 {offsets = [0, 64], sizes = [2, 32], strides = [1, 1]} : vector<2x96xf32> to vector<2x32xf32>
    %131 = vector.extract_strided_slice %120 {offsets = [0, 96], sizes = [2, 32], strides = [1, 1]} : vector<2x128xf32> to vector<2x32xf32>
    %132 = math.tanh %131 : vector<2x32xf32>
    %133 = arith.mulf %129, %95 : vector<2x32xf32>
    %134 = arith.mulf %128, %132 : vector<2x32xf32>
    %135 = arith.addf %133, %134 : vector<2x32xf32>
    %136 = math.tanh %135 : vector<2x32xf32>
    %137 = arith.mulf %130, %136 : vector<2x32xf32>
    %cst_38 = arith.constant dense<0.000000e+00> : vector<2x128xf32>
    %138 = tpu.matmul %116, %2, %cst_38 {dimension_numbers = #tpu.dot_dimension_numbers<[1], [0], [0], [1], [0, 0, 1, 1], [], []>} : vector<2x32xf32>, vector<32x128xf32>, vector<2x128xf32> -> vector<2x128xf32>
    %139 = arith.addf %13, %138 : vector<2x128xf32>
    %140 = vector.extract_strided_slice %139 {offsets = [0, 0], sizes = [2, 96], strides = [1, 1]} : vector<2x128xf32> to vector<2x96xf32>
    %cst_39 = arith.constant 0.000000e+00 : f32
    %141 = vector.broadcast %cst_39 : f32 to vector<2x96xf32>
    %142 = arith.subf %141, %140 : vector<2x96xf32>
    %143 = math.exp %142 : vector<2x96xf32>
    %cst_40 = arith.constant 1.000000e+00 : f32
    %144 = vector.broadcast %cst_40 : f32 to vector<2x96xf32>
    %145 = arith.addf %144, %143 : vector<2x96xf32>
    %146 = tpu.reciprocal %145 {approx = true} : vector<2x96xf32> -> vector<2x96xf32>
    %147 = vector.extract_strided_slice %146 {offsets = [0, 0], sizes = [2, 32], strides = [1, 1]} : vector<2x96xf32> to vector<2x32xf32>
    %148 = vector.extract_strided_slice %146 {offsets = [0, 32], sizes = [2, 32], strides = [1, 1]} : vector<2x96xf32> to vector<2x32xf32>
    %149 = vector.extract_strided_slice %146 {offsets = [0, 64], sizes = [2, 32], strides = [1, 1]} : vector<2x96xf32> to vector<2x32xf32>
    %150 = vector.extract_strided_slice %139 {offsets = [0, 96], sizes = [2, 32], strides = [1, 1]} : vector<2x128xf32> to vector<2x32xf32>
    %151 = math.tanh %150 : vector<2x32xf32>
    %152 = arith.mulf %148, %114 : vector<2x32xf32>
    %153 = arith.mulf %147, %151 : vector<2x32xf32>
    %154 = arith.addf %152, %153 : vector<2x32xf32>
    %155 = math.tanh %154 : vector<2x32xf32>
    %156 = arith.mulf %149, %155 : vector<2x32xf32>
    %157 = tpu.concatenate %156, %137 in 1 : vector<2x32xf32>, vector<2x32xf32> -> vector<2x64xf32>
    %cst_41 = arith.constant dense<0.000000e+00> : vector<2x128xf32>
    %158 = tpu.matmul %157, %4, %cst_41 {dimension_numbers = #tpu.dot_dimension_numbers<[1], [0], [0], [1], [0, 0, 1, 1], [], []>} : vector<2x64xf32>, vector<64x128xf32>, vector<2x128xf32> -> vector<2x128xf32>
    %159 = vector.broadcast %6 : vector<1x128xf32> to vector<2x128xf32>
    %160 = arith.addf %158, %159 : vector<2x128xf32>
    %161 = vector.extract_strided_slice %160 {offsets = [0, 0], sizes = [2, 96], strides = [1, 1]} : vector<2x128xf32> to vector<2x96xf32>
    %cst_42 = arith.constant 0.000000e+00 : f32
    %162 = vector.broadcast %cst_42 : f32 to vector<2x96xf32>
    %163 = arith.subf %162, %161 : vector<2x96xf32>
    %164 = math.exp %163 : vector<2x96xf32>
    %cst_43 = arith.constant 1.000000e+00 : f32
    %165 = vector.broadcast %cst_43 : f32 to vector<2x96xf32>
    %166 = arith.addf %165, %164 : vector<2x96xf32>
    %167 = tpu.reciprocal %166 {approx = true} : vector<2x96xf32> -> vector<2x96xf32>
    %168 = vector.extract_strided_slice %167 {offsets = [0, 0], sizes = [2, 32], strides = [1, 1]} : vector<2x96xf32> to vector<2x32xf32>
    %169 = vector.extract_strided_slice %167 {offsets = [0, 32], sizes = [2, 32], strides = [1, 1]} : vector<2x96xf32> to vector<2x32xf32>
    %170 = vector.extract_strided_slice %167 {offsets = [0, 64], sizes = [2, 32], strides = [1, 1]} : vector<2x96xf32> to vector<2x32xf32>
    %171 = vector.extract_strided_slice %160 {offsets = [0, 96], sizes = [2, 32], strides = [1, 1]} : vector<2x128xf32> to vector<2x32xf32>
    %172 = math.tanh %171 : vector<2x32xf32>
    %173 = arith.mulf %169, %135 : vector<2x32xf32>
    %174 = arith.mulf %168, %172 : vector<2x32xf32>
    %175 = arith.addf %173, %174 : vector<2x32xf32>
    %176 = math.tanh %175 : vector<2x32xf32>
    %177 = arith.mulf %170, %176 : vector<2x32xf32>
    %cst_44 = arith.constant dense<0.000000e+00> : vector<2x128xf32>
    %178 = tpu.matmul %156, %2, %cst_44 {dimension_numbers = #tpu.dot_dimension_numbers<[1], [0], [0], [1], [0, 0, 1, 1], [], []>} : vector<2x32xf32>, vector<32x128xf32>, vector<2x128xf32> -> vector<2x128xf32>
    %179 = arith.addf %13, %178 : vector<2x128xf32>
    %180 = vector.extract_strided_slice %179 {offsets = [0, 0], sizes = [2, 96], strides = [1, 1]} : vector<2x128xf32> to vector<2x96xf32>
    %cst_45 = arith.constant 0.000000e+00 : f32
    %181 = vector.broadcast %cst_45 : f32 to vector<2x96xf32>
    %182 = arith.subf %181, %180 : vector<2x96xf32>
    %183 = math.exp %182 : vector<2x96xf32>
    %cst_46 = arith.constant 1.000000e+00 : f32
    %184 = vector.broadcast %cst_46 : f32 to vector<2x96xf32>
    %185 = arith.addf %184, %183 : vector<2x96xf32>
    %186 = tpu.reciprocal %185 {approx = true} : vector<2x96xf32> -> vector<2x96xf32>
    %187 = vector.extract_strided_slice %186 {offsets = [0, 0], sizes = [2, 32], strides = [1, 1]} : vector<2x96xf32> to vector<2x32xf32>
    %188 = vector.extract_strided_slice %186 {offsets = [0, 32], sizes = [2, 32], strides = [1, 1]} : vector<2x96xf32> to vector<2x32xf32>
    %189 = vector.extract_strided_slice %186 {offsets = [0, 64], sizes = [2, 32], strides = [1, 1]} : vector<2x96xf32> to vector<2x32xf32>
    %190 = vector.extract_strided_slice %179 {offsets = [0, 96], sizes = [2, 32], strides = [1, 1]} : vector<2x128xf32> to vector<2x32xf32>
    %191 = math.tanh %190 : vector<2x32xf32>
    %192 = arith.mulf %188, %154 : vector<2x32xf32>
    %193 = arith.mulf %187, %191 : vector<2x32xf32>
    %194 = arith.addf %192, %193 : vector<2x32xf32>
    %195 = math.tanh %194 : vector<2x32xf32>
    %196 = arith.mulf %189, %195 : vector<2x32xf32>
    %197 = tpu.concatenate %196, %177 in 1 : vector<2x32xf32>, vector<2x32xf32> -> vector<2x64xf32>
    %cst_47 = arith.constant dense<0.000000e+00> : vector<2x128xf32>
    %198 = tpu.matmul %197, %4, %cst_47 {dimension_numbers = #tpu.dot_dimension_numbers<[1], [0], [0], [1], [0, 0, 1, 1], [], []>} : vector<2x64xf32>, vector<64x128xf32>, vector<2x128xf32> -> vector<2x128xf32>
    %199 = vector.broadcast %6 : vector<1x128xf32> to vector<2x128xf32>
    %200 = arith.addf %198, %199 : vector<2x128xf32>
    %201 = vector.extract_strided_slice %200 {offsets = [0, 0], sizes = [2, 96], strides = [1, 1]} : vector<2x128xf32> to vector<2x96xf32>
    %cst_48 = arith.constant 0.000000e+00 : f32
    %202 = vector.broadcast %cst_48 : f32 to vector<2x96xf32>
    %203 = arith.subf %202, %201 : vector<2x96xf32>
    %204 = math.exp %203 : vector<2x96xf32>
    %cst_49 = arith.constant 1.000000e+00 : f32
    %205 = vector.broadcast %cst_49 : f32 to vector<2x96xf32>
    %206 = arith.addf %205, %204 : vector<2x96xf32>
    %207 = tpu.reciprocal %206 {approx = true} : vector<2x96xf32> -> vector<2x96xf32>
    %208 = vector.extract_strided_slice %207 {offsets = [0, 0], sizes = [2, 32], strides = [1, 1]} : vector<2x96xf32> to vector<2x32xf32>
    %209 = vector.extract_strided_slice %207 {offsets = [0, 32], sizes = [2, 32], strides = [1, 1]} : vector<2x96xf32> to vector<2x32xf32>
    %210 = vector.extract_strided_slice %207 {offsets = [0, 64], sizes = [2, 32], strides = [1, 1]} : vector<2x96xf32> to vector<2x32xf32>
    %211 = vector.extract_strided_slice %200 {offsets = [0, 96], sizes = [2, 32], strides = [1, 1]} : vector<2x128xf32> to vector<2x32xf32>
    %212 = math.tanh %211 : vector<2x32xf32>
    %213 = arith.mulf %209, %175 : vector<2x32xf32>
    %214 = arith.mulf %208, %212 : vector<2x32xf32>
    %215 = arith.addf %213, %214 : vector<2x32xf32>
    %216 = math.tanh %215 : vector<2x32xf32>
    %217 = arith.mulf %210, %216 : vector<2x32xf32>
    %cst_50 = arith.constant dense<0.000000e+00> : vector<2x128xf32>
    %218 = tpu.matmul %196, %2, %cst_50 {dimension_numbers = #tpu.dot_dimension_numbers<[1], [0], [0], [1], [0, 0, 1, 1], [], []>} : vector<2x32xf32>, vector<32x128xf32>, vector<2x128xf32> -> vector<2x128xf32>
    %219 = arith.addf %13, %218 : vector<2x128xf32>
    %220 = vector.extract_strided_slice %219 {offsets = [0, 0], sizes = [2, 96], strides = [1, 1]} : vector<2x128xf32> to vector<2x96xf32>
    %cst_51 = arith.constant 0.000000e+00 : f32
    %221 = vector.broadcast %cst_51 : f32 to vector<2x96xf32>
    %222 = arith.subf %221, %220 : vector<2x96xf32>
    %223 = math.exp %222 : vector<2x96xf32>
    %cst_52 = arith.constant 1.000000e+00 : f32
    %224 = vector.broadcast %cst_52 : f32 to vector<2x96xf32>
    %225 = arith.addf %224, %223 : vector<2x96xf32>
    %226 = tpu.reciprocal %225 {approx = true} : vector<2x96xf32> -> vector<2x96xf32>
    %227 = vector.extract_strided_slice %226 {offsets = [0, 0], sizes = [2, 32], strides = [1, 1]} : vector<2x96xf32> to vector<2x32xf32>
    %228 = vector.extract_strided_slice %226 {offsets = [0, 32], sizes = [2, 32], strides = [1, 1]} : vector<2x96xf32> to vector<2x32xf32>
    %229 = vector.extract_strided_slice %226 {offsets = [0, 64], sizes = [2, 32], strides = [1, 1]} : vector<2x96xf32> to vector<2x32xf32>
    %230 = vector.extract_strided_slice %219 {offsets = [0, 96], sizes = [2, 32], strides = [1, 1]} : vector<2x128xf32> to vector<2x32xf32>
    %231 = math.tanh %230 : vector<2x32xf32>
    %232 = arith.mulf %228, %194 : vector<2x32xf32>
    %233 = arith.mulf %227, %231 : vector<2x32xf32>
    %234 = arith.addf %232, %233 : vector<2x32xf32>
    %235 = math.tanh %234 : vector<2x32xf32>
    %236 = arith.mulf %229, %235 : vector<2x32xf32>
    %237 = tpu.concatenate %236, %217 in 1 : vector<2x32xf32>, vector<2x32xf32> -> vector<2x64xf32>
    %cst_53 = arith.constant dense<0.000000e+00> : vector<2x128xf32>
    %238 = tpu.matmul %237, %4, %cst_53 {dimension_numbers = #tpu.dot_dimension_numbers<[1], [0], [0], [1], [0, 0, 1, 1], [], []>} : vector<2x64xf32>, vector<64x128xf32>, vector<2x128xf32> -> vector<2x128xf32>
    %239 = vector.broadcast %6 : vector<1x128xf32> to vector<2x128xf32>
    %240 = arith.addf %238, %239 : vector<2x128xf32>
    %241 = vector.extract_strided_slice %240 {offsets = [0, 0], sizes = [2, 96], strides = [1, 1]} : vector<2x128xf32> to vector<2x96xf32>
    %cst_54 = arith.constant 0.000000e+00 : f32
    %242 = vector.broadcast %cst_54 : f32 to vector<2x96xf32>
    %243 = arith.subf %242, %241 : vector<2x96xf32>
    %244 = math.exp %243 : vector<2x96xf32>
    %cst_55 = arith.constant 1.000000e+00 : f32
    %245 = vector.broadcast %cst_55 : f32 to vector<2x96xf32>
    %246 = arith.addf %245, %244 : vector<2x96xf32>
    %247 = tpu.reciprocal %246 {approx = true} : vector<2x96xf32> -> vector<2x96xf32>
    %248 = vector.extract_strided_slice %247 {offsets = [0, 0], sizes = [2, 32], strides = [1, 1]} : vector<2x96xf32> to vector<2x32xf32>
    %249 = vector.extract_strided_slice %247 {offsets = [0, 32], sizes = [2, 32], strides = [1, 1]} : vector<2x96xf32> to vector<2x32xf32>
    %250 = vector.extract_strided_slice %247 {offsets = [0, 64], sizes = [2, 32], strides = [1, 1]} : vector<2x96xf32> to vector<2x32xf32>
    %251 = vector.extract_strided_slice %240 {offsets = [0, 96], sizes = [2, 32], strides = [1, 1]} : vector<2x128xf32> to vector<2x32xf32>
    %252 = math.tanh %251 : vector<2x32xf32>
    %253 = arith.mulf %249, %215 : vector<2x32xf32>
    %254 = arith.mulf %248, %252 : vector<2x32xf32>
    %255 = arith.addf %253, %254 : vector<2x32xf32>
    %256 = math.tanh %255 : vector<2x32xf32>
    %257 = arith.mulf %250, %256 : vector<2x32xf32>
    %cst_56 = arith.constant dense<0.000000e+00> : vector<2x128xf32>
    %258 = tpu.matmul %236, %2, %cst_56 {dimension_numbers = #tpu.dot_dimension_numbers<[1], [0], [0], [1], [0, 0, 1, 1], [], []>} : vector<2x32xf32>, vector<32x128xf32>, vector<2x128xf32> -> vector<2x128xf32>
    %259 = arith.addf %13, %258 : vector<2x128xf32>
    %260 = vector.extract_strided_slice %259 {offsets = [0, 0], sizes = [2, 96], strides = [1, 1]} : vector<2x128xf32> to vector<2x96xf32>
    %cst_57 = arith.constant 0.000000e+00 : f32
    %261 = vector.broadcast %cst_57 : f32 to vector<2x96xf32>
    %262 = arith.subf %261, %260 : vector<2x96xf32>
    %263 = math.exp %262 : vector<2x96xf32>
    %cst_58 = arith.constant 1.000000e+00 : f32
    %264 = vector.broadcast %cst_58 : f32 to vector<2x96xf32>
    %265 = arith.addf %264, %263 : vector<2x96xf32>
    %266 = tpu.reciprocal %265 {approx = true} : vector<2x96xf32> -> vector<2x96xf32>
    %267 = vector.extract_strided_slice %266 {offsets = [0, 0], sizes = [2, 32], strides = [1, 1]} : vector<2x96xf32> to vector<2x32xf32>
    %268 = vector.extract_strided_slice %266 {offsets = [0, 32], sizes = [2, 32], strides = [1, 1]} : vector<2x96xf32> to vector<2x32xf32>
    %269 = vector.extract_strided_slice %266 {offsets = [0, 64], sizes = [2, 32], strides = [1, 1]} : vector<2x96xf32> to vector<2x32xf32>
    %270 = vector.extract_strided_slice %259 {offsets = [0, 96], sizes = [2, 32], strides = [1, 1]} : vector<2x128xf32> to vector<2x32xf32>
    %271 = math.tanh %270 : vector<2x32xf32>
    %272 = arith.mulf %268, %234 : vector<2x32xf32>
    %273 = arith.mulf %267, %271 : vector<2x32xf32>
    %274 = arith.addf %272, %273 : vector<2x32xf32>
    %275 = math.tanh %274 : vector<2x32xf32>
    %276 = arith.mulf %269, %275 : vector<2x32xf32>
    %277 = tpu.concatenate %276, %257 in 1 : vector<2x32xf32>, vector<2x32xf32> -> vector<2x64xf32>
    %cst_59 = arith.constant dense<0.000000e+00> : vector<2x128xf32>
    %278 = tpu.matmul %277, %4, %cst_59 {dimension_numbers = #tpu.dot_dimension_numbers<[1], [0], [0], [1], [0, 0, 1, 1], [], []>} : vector<2x64xf32>, vector<64x128xf32>, vector<2x128xf32> -> vector<2x128xf32>
    %279 = vector.broadcast %6 : vector<1x128xf32> to vector<2x128xf32>
    %280 = arith.addf %278, %279 : vector<2x128xf32>
    %281 = vector.extract_strided_slice %280 {offsets = [0, 0], sizes = [2, 96], strides = [1, 1]} : vector<2x128xf32> to vector<2x96xf32>
    %cst_60 = arith.constant 0.000000e+00 : f32
    %282 = vector.broadcast %cst_60 : f32 to vector<2x96xf32>
    %283 = arith.subf %282, %281 : vector<2x96xf32>
    %284 = math.exp %283 : vector<2x96xf32>
    %cst_61 = arith.constant 1.000000e+00 : f32
    %285 = vector.broadcast %cst_61 : f32 to vector<2x96xf32>
    %286 = arith.addf %285, %284 : vector<2x96xf32>
    %287 = tpu.reciprocal %286 {approx = true} : vector<2x96xf32> -> vector<2x96xf32>
    %288 = vector.extract_strided_slice %287 {offsets = [0, 0], sizes = [2, 32], strides = [1, 1]} : vector<2x96xf32> to vector<2x32xf32>
    %289 = vector.extract_strided_slice %287 {offsets = [0, 32], sizes = [2, 32], strides = [1, 1]} : vector<2x96xf32> to vector<2x32xf32>
    %290 = vector.extract_strided_slice %287 {offsets = [0, 64], sizes = [2, 32], strides = [1, 1]} : vector<2x96xf32> to vector<2x32xf32>
    %291 = vector.extract_strided_slice %280 {offsets = [0, 96], sizes = [2, 32], strides = [1, 1]} : vector<2x128xf32> to vector<2x32xf32>
    %292 = math.tanh %291 : vector<2x32xf32>
    %293 = arith.mulf %289, %255 : vector<2x32xf32>
    %294 = arith.mulf %288, %292 : vector<2x32xf32>
    %295 = arith.addf %293, %294 : vector<2x32xf32>
    %296 = math.tanh %295 : vector<2x32xf32>
    %297 = arith.mulf %290, %296 : vector<2x32xf32>
    %cst_62 = arith.constant dense<0.000000e+00> : vector<2x128xf32>
    %298 = tpu.matmul %276, %2, %cst_62 {dimension_numbers = #tpu.dot_dimension_numbers<[1], [0], [0], [1], [0, 0, 1, 1], [], []>} : vector<2x32xf32>, vector<32x128xf32>, vector<2x128xf32> -> vector<2x128xf32>
    %299 = arith.addf %13, %298 : vector<2x128xf32>
    %300 = vector.extract_strided_slice %299 {offsets = [0, 0], sizes = [2, 96], strides = [1, 1]} : vector<2x128xf32> to vector<2x96xf32>
    %cst_63 = arith.constant 0.000000e+00 : f32
    %301 = vector.broadcast %cst_63 : f32 to vector<2x96xf32>
    %302 = arith.subf %301, %300 : vector<2x96xf32>
    %303 = math.exp %302 : vector<2x96xf32>
    %cst_64 = arith.constant 1.000000e+00 : f32
    %304 = vector.broadcast %cst_64 : f32 to vector<2x96xf32>
    %305 = arith.addf %304, %303 : vector<2x96xf32>
    %306 = tpu.reciprocal %305 {approx = true} : vector<2x96xf32> -> vector<2x96xf32>
    %307 = vector.extract_strided_slice %306 {offsets = [0, 0], sizes = [2, 32], strides = [1, 1]} : vector<2x96xf32> to vector<2x32xf32>
    %308 = vector.extract_strided_slice %306 {offsets = [0, 32], sizes = [2, 32], strides = [1, 1]} : vector<2x96xf32> to vector<2x32xf32>
    %309 = vector.extract_strided_slice %306 {offsets = [0, 64], sizes = [2, 32], strides = [1, 1]} : vector<2x96xf32> to vector<2x32xf32>
    %310 = vector.extract_strided_slice %299 {offsets = [0, 96], sizes = [2, 32], strides = [1, 1]} : vector<2x128xf32> to vector<2x32xf32>
    %311 = math.tanh %310 : vector<2x32xf32>
    %312 = arith.mulf %308, %274 : vector<2x32xf32>
    %313 = arith.mulf %307, %311 : vector<2x32xf32>
    %314 = arith.addf %312, %313 : vector<2x32xf32>
    %315 = math.tanh %314 : vector<2x32xf32>
    %316 = arith.mulf %309, %315 : vector<2x32xf32>
    %317 = tpu.concatenate %316, %297 in 1 : vector<2x32xf32>, vector<2x32xf32> -> vector<2x64xf32>
    %cst_65 = arith.constant dense<0.000000e+00> : vector<2x128xf32>
    %318 = tpu.matmul %317, %4, %cst_65 {dimension_numbers = #tpu.dot_dimension_numbers<[1], [0], [0], [1], [0, 0, 1, 1], [], []>} : vector<2x64xf32>, vector<64x128xf32>, vector<2x128xf32> -> vector<2x128xf32>
    %319 = vector.broadcast %6 : vector<1x128xf32> to vector<2x128xf32>
    %320 = arith.addf %318, %319 : vector<2x128xf32>
    %321 = vector.extract_strided_slice %320 {offsets = [0, 0], sizes = [2, 96], strides = [1, 1]} : vector<2x128xf32> to vector<2x96xf32>
    %cst_66 = arith.constant 0.000000e+00 : f32
    %322 = vector.broadcast %cst_66 : f32 to vector<2x96xf32>
    %323 = arith.subf %322, %321 : vector<2x96xf32>
    %324 = math.exp %323 : vector<2x96xf32>
    %cst_67 = arith.constant 1.000000e+00 : f32
    %325 = vector.broadcast %cst_67 : f32 to vector<2x96xf32>
    %326 = arith.addf %325, %324 : vector<2x96xf32>
    %327 = tpu.reciprocal %326 {approx = true} : vector<2x96xf32> -> vector<2x96xf32>
    %328 = vector.extract_strided_slice %327 {offsets = [0, 0], sizes = [2, 32], strides = [1, 1]} : vector<2x96xf32> to vector<2x32xf32>
    %329 = vector.extract_strided_slice %327 {offsets = [0, 32], sizes = [2, 32], strides = [1, 1]} : vector<2x96xf32> to vector<2x32xf32>
    %330 = vector.extract_strided_slice %327 {offsets = [0, 64], sizes = [2, 32], strides = [1, 1]} : vector<2x96xf32> to vector<2x32xf32>
    %331 = vector.extract_strided_slice %320 {offsets = [0, 96], sizes = [2, 32], strides = [1, 1]} : vector<2x128xf32> to vector<2x32xf32>
    %332 = math.tanh %331 : vector<2x32xf32>
    %333 = arith.mulf %329, %295 : vector<2x32xf32>
    %334 = arith.mulf %328, %332 : vector<2x32xf32>
    %335 = arith.addf %333, %334 : vector<2x32xf32>
    %336 = math.tanh %335 : vector<2x32xf32>
    %337 = arith.mulf %330, %336 : vector<2x32xf32>
    %cst_68 = arith.constant dense<0.000000e+00> : vector<2x128xf32>
    %338 = tpu.matmul %316, %2, %cst_68 {dimension_numbers = #tpu.dot_dimension_numbers<[1], [0], [0], [1], [0, 0, 1, 1], [], []>} : vector<2x32xf32>, vector<32x128xf32>, vector<2x128xf32> -> vector<2x128xf32>
    %339 = arith.addf %13, %338 : vector<2x128xf32>
    %340 = vector.extract_strided_slice %339 {offsets = [0, 0], sizes = [2, 96], strides = [1, 1]} : vector<2x128xf32> to vector<2x96xf32>
    %cst_69 = arith.constant 0.000000e+00 : f32
    %341 = vector.broadcast %cst_69 : f32 to vector<2x96xf32>
    %342 = arith.subf %341, %340 : vector<2x96xf32>
    %343 = math.exp %342 : vector<2x96xf32>
    %cst_70 = arith.constant 1.000000e+00 : f32
    %344 = vector.broadcast %cst_70 : f32 to vector<2x96xf32>
    %345 = arith.addf %344, %343 : vector<2x96xf32>
    %346 = tpu.reciprocal %345 {approx = true} : vector<2x96xf32> -> vector<2x96xf32>
    %347 = vector.extract_strided_slice %346 {offsets = [0, 0], sizes = [2, 32], strides = [1, 1]} : vector<2x96xf32> to vector<2x32xf32>
    %348 = vector.extract_strided_slice %346 {offsets = [0, 32], sizes = [2, 32], strides = [1, 1]} : vector<2x96xf32> to vector<2x32xf32>
    %349 = vector.extract_strided_slice %346 {offsets = [0, 64], sizes = [2, 32], strides = [1, 1]} : vector<2x96xf32> to vector<2x32xf32>
    %350 = vector.extract_strided_slice %339 {offsets = [0, 96], sizes = [2, 32], strides = [1, 1]} : vector<2x128xf32> to vector<2x32xf32>
    %351 = math.tanh %350 : vector<2x32xf32>
    %352 = arith.mulf %348, %314 : vector<2x32xf32>
    %353 = arith.mulf %347, %351 : vector<2x32xf32>
    %354 = arith.addf %352, %353 : vector<2x32xf32>
    %355 = math.tanh %354 : vector<2x32xf32>
    %356 = arith.mulf %349, %355 : vector<2x32xf32>
    %357 = tpu.concatenate %356, %337 in 1 : vector<2x32xf32>, vector<2x32xf32> -> vector<2x64xf32>
    %cst_71 = arith.constant dense<0.000000e+00> : vector<2x128xf32>
    %358 = tpu.matmul %357, %4, %cst_71 {dimension_numbers = #tpu.dot_dimension_numbers<[1], [0], [0], [1], [0, 0, 1, 1], [], []>} : vector<2x64xf32>, vector<64x128xf32>, vector<2x128xf32> -> vector<2x128xf32>
    %359 = vector.broadcast %6 : vector<1x128xf32> to vector<2x128xf32>
    %360 = arith.addf %358, %359 : vector<2x128xf32>
    %361 = vector.extract_strided_slice %360 {offsets = [0, 0], sizes = [2, 96], strides = [1, 1]} : vector<2x128xf32> to vector<2x96xf32>
    %cst_72 = arith.constant 0.000000e+00 : f32
    %362 = vector.broadcast %cst_72 : f32 to vector<2x96xf32>
    %363 = arith.subf %362, %361 : vector<2x96xf32>
    %364 = math.exp %363 : vector<2x96xf32>
    %cst_73 = arith.constant 1.000000e+00 : f32
    %365 = vector.broadcast %cst_73 : f32 to vector<2x96xf32>
    %366 = arith.addf %365, %364 : vector<2x96xf32>
    %367 = tpu.reciprocal %366 {approx = true} : vector<2x96xf32> -> vector<2x96xf32>
    %368 = vector.extract_strided_slice %367 {offsets = [0, 0], sizes = [2, 32], strides = [1, 1]} : vector<2x96xf32> to vector<2x32xf32>
    %369 = vector.extract_strided_slice %367 {offsets = [0, 32], sizes = [2, 32], strides = [1, 1]} : vector<2x96xf32> to vector<2x32xf32>
    %370 = vector.extract_strided_slice %367 {offsets = [0, 64], sizes = [2, 32], strides = [1, 1]} : vector<2x96xf32> to vector<2x32xf32>
    %371 = vector.extract_strided_slice %360 {offsets = [0, 96], sizes = [2, 32], strides = [1, 1]} : vector<2x128xf32> to vector<2x32xf32>
    %372 = math.tanh %371 : vector<2x32xf32>
    %373 = arith.mulf %369, %335 : vector<2x32xf32>
    %374 = arith.mulf %368, %372 : vector<2x32xf32>
    %375 = arith.addf %373, %374 : vector<2x32xf32>
    %376 = math.tanh %375 : vector<2x32xf32>
    %377 = arith.mulf %370, %376 : vector<2x32xf32>
    %cst_74 = arith.constant dense<0.000000e+00> : vector<2x128xf32>
    %378 = tpu.matmul %356, %2, %cst_74 {dimension_numbers = #tpu.dot_dimension_numbers<[1], [0], [0], [1], [0, 0, 1, 1], [], []>} : vector<2x32xf32>, vector<32x128xf32>, vector<2x128xf32> -> vector<2x128xf32>
    %379 = arith.addf %13, %378 : vector<2x128xf32>
    %380 = vector.extract_strided_slice %379 {offsets = [0, 0], sizes = [2, 96], strides = [1, 1]} : vector<2x128xf32> to vector<2x96xf32>
    %cst_75 = arith.constant 0.000000e+00 : f32
    %381 = vector.broadcast %cst_75 : f32 to vector<2x96xf32>
    %382 = arith.subf %381, %380 : vector<2x96xf32>
    %383 = math.exp %382 : vector<2x96xf32>
    %cst_76 = arith.constant 1.000000e+00 : f32
    %384 = vector.broadcast %cst_76 : f32 to vector<2x96xf32>
    %385 = arith.addf %384, %383 : vector<2x96xf32>
    %386 = tpu.reciprocal %385 {approx = true} : vector<2x96xf32> -> vector<2x96xf32>
    %387 = vector.extract_strided_slice %386 {offsets = [0, 0], sizes = [2, 32], strides = [1, 1]} : vector<2x96xf32> to vector<2x32xf32>
    %388 = vector.extract_strided_slice %386 {offsets = [0, 32], sizes = [2, 32], strides = [1, 1]} : vector<2x96xf32> to vector<2x32xf32>
    %389 = vector.extract_strided_slice %386 {offsets = [0, 64], sizes = [2, 32], strides = [1, 1]} : vector<2x96xf32> to vector<2x32xf32>
    %390 = vector.extract_strided_slice %379 {offsets = [0, 96], sizes = [2, 32], strides = [1, 1]} : vector<2x128xf32> to vector<2x32xf32>
    %391 = math.tanh %390 : vector<2x32xf32>
    %392 = arith.mulf %388, %354 : vector<2x32xf32>
    %393 = arith.mulf %387, %391 : vector<2x32xf32>
    %394 = arith.addf %392, %393 : vector<2x32xf32>
    %395 = math.tanh %394 : vector<2x32xf32>
    %396 = arith.mulf %389, %395 : vector<2x32xf32>
    %397 = tpu.concatenate %396, %377 in 1 : vector<2x32xf32>, vector<2x32xf32> -> vector<2x64xf32>
    %cst_77 = arith.constant dense<0.000000e+00> : vector<2x128xf32>
    %398 = tpu.matmul %397, %4, %cst_77 {dimension_numbers = #tpu.dot_dimension_numbers<[1], [0], [0], [1], [0, 0, 1, 1], [], []>} : vector<2x64xf32>, vector<64x128xf32>, vector<2x128xf32> -> vector<2x128xf32>
    %399 = vector.broadcast %6 : vector<1x128xf32> to vector<2x128xf32>
    %400 = arith.addf %398, %399 : vector<2x128xf32>
    %401 = vector.extract_strided_slice %400 {offsets = [0, 0], sizes = [2, 96], strides = [1, 1]} : vector<2x128xf32> to vector<2x96xf32>
    %cst_78 = arith.constant 0.000000e+00 : f32
    %402 = vector.broadcast %cst_78 : f32 to vector<2x96xf32>
    %403 = arith.subf %402, %401 : vector<2x96xf32>
    %404 = math.exp %403 : vector<2x96xf32>
    %cst_79 = arith.constant 1.000000e+00 : f32
    %405 = vector.broadcast %cst_79 : f32 to vector<2x96xf32>
    %406 = arith.addf %405, %404 : vector<2x96xf32>
    %407 = tpu.reciprocal %406 {approx = true} : vector<2x96xf32> -> vector<2x96xf32>
    %408 = vector.extract_strided_slice %407 {offsets = [0, 0], sizes = [2, 32], strides = [1, 1]} : vector<2x96xf32> to vector<2x32xf32>
    %409 = vector.extract_strided_slice %407 {offsets = [0, 32], sizes = [2, 32], strides = [1, 1]} : vector<2x96xf32> to vector<2x32xf32>
    %410 = vector.extract_strided_slice %407 {offsets = [0, 64], sizes = [2, 32], strides = [1, 1]} : vector<2x96xf32> to vector<2x32xf32>
    %411 = vector.extract_strided_slice %400 {offsets = [0, 96], sizes = [2, 32], strides = [1, 1]} : vector<2x128xf32> to vector<2x32xf32>
    %412 = math.tanh %411 : vector<2x32xf32>
    %413 = arith.mulf %409, %375 : vector<2x32xf32>
    %414 = arith.mulf %408, %412 : vector<2x32xf32>
    %415 = arith.addf %413, %414 : vector<2x32xf32>
    %416 = math.tanh %415 : vector<2x32xf32>
    %417 = arith.mulf %410, %416 : vector<2x32xf32>
    %cst_80 = arith.constant dense<0.000000e+00> : vector<2x128xf32>
    %418 = tpu.matmul %396, %2, %cst_80 {dimension_numbers = #tpu.dot_dimension_numbers<[1], [0], [0], [1], [0, 0, 1, 1], [], []>} : vector<2x32xf32>, vector<32x128xf32>, vector<2x128xf32> -> vector<2x128xf32>
    %419 = arith.addf %13, %418 : vector<2x128xf32>
    %420 = vector.extract_strided_slice %419 {offsets = [0, 0], sizes = [2, 96], strides = [1, 1]} : vector<2x128xf32> to vector<2x96xf32>
    %cst_81 = arith.constant 0.000000e+00 : f32
    %421 = vector.broadcast %cst_81 : f32 to vector<2x96xf32>
    %422 = arith.subf %421, %420 : vector<2x96xf32>
    %423 = math.exp %422 : vector<2x96xf32>
    %cst_82 = arith.constant 1.000000e+00 : f32
    %424 = vector.broadcast %cst_82 : f32 to vector<2x96xf32>
    %425 = arith.addf %424, %423 : vector<2x96xf32>
    %426 = tpu.reciprocal %425 {approx = true} : vector<2x96xf32> -> vector<2x96xf32>
    %427 = vector.extract_strided_slice %426 {offsets = [0, 0], sizes = [2, 32], strides = [1, 1]} : vector<2x96xf32> to vector<2x32xf32>
    %428 = vector.extract_strided_slice %426 {offsets = [0, 32], sizes = [2, 32], strides = [1, 1]} : vector<2x96xf32> to vector<2x32xf32>
    %429 = vector.extract_strided_slice %426 {offsets = [0, 64], sizes = [2, 32], strides = [1, 1]} : vector<2x96xf32> to vector<2x32xf32>
    %430 = vector.extract_strided_slice %419 {offsets = [0, 96], sizes = [2, 32], strides = [1, 1]} : vector<2x128xf32> to vector<2x32xf32>
    %431 = math.tanh %430 : vector<2x32xf32>
    %432 = arith.mulf %428, %394 : vector<2x32xf32>
    %433 = arith.mulf %427, %431 : vector<2x32xf32>
    %434 = arith.addf %432, %433 : vector<2x32xf32>
    %435 = math.tanh %434 : vector<2x32xf32>
    %436 = arith.mulf %429, %435 : vector<2x32xf32>
    %437 = tpu.concatenate %436, %417 in 1 : vector<2x32xf32>, vector<2x32xf32> -> vector<2x64xf32>
    %cst_83 = arith.constant dense<0.000000e+00> : vector<2x128xf32>
    %438 = tpu.matmul %437, %4, %cst_83 {dimension_numbers = #tpu.dot_dimension_numbers<[1], [0], [0], [1], [0, 0, 1, 1], [], []>} : vector<2x64xf32>, vector<64x128xf32>, vector<2x128xf32> -> vector<2x128xf32>
    %439 = vector.broadcast %6 : vector<1x128xf32> to vector<2x128xf32>
    %440 = arith.addf %438, %439 : vector<2x128xf32>
    %441 = vector.extract_strided_slice %440 {offsets = [0, 0], sizes = [2, 96], strides = [1, 1]} : vector<2x128xf32> to vector<2x96xf32>
    %cst_84 = arith.constant 0.000000e+00 : f32
    %442 = vector.broadcast %cst_84 : f32 to vector<2x96xf32>
    %443 = arith.subf %442, %441 : vector<2x96xf32>
    %444 = math.exp %443 : vector<2x96xf32>
    %cst_85 = arith.constant 1.000000e+00 : f32
    %445 = vector.broadcast %cst_85 : f32 to vector<2x96xf32>
    %446 = arith.addf %445, %444 : vector<2x96xf32>
    %447 = tpu.reciprocal %446 {approx = true} : vector<2x96xf32> -> vector<2x96xf32>
    %448 = vector.extract_strided_slice %447 {offsets = [0, 0], sizes = [2, 32], strides = [1, 1]} : vector<2x96xf32> to vector<2x32xf32>
    %449 = vector.extract_strided_slice %447 {offsets = [0, 32], sizes = [2, 32], strides = [1, 1]} : vector<2x96xf32> to vector<2x32xf32>
    %450 = vector.extract_strided_slice %447 {offsets = [0, 64], sizes = [2, 32], strides = [1, 1]} : vector<2x96xf32> to vector<2x32xf32>
    %451 = vector.extract_strided_slice %440 {offsets = [0, 96], sizes = [2, 32], strides = [1, 1]} : vector<2x128xf32> to vector<2x32xf32>
    %452 = math.tanh %451 : vector<2x32xf32>
    %453 = arith.mulf %449, %415 : vector<2x32xf32>
    %454 = arith.mulf %448, %452 : vector<2x32xf32>
    %455 = arith.addf %453, %454 : vector<2x32xf32>
    %456 = math.tanh %455 : vector<2x32xf32>
    %457 = arith.mulf %450, %456 : vector<2x32xf32>
    %cst_86 = arith.constant dense<0.000000e+00> : vector<2x128xf32>
    %458 = tpu.matmul %436, %2, %cst_86 {dimension_numbers = #tpu.dot_dimension_numbers<[1], [0], [0], [1], [0, 0, 1, 1], [], []>} : vector<2x32xf32>, vector<32x128xf32>, vector<2x128xf32> -> vector<2x128xf32>
    %459 = arith.addf %13, %458 : vector<2x128xf32>
    %460 = vector.extract_strided_slice %459 {offsets = [0, 0], sizes = [2, 96], strides = [1, 1]} : vector<2x128xf32> to vector<2x96xf32>
    %cst_87 = arith.constant 0.000000e+00 : f32
    %461 = vector.broadcast %cst_87 : f32 to vector<2x96xf32>
    %462 = arith.subf %461, %460 : vector<2x96xf32>
    %463 = math.exp %462 : vector<2x96xf32>
    %cst_88 = arith.constant 1.000000e+00 : f32
    %464 = vector.broadcast %cst_88 : f32 to vector<2x96xf32>
    %465 = arith.addf %464, %463 : vector<2x96xf32>
    %466 = tpu.reciprocal %465 {approx = true} : vector<2x96xf32> -> vector<2x96xf32>
    %467 = vector.extract_strided_slice %466 {offsets = [0, 0], sizes = [2, 32], strides = [1, 1]} : vector<2x96xf32> to vector<2x32xf32>
    %468 = vector.extract_strided_slice %466 {offsets = [0, 32], sizes = [2, 32], strides = [1, 1]} : vector<2x96xf32> to vector<2x32xf32>
    %469 = vector.extract_strided_slice %466 {offsets = [0, 64], sizes = [2, 32], strides = [1, 1]} : vector<2x96xf32> to vector<2x32xf32>
    %470 = vector.extract_strided_slice %459 {offsets = [0, 96], sizes = [2, 32], strides = [1, 1]} : vector<2x128xf32> to vector<2x32xf32>
    %471 = math.tanh %470 : vector<2x32xf32>
    %472 = arith.mulf %468, %434 : vector<2x32xf32>
    %473 = arith.mulf %467, %471 : vector<2x32xf32>
    %474 = arith.addf %472, %473 : vector<2x32xf32>
    %475 = math.tanh %474 : vector<2x32xf32>
    %476 = arith.mulf %469, %475 : vector<2x32xf32>
    %477 = tpu.concatenate %476, %457 in 1 : vector<2x32xf32>, vector<2x32xf32> -> vector<2x64xf32>
    %cst_89 = arith.constant dense<0.000000e+00> : vector<2x128xf32>
    %478 = tpu.matmul %477, %4, %cst_89 {dimension_numbers = #tpu.dot_dimension_numbers<[1], [0], [0], [1], [0, 0, 1, 1], [], []>} : vector<2x64xf32>, vector<64x128xf32>, vector<2x128xf32> -> vector<2x128xf32>
    %479 = vector.broadcast %6 : vector<1x128xf32> to vector<2x128xf32>
    %480 = arith.addf %478, %479 : vector<2x128xf32>
    %481 = vector.extract_strided_slice %480 {offsets = [0, 0], sizes = [2, 96], strides = [1, 1]} : vector<2x128xf32> to vector<2x96xf32>
    %cst_90 = arith.constant 0.000000e+00 : f32
    %482 = vector.broadcast %cst_90 : f32 to vector<2x96xf32>
    %483 = arith.subf %482, %481 : vector<2x96xf32>
    %484 = math.exp %483 : vector<2x96xf32>
    %cst_91 = arith.constant 1.000000e+00 : f32
    %485 = vector.broadcast %cst_91 : f32 to vector<2x96xf32>
    %486 = arith.addf %485, %484 : vector<2x96xf32>
    %487 = tpu.reciprocal %486 {approx = true} : vector<2x96xf32> -> vector<2x96xf32>
    %488 = vector.extract_strided_slice %487 {offsets = [0, 0], sizes = [2, 32], strides = [1, 1]} : vector<2x96xf32> to vector<2x32xf32>
    %489 = vector.extract_strided_slice %487 {offsets = [0, 32], sizes = [2, 32], strides = [1, 1]} : vector<2x96xf32> to vector<2x32xf32>
    %490 = vector.extract_strided_slice %487 {offsets = [0, 64], sizes = [2, 32], strides = [1, 1]} : vector<2x96xf32> to vector<2x32xf32>
    %491 = vector.extract_strided_slice %480 {offsets = [0, 96], sizes = [2, 32], strides = [1, 1]} : vector<2x128xf32> to vector<2x32xf32>
    %492 = math.tanh %491 : vector<2x32xf32>
    %493 = arith.mulf %489, %455 : vector<2x32xf32>
    %494 = arith.mulf %488, %492 : vector<2x32xf32>
    %495 = arith.addf %493, %494 : vector<2x32xf32>
    %496 = math.tanh %495 : vector<2x32xf32>
    %497 = arith.mulf %490, %496 : vector<2x32xf32>
    %cst_92 = arith.constant dense<0.000000e+00> : vector<2x128xf32>
    %498 = tpu.matmul %476, %2, %cst_92 {dimension_numbers = #tpu.dot_dimension_numbers<[1], [0], [0], [1], [0, 0, 1, 1], [], []>} : vector<2x32xf32>, vector<32x128xf32>, vector<2x128xf32> -> vector<2x128xf32>
    %499 = arith.addf %13, %498 : vector<2x128xf32>
    %500 = vector.extract_strided_slice %499 {offsets = [0, 0], sizes = [2, 96], strides = [1, 1]} : vector<2x128xf32> to vector<2x96xf32>
    %cst_93 = arith.constant 0.000000e+00 : f32
    %501 = vector.broadcast %cst_93 : f32 to vector<2x96xf32>
    %502 = arith.subf %501, %500 : vector<2x96xf32>
    %503 = math.exp %502 : vector<2x96xf32>
    %cst_94 = arith.constant 1.000000e+00 : f32
    %504 = vector.broadcast %cst_94 : f32 to vector<2x96xf32>
    %505 = arith.addf %504, %503 : vector<2x96xf32>
    %506 = tpu.reciprocal %505 {approx = true} : vector<2x96xf32> -> vector<2x96xf32>
    %507 = vector.extract_strided_slice %506 {offsets = [0, 0], sizes = [2, 32], strides = [1, 1]} : vector<2x96xf32> to vector<2x32xf32>
    %508 = vector.extract_strided_slice %506 {offsets = [0, 32], sizes = [2, 32], strides = [1, 1]} : vector<2x96xf32> to vector<2x32xf32>
    %509 = vector.extract_strided_slice %506 {offsets = [0, 64], sizes = [2, 32], strides = [1, 1]} : vector<2x96xf32> to vector<2x32xf32>
    %510 = vector.extract_strided_slice %499 {offsets = [0, 96], sizes = [2, 32], strides = [1, 1]} : vector<2x128xf32> to vector<2x32xf32>
    %511 = math.tanh %510 : vector<2x32xf32>
    %512 = arith.mulf %508, %474 : vector<2x32xf32>
    %513 = arith.mulf %507, %511 : vector<2x32xf32>
    %514 = arith.addf %512, %513 : vector<2x32xf32>
    %515 = math.tanh %514 : vector<2x32xf32>
    %516 = arith.mulf %509, %515 : vector<2x32xf32>
    %517 = tpu.concatenate %516, %497 in 1 : vector<2x32xf32>, vector<2x32xf32> -> vector<2x64xf32>
    %cst_95 = arith.constant dense<0.000000e+00> : vector<2x128xf32>
    %518 = tpu.matmul %517, %4, %cst_95 {dimension_numbers = #tpu.dot_dimension_numbers<[1], [0], [0], [1], [0, 0, 1, 1], [], []>} : vector<2x64xf32>, vector<64x128xf32>, vector<2x128xf32> -> vector<2x128xf32>
    %519 = vector.broadcast %6 : vector<1x128xf32> to vector<2x128xf32>
    %520 = arith.addf %518, %519 : vector<2x128xf32>
    %521 = vector.extract_strided_slice %520 {offsets = [0, 0], sizes = [2, 96], strides = [1, 1]} : vector<2x128xf32> to vector<2x96xf32>
    %cst_96 = arith.constant 0.000000e+00 : f32
    %522 = vector.broadcast %cst_96 : f32 to vector<2x96xf32>
    %523 = arith.subf %522, %521 : vector<2x96xf32>
    %524 = math.exp %523 : vector<2x96xf32>
    %cst_97 = arith.constant 1.000000e+00 : f32
    %525 = vector.broadcast %cst_97 : f32 to vector<2x96xf32>
    %526 = arith.addf %525, %524 : vector<2x96xf32>
    %527 = tpu.reciprocal %526 {approx = true} : vector<2x96xf32> -> vector<2x96xf32>
    %528 = vector.extract_strided_slice %527 {offsets = [0, 0], sizes = [2, 32], strides = [1, 1]} : vector<2x96xf32> to vector<2x32xf32>
    %529 = vector.extract_strided_slice %527 {offsets = [0, 32], sizes = [2, 32], strides = [1, 1]} : vector<2x96xf32> to vector<2x32xf32>
    %530 = vector.extract_strided_slice %527 {offsets = [0, 64], sizes = [2, 32], strides = [1, 1]} : vector<2x96xf32> to vector<2x32xf32>
    %531 = vector.extract_strided_slice %520 {offsets = [0, 96], sizes = [2, 32], strides = [1, 1]} : vector<2x128xf32> to vector<2x32xf32>
    %532 = math.tanh %531 : vector<2x32xf32>
    %533 = arith.mulf %529, %495 : vector<2x32xf32>
    %534 = arith.mulf %528, %532 : vector<2x32xf32>
    %535 = arith.addf %533, %534 : vector<2x32xf32>
    %536 = math.tanh %535 : vector<2x32xf32>
    %537 = arith.mulf %530, %536 : vector<2x32xf32>
    %cst_98 = arith.constant dense<0.000000e+00> : vector<2x128xf32>
    %538 = tpu.matmul %516, %2, %cst_98 {dimension_numbers = #tpu.dot_dimension_numbers<[1], [0], [0], [1], [0, 0, 1, 1], [], []>} : vector<2x32xf32>, vector<32x128xf32>, vector<2x128xf32> -> vector<2x128xf32>
    %539 = arith.addf %13, %538 : vector<2x128xf32>
    %540 = vector.extract_strided_slice %539 {offsets = [0, 0], sizes = [2, 96], strides = [1, 1]} : vector<2x128xf32> to vector<2x96xf32>
    %cst_99 = arith.constant 0.000000e+00 : f32
    %541 = vector.broadcast %cst_99 : f32 to vector<2x96xf32>
    %542 = arith.subf %541, %540 : vector<2x96xf32>
    %543 = math.exp %542 : vector<2x96xf32>
    %cst_100 = arith.constant 1.000000e+00 : f32
    %544 = vector.broadcast %cst_100 : f32 to vector<2x96xf32>
    %545 = arith.addf %544, %543 : vector<2x96xf32>
    %546 = tpu.reciprocal %545 {approx = true} : vector<2x96xf32> -> vector<2x96xf32>
    %547 = vector.extract_strided_slice %546 {offsets = [0, 0], sizes = [2, 32], strides = [1, 1]} : vector<2x96xf32> to vector<2x32xf32>
    %548 = vector.extract_strided_slice %546 {offsets = [0, 32], sizes = [2, 32], strides = [1, 1]} : vector<2x96xf32> to vector<2x32xf32>
    %549 = vector.extract_strided_slice %546 {offsets = [0, 64], sizes = [2, 32], strides = [1, 1]} : vector<2x96xf32> to vector<2x32xf32>
    %550 = vector.extract_strided_slice %539 {offsets = [0, 96], sizes = [2, 32], strides = [1, 1]} : vector<2x128xf32> to vector<2x32xf32>
    %551 = math.tanh %550 : vector<2x32xf32>
    %552 = arith.mulf %548, %514 : vector<2x32xf32>
    %553 = arith.mulf %547, %551 : vector<2x32xf32>
    %554 = arith.addf %552, %553 : vector<2x32xf32>
    %555 = math.tanh %554 : vector<2x32xf32>
    %556 = arith.mulf %549, %555 : vector<2x32xf32>
    %557 = tpu.concatenate %556, %537 in 1 : vector<2x32xf32>, vector<2x32xf32> -> vector<2x64xf32>
    %cst_101 = arith.constant dense<0.000000e+00> : vector<2x128xf32>
    %558 = tpu.matmul %557, %4, %cst_101 {dimension_numbers = #tpu.dot_dimension_numbers<[1], [0], [0], [1], [0, 0, 1, 1], [], []>} : vector<2x64xf32>, vector<64x128xf32>, vector<2x128xf32> -> vector<2x128xf32>
    %559 = vector.broadcast %6 : vector<1x128xf32> to vector<2x128xf32>
    %560 = arith.addf %558, %559 : vector<2x128xf32>
    %561 = vector.extract_strided_slice %560 {offsets = [0, 0], sizes = [2, 96], strides = [1, 1]} : vector<2x128xf32> to vector<2x96xf32>
    %cst_102 = arith.constant 0.000000e+00 : f32
    %562 = vector.broadcast %cst_102 : f32 to vector<2x96xf32>
    %563 = arith.subf %562, %561 : vector<2x96xf32>
    %564 = math.exp %563 : vector<2x96xf32>
    %cst_103 = arith.constant 1.000000e+00 : f32
    %565 = vector.broadcast %cst_103 : f32 to vector<2x96xf32>
    %566 = arith.addf %565, %564 : vector<2x96xf32>
    %567 = tpu.reciprocal %566 {approx = true} : vector<2x96xf32> -> vector<2x96xf32>
    %568 = vector.extract_strided_slice %567 {offsets = [0, 0], sizes = [2, 32], strides = [1, 1]} : vector<2x96xf32> to vector<2x32xf32>
    %569 = vector.extract_strided_slice %567 {offsets = [0, 32], sizes = [2, 32], strides = [1, 1]} : vector<2x96xf32> to vector<2x32xf32>
    %570 = vector.extract_strided_slice %567 {offsets = [0, 64], sizes = [2, 32], strides = [1, 1]} : vector<2x96xf32> to vector<2x32xf32>
    %571 = vector.extract_strided_slice %560 {offsets = [0, 96], sizes = [2, 32], strides = [1, 1]} : vector<2x128xf32> to vector<2x32xf32>
    %572 = math.tanh %571 : vector<2x32xf32>
    %573 = arith.mulf %569, %535 : vector<2x32xf32>
    %574 = arith.mulf %568, %572 : vector<2x32xf32>
    %575 = arith.addf %573, %574 : vector<2x32xf32>
    %576 = math.tanh %575 : vector<2x32xf32>
    %577 = arith.mulf %570, %576 : vector<2x32xf32>
    %cst_104 = arith.constant dense<0.000000e+00> : vector<2x128xf32>
    %578 = tpu.matmul %556, %2, %cst_104 {dimension_numbers = #tpu.dot_dimension_numbers<[1], [0], [0], [1], [0, 0, 1, 1], [], []>} : vector<2x32xf32>, vector<32x128xf32>, vector<2x128xf32> -> vector<2x128xf32>
    %579 = arith.addf %13, %578 : vector<2x128xf32>
    %580 = vector.extract_strided_slice %579 {offsets = [0, 0], sizes = [2, 96], strides = [1, 1]} : vector<2x128xf32> to vector<2x96xf32>
    %cst_105 = arith.constant 0.000000e+00 : f32
    %581 = vector.broadcast %cst_105 : f32 to vector<2x96xf32>
    %582 = arith.subf %581, %580 : vector<2x96xf32>
    %583 = math.exp %582 : vector<2x96xf32>
    %cst_106 = arith.constant 1.000000e+00 : f32
    %584 = vector.broadcast %cst_106 : f32 to vector<2x96xf32>
    %585 = arith.addf %584, %583 : vector<2x96xf32>
    %586 = tpu.reciprocal %585 {approx = true} : vector<2x96xf32> -> vector<2x96xf32>
    %587 = vector.extract_strided_slice %586 {offsets = [0, 0], sizes = [2, 32], strides = [1, 1]} : vector<2x96xf32> to vector<2x32xf32>
    %588 = vector.extract_strided_slice %586 {offsets = [0, 32], sizes = [2, 32], strides = [1, 1]} : vector<2x96xf32> to vector<2x32xf32>
    %589 = vector.extract_strided_slice %586 {offsets = [0, 64], sizes = [2, 32], strides = [1, 1]} : vector<2x96xf32> to vector<2x32xf32>
    %590 = vector.extract_strided_slice %579 {offsets = [0, 96], sizes = [2, 32], strides = [1, 1]} : vector<2x128xf32> to vector<2x32xf32>
    %591 = math.tanh %590 : vector<2x32xf32>
    %592 = arith.mulf %588, %554 : vector<2x32xf32>
    %593 = arith.mulf %587, %591 : vector<2x32xf32>
    %594 = arith.addf %592, %593 : vector<2x32xf32>
    %595 = math.tanh %594 : vector<2x32xf32>
    %596 = arith.mulf %589, %595 : vector<2x32xf32>
    %597 = tpu.concatenate %596, %577 in 1 : vector<2x32xf32>, vector<2x32xf32> -> vector<2x64xf32>
    %cst_107 = arith.constant dense<0.000000e+00> : vector<2x128xf32>
    %598 = tpu.matmul %597, %4, %cst_107 {dimension_numbers = #tpu.dot_dimension_numbers<[1], [0], [0], [1], [0, 0, 1, 1], [], []>} : vector<2x64xf32>, vector<64x128xf32>, vector<2x128xf32> -> vector<2x128xf32>
    %599 = vector.broadcast %6 : vector<1x128xf32> to vector<2x128xf32>
    %600 = arith.addf %598, %599 : vector<2x128xf32>
    %601 = vector.extract_strided_slice %600 {offsets = [0, 0], sizes = [2, 96], strides = [1, 1]} : vector<2x128xf32> to vector<2x96xf32>
    %cst_108 = arith.constant 0.000000e+00 : f32
    %602 = vector.broadcast %cst_108 : f32 to vector<2x96xf32>
    %603 = arith.subf %602, %601 : vector<2x96xf32>
    %604 = math.exp %603 : vector<2x96xf32>
    %cst_109 = arith.constant 1.000000e+00 : f32
    %605 = vector.broadcast %cst_109 : f32 to vector<2x96xf32>
    %606 = arith.addf %605, %604 : vector<2x96xf32>
    %607 = tpu.reciprocal %606 {approx = true} : vector<2x96xf32> -> vector<2x96xf32>
    %608 = vector.extract_strided_slice %607 {offsets = [0, 0], sizes = [2, 32], strides = [1, 1]} : vector<2x96xf32> to vector<2x32xf32>
    %609 = vector.extract_strided_slice %607 {offsets = [0, 32], sizes = [2, 32], strides = [1, 1]} : vector<2x96xf32> to vector<2x32xf32>
    %610 = vector.extract_strided_slice %607 {offsets = [0, 64], sizes = [2, 32], strides = [1, 1]} : vector<2x96xf32> to vector<2x32xf32>
    %611 = vector.extract_strided_slice %600 {offsets = [0, 96], sizes = [2, 32], strides = [1, 1]} : vector<2x128xf32> to vector<2x32xf32>
    %612 = math.tanh %611 : vector<2x32xf32>
    %613 = arith.mulf %609, %575 : vector<2x32xf32>
    %614 = arith.mulf %608, %612 : vector<2x32xf32>
    %615 = arith.addf %613, %614 : vector<2x32xf32>
    %616 = math.tanh %615 : vector<2x32xf32>
    %617 = arith.mulf %610, %616 : vector<2x32xf32>
    %cst_110 = arith.constant dense<0.000000e+00> : vector<2x128xf32>
    %618 = tpu.matmul %596, %2, %cst_110 {dimension_numbers = #tpu.dot_dimension_numbers<[1], [0], [0], [1], [0, 0, 1, 1], [], []>} : vector<2x32xf32>, vector<32x128xf32>, vector<2x128xf32> -> vector<2x128xf32>
    %619 = arith.addf %13, %618 : vector<2x128xf32>
    %620 = vector.extract_strided_slice %619 {offsets = [0, 0], sizes = [2, 96], strides = [1, 1]} : vector<2x128xf32> to vector<2x96xf32>
    %cst_111 = arith.constant 0.000000e+00 : f32
    %621 = vector.broadcast %cst_111 : f32 to vector<2x96xf32>
    %622 = arith.subf %621, %620 : vector<2x96xf32>
    %623 = math.exp %622 : vector<2x96xf32>
    %cst_112 = arith.constant 1.000000e+00 : f32
    %624 = vector.broadcast %cst_112 : f32 to vector<2x96xf32>
    %625 = arith.addf %624, %623 : vector<2x96xf32>
    %626 = tpu.reciprocal %625 {approx = true} : vector<2x96xf32> -> vector<2x96xf32>
    %627 = vector.extract_strided_slice %626 {offsets = [0, 0], sizes = [2, 32], strides = [1, 1]} : vector<2x96xf32> to vector<2x32xf32>
    %628 = vector.extract_strided_slice %626 {offsets = [0, 32], sizes = [2, 32], strides = [1, 1]} : vector<2x96xf32> to vector<2x32xf32>
    %629 = vector.extract_strided_slice %626 {offsets = [0, 64], sizes = [2, 32], strides = [1, 1]} : vector<2x96xf32> to vector<2x32xf32>
    %630 = vector.extract_strided_slice %619 {offsets = [0, 96], sizes = [2, 32], strides = [1, 1]} : vector<2x128xf32> to vector<2x32xf32>
    %631 = math.tanh %630 : vector<2x32xf32>
    %632 = arith.mulf %628, %594 : vector<2x32xf32>
    %633 = arith.mulf %627, %631 : vector<2x32xf32>
    %634 = arith.addf %632, %633 : vector<2x32xf32>
    %635 = math.tanh %634 : vector<2x32xf32>
    %636 = arith.mulf %629, %635 : vector<2x32xf32>
    %637 = tpu.concatenate %636, %617 in 1 : vector<2x32xf32>, vector<2x32xf32> -> vector<2x64xf32>
    %cst_113 = arith.constant dense<0.000000e+00> : vector<2x128xf32>
    %638 = tpu.matmul %637, %4, %cst_113 {dimension_numbers = #tpu.dot_dimension_numbers<[1], [0], [0], [1], [0, 0, 1, 1], [], []>} : vector<2x64xf32>, vector<64x128xf32>, vector<2x128xf32> -> vector<2x128xf32>
    %639 = vector.broadcast %6 : vector<1x128xf32> to vector<2x128xf32>
    %640 = arith.addf %638, %639 : vector<2x128xf32>
    %641 = vector.extract_strided_slice %640 {offsets = [0, 0], sizes = [2, 96], strides = [1, 1]} : vector<2x128xf32> to vector<2x96xf32>
    %cst_114 = arith.constant 0.000000e+00 : f32
    %642 = vector.broadcast %cst_114 : f32 to vector<2x96xf32>
    %643 = arith.subf %642, %641 : vector<2x96xf32>
    %644 = math.exp %643 : vector<2x96xf32>
    %cst_115 = arith.constant 1.000000e+00 : f32
    %645 = vector.broadcast %cst_115 : f32 to vector<2x96xf32>
    %646 = arith.addf %645, %644 : vector<2x96xf32>
    %647 = tpu.reciprocal %646 {approx = true} : vector<2x96xf32> -> vector<2x96xf32>
    %648 = vector.extract_strided_slice %647 {offsets = [0, 0], sizes = [2, 32], strides = [1, 1]} : vector<2x96xf32> to vector<2x32xf32>
    %649 = vector.extract_strided_slice %647 {offsets = [0, 32], sizes = [2, 32], strides = [1, 1]} : vector<2x96xf32> to vector<2x32xf32>
    %650 = vector.extract_strided_slice %647 {offsets = [0, 64], sizes = [2, 32], strides = [1, 1]} : vector<2x96xf32> to vector<2x32xf32>
    %651 = vector.extract_strided_slice %640 {offsets = [0, 96], sizes = [2, 32], strides = [1, 1]} : vector<2x128xf32> to vector<2x32xf32>
    %652 = math.tanh %651 : vector<2x32xf32>
    %653 = arith.mulf %649, %615 : vector<2x32xf32>
    %654 = arith.mulf %648, %652 : vector<2x32xf32>
    %655 = arith.addf %653, %654 : vector<2x32xf32>
    %656 = math.tanh %655 : vector<2x32xf32>
    %657 = arith.mulf %650, %656 : vector<2x32xf32>
    %cst_116 = arith.constant dense<0.000000e+00> : vector<2x128xf32>
    %658 = tpu.matmul %636, %2, %cst_116 {dimension_numbers = #tpu.dot_dimension_numbers<[1], [0], [0], [1], [0, 0, 1, 1], [], []>} : vector<2x32xf32>, vector<32x128xf32>, vector<2x128xf32> -> vector<2x128xf32>
    %659 = arith.addf %13, %658 : vector<2x128xf32>
    %660 = vector.extract_strided_slice %659 {offsets = [0, 0], sizes = [2, 96], strides = [1, 1]} : vector<2x128xf32> to vector<2x96xf32>
    %cst_117 = arith.constant 0.000000e+00 : f32
    %661 = vector.broadcast %cst_117 : f32 to vector<2x96xf32>
    %662 = arith.subf %661, %660 : vector<2x96xf32>
    %663 = math.exp %662 : vector<2x96xf32>
    %cst_118 = arith.constant 1.000000e+00 : f32
    %664 = vector.broadcast %cst_118 : f32 to vector<2x96xf32>
    %665 = arith.addf %664, %663 : vector<2x96xf32>
    %666 = tpu.reciprocal %665 {approx = true} : vector<2x96xf32> -> vector<2x96xf32>
    %667 = vector.extract_strided_slice %666 {offsets = [0, 0], sizes = [2, 32], strides = [1, 1]} : vector<2x96xf32> to vector<2x32xf32>
    %668 = vector.extract_strided_slice %666 {offsets = [0, 32], sizes = [2, 32], strides = [1, 1]} : vector<2x96xf32> to vector<2x32xf32>
    %669 = vector.extract_strided_slice %666 {offsets = [0, 64], sizes = [2, 32], strides = [1, 1]} : vector<2x96xf32> to vector<2x32xf32>
    %670 = vector.extract_strided_slice %659 {offsets = [0, 96], sizes = [2, 32], strides = [1, 1]} : vector<2x128xf32> to vector<2x32xf32>
    %671 = math.tanh %670 : vector<2x32xf32>
    %672 = arith.mulf %668, %634 : vector<2x32xf32>
    %673 = arith.mulf %667, %671 : vector<2x32xf32>
    %674 = arith.addf %672, %673 : vector<2x32xf32>
    %675 = math.tanh %674 : vector<2x32xf32>
    %676 = arith.mulf %669, %675 : vector<2x32xf32>
    %677 = tpu.concatenate %676, %657 in 1 : vector<2x32xf32>, vector<2x32xf32> -> vector<2x64xf32>
    %cst_119 = arith.constant dense<0.000000e+00> : vector<2x128xf32>
    %678 = tpu.matmul %677, %4, %cst_119 {dimension_numbers = #tpu.dot_dimension_numbers<[1], [0], [0], [1], [0, 0, 1, 1], [], []>} : vector<2x64xf32>, vector<64x128xf32>, vector<2x128xf32> -> vector<2x128xf32>
    %679 = vector.broadcast %6 : vector<1x128xf32> to vector<2x128xf32>
    %680 = arith.addf %678, %679 : vector<2x128xf32>
    %681 = vector.extract_strided_slice %680 {offsets = [0, 0], sizes = [2, 96], strides = [1, 1]} : vector<2x128xf32> to vector<2x96xf32>
    %cst_120 = arith.constant 0.000000e+00 : f32
    %682 = vector.broadcast %cst_120 : f32 to vector<2x96xf32>
    %683 = arith.subf %682, %681 : vector<2x96xf32>
    %684 = math.exp %683 : vector<2x96xf32>
    %cst_121 = arith.constant 1.000000e+00 : f32
    %685 = vector.broadcast %cst_121 : f32 to vector<2x96xf32>
    %686 = arith.addf %685, %684 : vector<2x96xf32>
    %687 = tpu.reciprocal %686 {approx = true} : vector<2x96xf32> -> vector<2x96xf32>
    %688 = vector.extract_strided_slice %687 {offsets = [0, 0], sizes = [2, 32], strides = [1, 1]} : vector<2x96xf32> to vector<2x32xf32>
    %689 = vector.extract_strided_slice %687 {offsets = [0, 32], sizes = [2, 32], strides = [1, 1]} : vector<2x96xf32> to vector<2x32xf32>
    %690 = vector.extract_strided_slice %687 {offsets = [0, 64], sizes = [2, 32], strides = [1, 1]} : vector<2x96xf32> to vector<2x32xf32>
    %691 = vector.extract_strided_slice %680 {offsets = [0, 96], sizes = [2, 32], strides = [1, 1]} : vector<2x128xf32> to vector<2x32xf32>
    %692 = math.tanh %691 : vector<2x32xf32>
    %693 = arith.mulf %689, %655 : vector<2x32xf32>
    %694 = arith.mulf %688, %692 : vector<2x32xf32>
    %695 = arith.addf %693, %694 : vector<2x32xf32>
    %696 = math.tanh %695 : vector<2x32xf32>
    %697 = arith.mulf %690, %696 : vector<2x32xf32>
    %cst_122 = arith.constant dense<0.000000e+00> : vector<2x128xf32>
    %698 = tpu.matmul %676, %2, %cst_122 {dimension_numbers = #tpu.dot_dimension_numbers<[1], [0], [0], [1], [0, 0, 1, 1], [], []>} : vector<2x32xf32>, vector<32x128xf32>, vector<2x128xf32> -> vector<2x128xf32>
    %699 = arith.addf %13, %698 : vector<2x128xf32>
    %700 = vector.extract_strided_slice %699 {offsets = [0, 0], sizes = [2, 96], strides = [1, 1]} : vector<2x128xf32> to vector<2x96xf32>
    %cst_123 = arith.constant 0.000000e+00 : f32
    %701 = vector.broadcast %cst_123 : f32 to vector<2x96xf32>
    %702 = arith.subf %701, %700 : vector<2x96xf32>
    %703 = math.exp %702 : vector<2x96xf32>
    %cst_124 = arith.constant 1.000000e+00 : f32
    %704 = vector.broadcast %cst_124 : f32 to vector<2x96xf32>
    %705 = arith.addf %704, %703 : vector<2x96xf32>
    %706 = tpu.reciprocal %705 {approx = true} : vector<2x96xf32> -> vector<2x96xf32>
    %707 = vector.extract_strided_slice %706 {offsets = [0, 0], sizes = [2, 32], strides = [1, 1]} : vector<2x96xf32> to vector<2x32xf32>
    %708 = vector.extract_strided_slice %706 {offsets = [0, 32], sizes = [2, 32], strides = [1, 1]} : vector<2x96xf32> to vector<2x32xf32>
    %709 = vector.extract_strided_slice %706 {offsets = [0, 64], sizes = [2, 32], strides = [1, 1]} : vector<2x96xf32> to vector<2x32xf32>
    %710 = vector.extract_strided_slice %699 {offsets = [0, 96], sizes = [2, 32], strides = [1, 1]} : vector<2x128xf32> to vector<2x32xf32>
    %711 = math.tanh %710 : vector<2x32xf32>
    %712 = arith.mulf %708, %674 : vector<2x32xf32>
    %713 = arith.mulf %707, %711 : vector<2x32xf32>
    %714 = arith.addf %712, %713 : vector<2x32xf32>
    %715 = math.tanh %714 : vector<2x32xf32>
    %716 = arith.mulf %709, %715 : vector<2x32xf32>
    %717 = tpu.concatenate %716, %697 in 1 : vector<2x32xf32>, vector<2x32xf32> -> vector<2x64xf32>
    %cst_125 = arith.constant dense<0.000000e+00> : vector<2x128xf32>
    %718 = tpu.matmul %717, %4, %cst_125 {dimension_numbers = #tpu.dot_dimension_numbers<[1], [0], [0], [1], [0, 0, 1, 1], [], []>} : vector<2x64xf32>, vector<64x128xf32>, vector<2x128xf32> -> vector<2x128xf32>
    %719 = vector.broadcast %6 : vector<1x128xf32> to vector<2x128xf32>
    %720 = arith.addf %718, %719 : vector<2x128xf32>
    %721 = vector.extract_strided_slice %720 {offsets = [0, 0], sizes = [2, 96], strides = [1, 1]} : vector<2x128xf32> to vector<2x96xf32>
    %cst_126 = arith.constant 0.000000e+00 : f32
    %722 = vector.broadcast %cst_126 : f32 to vector<2x96xf32>
    %723 = arith.subf %722, %721 : vector<2x96xf32>
    %724 = math.exp %723 : vector<2x96xf32>
    %cst_127 = arith.constant 1.000000e+00 : f32
    %725 = vector.broadcast %cst_127 : f32 to vector<2x96xf32>
    %726 = arith.addf %725, %724 : vector<2x96xf32>
    %727 = tpu.reciprocal %726 {approx = true} : vector<2x96xf32> -> vector<2x96xf32>
    %728 = vector.extract_strided_slice %727 {offsets = [0, 0], sizes = [2, 32], strides = [1, 1]} : vector<2x96xf32> to vector<2x32xf32>
    %729 = vector.extract_strided_slice %727 {offsets = [0, 32], sizes = [2, 32], strides = [1, 1]} : vector<2x96xf32> to vector<2x32xf32>
    %730 = vector.extract_strided_slice %727 {offsets = [0, 64], sizes = [2, 32], strides = [1, 1]} : vector<2x96xf32> to vector<2x32xf32>
    %731 = vector.extract_strided_slice %720 {offsets = [0, 96], sizes = [2, 32], strides = [1, 1]} : vector<2x128xf32> to vector<2x32xf32>
    %732 = math.tanh %731 : vector<2x32xf32>
    %733 = arith.mulf %729, %695 : vector<2x32xf32>
    %734 = arith.mulf %728, %732 : vector<2x32xf32>
    %735 = arith.addf %733, %734 : vector<2x32xf32>
    %736 = math.tanh %735 : vector<2x32xf32>
    %737 = arith.mulf %730, %736 : vector<2x32xf32>
    %cst_128 = arith.constant dense<0.000000e+00> : vector<2x128xf32>
    %738 = tpu.matmul %716, %2, %cst_128 {dimension_numbers = #tpu.dot_dimension_numbers<[1], [0], [0], [1], [0, 0, 1, 1], [], []>} : vector<2x32xf32>, vector<32x128xf32>, vector<2x128xf32> -> vector<2x128xf32>
    %739 = arith.addf %13, %738 : vector<2x128xf32>
    %740 = vector.extract_strided_slice %739 {offsets = [0, 0], sizes = [2, 96], strides = [1, 1]} : vector<2x128xf32> to vector<2x96xf32>
    %cst_129 = arith.constant 0.000000e+00 : f32
    %741 = vector.broadcast %cst_129 : f32 to vector<2x96xf32>
    %742 = arith.subf %741, %740 : vector<2x96xf32>
    %743 = math.exp %742 : vector<2x96xf32>
    %cst_130 = arith.constant 1.000000e+00 : f32
    %744 = vector.broadcast %cst_130 : f32 to vector<2x96xf32>
    %745 = arith.addf %744, %743 : vector<2x96xf32>
    %746 = tpu.reciprocal %745 {approx = true} : vector<2x96xf32> -> vector<2x96xf32>
    %747 = vector.extract_strided_slice %746 {offsets = [0, 0], sizes = [2, 32], strides = [1, 1]} : vector<2x96xf32> to vector<2x32xf32>
    %748 = vector.extract_strided_slice %746 {offsets = [0, 32], sizes = [2, 32], strides = [1, 1]} : vector<2x96xf32> to vector<2x32xf32>
    %749 = vector.extract_strided_slice %746 {offsets = [0, 64], sizes = [2, 32], strides = [1, 1]} : vector<2x96xf32> to vector<2x32xf32>
    %750 = vector.extract_strided_slice %739 {offsets = [0, 96], sizes = [2, 32], strides = [1, 1]} : vector<2x128xf32> to vector<2x32xf32>
    %751 = math.tanh %750 : vector<2x32xf32>
    %752 = arith.mulf %748, %714 : vector<2x32xf32>
    %753 = arith.mulf %747, %751 : vector<2x32xf32>
    %754 = arith.addf %752, %753 : vector<2x32xf32>
    %755 = math.tanh %754 : vector<2x32xf32>
    %756 = arith.mulf %749, %755 : vector<2x32xf32>
    %757 = tpu.concatenate %756, %737 in 1 : vector<2x32xf32>, vector<2x32xf32> -> vector<2x64xf32>
    %cst_131 = arith.constant dense<0.000000e+00> : vector<2x128xf32>
    %758 = tpu.matmul %757, %4, %cst_131 {dimension_numbers = #tpu.dot_dimension_numbers<[1], [0], [0], [1], [0, 0, 1, 1], [], []>} : vector<2x64xf32>, vector<64x128xf32>, vector<2x128xf32> -> vector<2x128xf32>
    %759 = vector.broadcast %6 : vector<1x128xf32> to vector<2x128xf32>
    %760 = arith.addf %758, %759 : vector<2x128xf32>
    %761 = vector.extract_strided_slice %760 {offsets = [0, 0], sizes = [2, 96], strides = [1, 1]} : vector<2x128xf32> to vector<2x96xf32>
    %cst_132 = arith.constant 0.000000e+00 : f32
    %762 = vector.broadcast %cst_132 : f32 to vector<2x96xf32>
    %763 = arith.subf %762, %761 : vector<2x96xf32>
    %764 = math.exp %763 : vector<2x96xf32>
    %cst_133 = arith.constant 1.000000e+00 : f32
    %765 = vector.broadcast %cst_133 : f32 to vector<2x96xf32>
    %766 = arith.addf %765, %764 : vector<2x96xf32>
    %767 = tpu.reciprocal %766 {approx = true} : vector<2x96xf32> -> vector<2x96xf32>
    %768 = vector.extract_strided_slice %767 {offsets = [0, 0], sizes = [2, 32], strides = [1, 1]} : vector<2x96xf32> to vector<2x32xf32>
    %769 = vector.extract_strided_slice %767 {offsets = [0, 32], sizes = [2, 32], strides = [1, 1]} : vector<2x96xf32> to vector<2x32xf32>
    %770 = vector.extract_strided_slice %767 {offsets = [0, 64], sizes = [2, 32], strides = [1, 1]} : vector<2x96xf32> to vector<2x32xf32>
    %771 = vector.extract_strided_slice %760 {offsets = [0, 96], sizes = [2, 32], strides = [1, 1]} : vector<2x128xf32> to vector<2x32xf32>
    %772 = math.tanh %771 : vector<2x32xf32>
    %773 = arith.mulf %769, %735 : vector<2x32xf32>
    %774 = arith.mulf %768, %772 : vector<2x32xf32>
    %775 = arith.addf %773, %774 : vector<2x32xf32>
    %776 = math.tanh %775 : vector<2x32xf32>
    %777 = arith.mulf %770, %776 : vector<2x32xf32>
    %cst_134 = arith.constant dense<0.000000e+00> : vector<2x128xf32>
    %778 = tpu.matmul %756, %2, %cst_134 {dimension_numbers = #tpu.dot_dimension_numbers<[1], [0], [0], [1], [0, 0, 1, 1], [], []>} : vector<2x32xf32>, vector<32x128xf32>, vector<2x128xf32> -> vector<2x128xf32>
    %779 = arith.addf %13, %778 : vector<2x128xf32>
    %780 = vector.extract_strided_slice %779 {offsets = [0, 0], sizes = [2, 96], strides = [1, 1]} : vector<2x128xf32> to vector<2x96xf32>
    %cst_135 = arith.constant 0.000000e+00 : f32
    %781 = vector.broadcast %cst_135 : f32 to vector<2x96xf32>
    %782 = arith.subf %781, %780 : vector<2x96xf32>
    %783 = math.exp %782 : vector<2x96xf32>
    %cst_136 = arith.constant 1.000000e+00 : f32
    %784 = vector.broadcast %cst_136 : f32 to vector<2x96xf32>
    %785 = arith.addf %784, %783 : vector<2x96xf32>
    %786 = tpu.reciprocal %785 {approx = true} : vector<2x96xf32> -> vector<2x96xf32>
    %787 = vector.extract_strided_slice %786 {offsets = [0, 0], sizes = [2, 32], strides = [1, 1]} : vector<2x96xf32> to vector<2x32xf32>
    %788 = vector.extract_strided_slice %786 {offsets = [0, 32], sizes = [2, 32], strides = [1, 1]} : vector<2x96xf32> to vector<2x32xf32>
    %789 = vector.extract_strided_slice %786 {offsets = [0, 64], sizes = [2, 32], strides = [1, 1]} : vector<2x96xf32> to vector<2x32xf32>
    %790 = vector.extract_strided_slice %779 {offsets = [0, 96], sizes = [2, 32], strides = [1, 1]} : vector<2x128xf32> to vector<2x32xf32>
    %791 = math.tanh %790 : vector<2x32xf32>
    %792 = arith.mulf %788, %754 : vector<2x32xf32>
    %793 = arith.mulf %787, %791 : vector<2x32xf32>
    %794 = arith.addf %792, %793 : vector<2x32xf32>
    %795 = math.tanh %794 : vector<2x32xf32>
    %796 = arith.mulf %789, %795 : vector<2x32xf32>
    %797 = tpu.concatenate %796, %777 in 1 : vector<2x32xf32>, vector<2x32xf32> -> vector<2x64xf32>
    %cst_137 = arith.constant dense<0.000000e+00> : vector<2x128xf32>
    %798 = tpu.matmul %797, %4, %cst_137 {dimension_numbers = #tpu.dot_dimension_numbers<[1], [0], [0], [1], [0, 0, 1, 1], [], []>} : vector<2x64xf32>, vector<64x128xf32>, vector<2x128xf32> -> vector<2x128xf32>
    %799 = vector.broadcast %6 : vector<1x128xf32> to vector<2x128xf32>
    %800 = arith.addf %798, %799 : vector<2x128xf32>
    %801 = vector.extract_strided_slice %800 {offsets = [0, 0], sizes = [2, 96], strides = [1, 1]} : vector<2x128xf32> to vector<2x96xf32>
    %cst_138 = arith.constant 0.000000e+00 : f32
    %802 = vector.broadcast %cst_138 : f32 to vector<2x96xf32>
    %803 = arith.subf %802, %801 : vector<2x96xf32>
    %804 = math.exp %803 : vector<2x96xf32>
    %cst_139 = arith.constant 1.000000e+00 : f32
    %805 = vector.broadcast %cst_139 : f32 to vector<2x96xf32>
    %806 = arith.addf %805, %804 : vector<2x96xf32>
    %807 = tpu.reciprocal %806 {approx = true} : vector<2x96xf32> -> vector<2x96xf32>
    %808 = vector.extract_strided_slice %807 {offsets = [0, 0], sizes = [2, 32], strides = [1, 1]} : vector<2x96xf32> to vector<2x32xf32>
    %809 = vector.extract_strided_slice %807 {offsets = [0, 32], sizes = [2, 32], strides = [1, 1]} : vector<2x96xf32> to vector<2x32xf32>
    %810 = vector.extract_strided_slice %807 {offsets = [0, 64], sizes = [2, 32], strides = [1, 1]} : vector<2x96xf32> to vector<2x32xf32>
    %811 = vector.extract_strided_slice %800 {offsets = [0, 96], sizes = [2, 32], strides = [1, 1]} : vector<2x128xf32> to vector<2x32xf32>
    %812 = math.tanh %811 : vector<2x32xf32>
    %813 = arith.mulf %809, %775 : vector<2x32xf32>
    %814 = arith.mulf %808, %812 : vector<2x32xf32>
    %815 = arith.addf %813, %814 : vector<2x32xf32>
    %816 = math.tanh %815 : vector<2x32xf32>
    %817 = arith.mulf %810, %816 : vector<2x32xf32>
    %c0_140 = arith.constant 0 : index
    %c0_141 = arith.constant 0 : index
    %c0_142 = arith.constant 0 : index
    %818 = vector.load %arg7[%c0_140, %c0_141, %c0_142] : memref<1x1x32xf32, #tpu.memory_space<vmem>>, vector<1x1x32xf32>
    %819 = vector.shape_cast %818 : vector<1x1x32xf32> to vector<1x32xf32>
    %c0_143 = arith.constant 0 : index
    %c0_144 = arith.constant 0 : index
    %c0_145 = arith.constant 0 : index
    %820 = vector.load %arg8[%c0_143, %c0_144, %c0_145] : memref<1x1x32xf32, #tpu.memory_space<vmem>>, vector<1x1x32xf32>
    %821 = vector.shape_cast %820 : vector<1x1x32xf32> to vector<1x32xf32>
    %cst_146 = arith.constant dense<0.000000e+00> : vector<2xf32>
    %822 = vector.multi_reduction <add>, %817, %cst_146 [1] : vector<2x32xf32> to vector<2xf32>
    %823 = vector.shape_cast %822 : vector<2xf32> to vector<2x1xf32>
    %cst_147 = arith.constant 3.200000e+01 : f32
    %824 = vector.broadcast %cst_147 : f32 to vector<2x1xf32>
    %825 = arith.divf %823, %824 : vector<2x1xf32>
    %826 = vector.broadcast %825 : vector<2x1xf32> to vector<2x32xf32>
    %827 = arith.subf %817, %826 : vector<2x32xf32>
    %828 = vector.broadcast %825 : vector<2x1xf32> to vector<2x32xf32>
    %829 = arith.subf %817, %828 : vector<2x32xf32>
    %830 = arith.mulf %827, %829 : vector<2x32xf32>
    %cst_148 = arith.constant dense<0.000000e+00> : vector<2xf32>
    %831 = vector.multi_reduction <add>, %830, %cst_148 [1] : vector<2x32xf32> to vector<2xf32>
    %832 = vector.shape_cast %831 : vector<2xf32> to vector<2x1xf32>
    %cst_149 = arith.constant 3.200000e+01 : f32
    %833 = vector.broadcast %cst_149 : f32 to vector<2x1xf32>
    %834 = arith.divf %832, %833 : vector<2x1xf32>
    %835 = vector.broadcast %825 : vector<2x1xf32> to vector<2x32xf32>
    %836 = arith.subf %817, %835 : vector<2x32xf32>
    %cst_150 = arith.constant 9.99999974E-6 : f32
    %837 = vector.broadcast %cst_150 : f32 to vector<2x1xf32>
    %838 = arith.addf %834, %837 : vector<2x1xf32>
    %839 = math.rsqrt %838 : vector<2x1xf32>
    %840 = vector.broadcast %839 : vector<2x1xf32> to vector<2x32xf32>
    %841 = arith.mulf %836, %840 : vector<2x32xf32>
    %842 = vector.broadcast %819 : vector<1x32xf32> to vector<2x32xf32>
    %843 = arith.mulf %841, %842 : vector<2x32xf32>
    %844 = vector.broadcast %821 : vector<1x32xf32> to vector<2x32xf32>
    %845 = arith.addf %843, %844 : vector<2x32xf32>
    %c0_151 = arith.constant 0 : index
    %c0_152 = arith.constant 0 : index
    %c0_153 = arith.constant 0 : index
    %846 = vector.load %arg9[%c0_151, %c0_152, %c0_153] : memref<1x32x32xf32, #tpu.memory_space<vmem>>, vector<1x32x32xf32>
    %847 = vector.shape_cast %846 : vector<1x32x32xf32> to vector<32x32xf32>
    %cst_154 = arith.constant dense<0.000000e+00> : vector<2x32xf32>
    %848 = tpu.matmul %845, %847, %cst_154 {dimension_numbers = #tpu.dot_dimension_numbers<[1], [0], [0], [1], [0, 0, 1, 1], [], []>} : vector<2x32xf32>, vector<32x32xf32>, vector<2x32xf32> -> vector<2x32xf32>
    %c0_155 = arith.constant 0 : index
    %c0_156 = arith.constant 0 : index
    %c0_157 = arith.constant 0 : index
    %849 = vector.load %arg10[%c0_155, %c0_156, %c0_157] : memref<1x1x32xf32, #tpu.memory_space<vmem>>, vector<1x1x32xf32>
    %850 = vector.shape_cast %849 : vector<1x1x32xf32> to vector<1x32xf32>
    %851 = vector.broadcast %850 : vector<1x32xf32> to vector<2x32xf32>
    %852 = arith.addf %848, %851 : vector<2x32xf32>
    %cst_158 = arith.constant 0.000000e+00 : f32
    %853 = vector.broadcast %cst_158 : f32 to vector<2x32xf32>
    %854 = arith.maximumf %852, %853 : vector<2x32xf32>
    %c0_159 = arith.constant 0 : index
    %c0_160 = arith.constant 0 : index
    %c0_161 = arith.constant 0 : index
    %855 = vector.load %arg11[%c0_159, %c0_160, %c0_161] : memref<1x32x32xf32, #tpu.memory_space<vmem>>, vector<1x32x32xf32>
    %856 = vector.shape_cast %855 : vector<1x32x32xf32> to vector<32x32xf32>
    %cst_162 = arith.constant dense<0.000000e+00> : vector<2x32xf32>
    %857 = tpu.matmul %854, %856, %cst_162 {dimension_numbers = #tpu.dot_dimension_numbers<[1], [0], [0], [1], [0, 0, 1, 1], [], []>} : vector<2x32xf32>, vector<32x32xf32>, vector<2x32xf32> -> vector<2x32xf32>
    %c0_163 = arith.constant 0 : index
    %c0_164 = arith.constant 0 : index
    %c0_165 = arith.constant 0 : index
    %858 = vector.load %arg12[%c0_163, %c0_164, %c0_165] : memref<1x1x32xf32, #tpu.memory_space<vmem>>, vector<1x1x32xf32>
    %859 = vector.shape_cast %858 : vector<1x1x32xf32> to vector<1x32xf32>
    %860 = vector.broadcast %859 : vector<1x32xf32> to vector<2x32xf32>
    %861 = arith.addf %857, %860 : vector<2x32xf32>
    %862 = arith.addf %861, %845 : vector<2x32xf32>
    %cst_166 = arith.constant 0.000000e+00 : f32
    %863 = vector.broadcast %cst_166 : f32 to vector<2x32xf32>
    %864 = arith.maximumf %862, %863 : vector<2x32xf32>
    %c0_167 = arith.constant 0 : index
    %c0_168 = arith.constant 0 : index
    %c0_169 = arith.constant 0 : index
    %865 = vector.load %arg13[%c0_167, %c0_168, %c0_169] : memref<1x32x32xf32, #tpu.memory_space<vmem>>, vector<1x32x32xf32>
    %866 = vector.shape_cast %865 : vector<1x32x32xf32> to vector<32x32xf32>
    %cst_170 = arith.constant dense<0.000000e+00> : vector<2x32xf32>
    %867 = tpu.matmul %864, %866, %cst_170 {dimension_numbers = #tpu.dot_dimension_numbers<[1], [0], [0], [1], [0, 0, 1, 1], [], []>} : vector<2x32xf32>, vector<32x32xf32>, vector<2x32xf32> -> vector<2x32xf32>
    %c0_171 = arith.constant 0 : index
    %c0_172 = arith.constant 0 : index
    %c0_173 = arith.constant 0 : index
    %868 = vector.load %arg14[%c0_171, %c0_172, %c0_173] : memref<1x1x32xf32, #tpu.memory_space<vmem>>, vector<1x1x32xf32>
    %869 = vector.shape_cast %868 : vector<1x1x32xf32> to vector<1x32xf32>
    %870 = vector.broadcast %869 : vector<1x32xf32> to vector<2x32xf32>
    %871 = arith.addf %867, %870 : vector<2x32xf32>
    %c0_174 = arith.constant 0 : index
    %c0_175 = arith.constant 0 : index
    %c0_176 = arith.constant 0 : index
    %872 = vector.load %arg15[%c0_174, %c0_175, %c0_176] : memref<1x32x32xf32, #tpu.memory_space<vmem>>, vector<1x32x32xf32>
    %873 = vector.shape_cast %872 : vector<1x32x32xf32> to vector<32x32xf32>
    %cst_177 = arith.constant dense<0.000000e+00> : vector<2x32xf32>
    %874 = tpu.matmul %864, %873, %cst_177 {dimension_numbers = #tpu.dot_dimension_numbers<[1], [0], [0], [1], [0, 0, 1, 1], [], []>} : vector<2x32xf32>, vector<32x32xf32>, vector<2x32xf32> -> vector<2x32xf32>
    %c0_178 = arith.constant 0 : index
    %c0_179 = arith.constant 0 : index
    %c0_180 = arith.constant 0 : index
    %875 = vector.load %arg16[%c0_178, %c0_179, %c0_180] : memref<1x1x32xf32, #tpu.memory_space<vmem>>, vector<1x1x32xf32>
    %876 = vector.shape_cast %875 : vector<1x1x32xf32> to vector<1x32xf32>
    %877 = vector.broadcast %876 : vector<1x32xf32> to vector<2x32xf32>
    %878 = arith.addf %874, %877 : vector<2x32xf32>
    %c0_181 = arith.constant 0 : index
    %c0_182 = arith.constant 0 : index
    %c0_183 = arith.constant 0 : index
    %879 = vector.load %arg17[%c0_181, %c0_182, %c0_183] : memref<1x32x32xf32, #tpu.memory_space<vmem>>, vector<1x32x32xf32>
    %880 = vector.shape_cast %879 : vector<1x32x32xf32> to vector<32x32xf32>
    %cst_184 = arith.constant dense<0.000000e+00> : vector<2x32xf32>
    %881 = tpu.matmul %864, %880, %cst_184 {dimension_numbers = #tpu.dot_dimension_numbers<[1], [0], [0], [1], [0, 0, 1, 1], [], []>} : vector<2x32xf32>, vector<32x32xf32>, vector<2x32xf32> -> vector<2x32xf32>
    %c0_185 = arith.constant 0 : index
    %c0_186 = arith.constant 0 : index
    %c0_187 = arith.constant 0 : index
    %882 = vector.load %arg18[%c0_185, %c0_186, %c0_187] : memref<1x1x32xf32, #tpu.memory_space<vmem>>, vector<1x1x32xf32>
    %883 = vector.shape_cast %882 : vector<1x1x32xf32> to vector<1x32xf32>
    %884 = vector.broadcast %883 : vector<1x32xf32> to vector<2x32xf32>
    %885 = arith.addf %881, %884 : vector<2x32xf32>
    %cst_188 = arith.constant dense<0.000000e+00> : vector<2x2xf32>
    %886 = tpu.matmul %871, %878, %cst_188 {dimension_numbers = #tpu.dot_dimension_numbers<[1], [1], [0], [0], [0, 0, 1, 0], [], []>} : vector<2x32xf32>, vector<2x32xf32>, vector<2x2xf32> -> vector<2x2xf32>
    %cst_189 = arith.constant 0.176776692 : f32
    %887 = vector.broadcast %cst_189 : f32 to vector<2x2xf32>
    %888 = arith.mulf %886, %887 : vector<2x2xf32>
    %cst_190 = arith.constant dense<0xFF800000> : vector<2xf32>
    %889 = vector.multi_reduction <maximumf>, %888, %cst_190 [1] : vector<2x2xf32> to vector<2xf32>
    %890 = vector.shape_cast %889 : vector<2xf32> to vector<2x1xf32>
    %891 = vector.broadcast %890 : vector<2x1xf32> to vector<2x2xf32>
    %892 = arith.subf %888, %891 : vector<2x2xf32>
    %893 = math.exp %892 : vector<2x2xf32>
    %cst_191 = arith.constant dense<0.000000e+00> : vector<2xf32>
    %894 = vector.multi_reduction <add>, %893, %cst_191 [1] : vector<2x2xf32> to vector<2xf32>
    %895 = vector.shape_cast %894 : vector<2xf32> to vector<2x1xf32>
    %896 = tpu.reciprocal %895 {approx = true} : vector<2x1xf32> -> vector<2x1xf32>
    %897 = vector.broadcast %896 : vector<2x1xf32> to vector<2x2xf32>
    %898 = arith.mulf %893, %897 : vector<2x2xf32>
    %cst_192 = arith.constant dense<0.000000e+00> : vector<2x32xf32>
    %899 = tpu.matmul %898, %885, %cst_192 {dimension_numbers = #tpu.dot_dimension_numbers<[1], [0], [0], [1], [0, 0, 1, 1], [], []>} : vector<2x2xf32>, vector<2x32xf32>, vector<2x32xf32> -> vector<2x32xf32>
    %c0_193 = arith.constant 0 : index
    %c0_194 = arith.constant 0 : index
    %c0_195 = arith.constant 0 : index
    %900 = vector.load %arg19[%c0_193, %c0_194, %c0_195] : memref<1x32x512xf32, #tpu.memory_space<vmem>>, vector<1x32x512xf32>
    %901 = vector.shape_cast %900 : vector<1x32x512xf32> to vector<32x512xf32>
    %cst_196 = arith.constant dense<0.000000e+00> : vector<2x512xf32>
    %902 = tpu.matmul %899, %901, %cst_196 {dimension_numbers = #tpu.dot_dimension_numbers<[1], [0], [0], [1], [0, 0, 1, 1], [], []>} : vector<2x32xf32>, vector<32x512xf32>, vector<2x512xf32> -> vector<2x512xf32>
    %c0_197 = arith.constant 0 : index
    %c0_198 = arith.constant 0 : index
    %c0_199 = arith.constant 0 : index
    %903 = vector.load %arg20[%c0_197, %c0_198, %c0_199] : memref<1x1x512xf32, #tpu.memory_space<vmem>>, vector<1x1x512xf32>
    %904 = vector.shape_cast %903 : vector<1x1x512xf32> to vector<1x512xf32>
    %905 = vector.broadcast %904 : vector<1x512xf32> to vector<2x512xf32>
    %906 = arith.addf %902, %905 : vector<2x512xf32>
    %c0_200 = arith.constant 0 : index
    %c0_201 = arith.constant 0 : index
    %c0_202 = arith.constant 0 : index
    %907 = vector.load %arg21[%c0_200, %c0_201, %c0_202] : memref<1x1x512xf32, #tpu.memory_space<vmem>>, vector<1x1x512xf32>
    %908 = vector.shape_cast %907 : vector<1x1x512xf32> to vector<1x512xf32>
    %c0_203 = arith.constant 0 : index
    %c0_204 = arith.constant 0 : index
    %c0_205 = arith.constant 0 : index
    %909 = vector.load %arg22[%c0_203, %c0_204, %c0_205] : memref<1x1x512xf32, #tpu.memory_space<vmem>>, vector<1x1x512xf32>
    %910 = vector.shape_cast %909 : vector<1x1x512xf32> to vector<1x512xf32>
    %cst_206 = arith.constant dense<0.000000e+00> : vector<2xf32>
    %911 = vector.multi_reduction <add>, %906, %cst_206 [1] : vector<2x512xf32> to vector<2xf32>
    %912 = vector.shape_cast %911 : vector<2xf32> to vector<2x1xf32>
    %cst_207 = arith.constant 5.120000e+02 : f32
    %913 = vector.broadcast %cst_207 : f32 to vector<2x1xf32>
    %914 = arith.divf %912, %913 : vector<2x1xf32>
    %915 = vector.broadcast %914 : vector<2x1xf32> to vector<2x512xf32>
    %916 = arith.subf %906, %915 : vector<2x512xf32>
    %917 = vector.broadcast %914 : vector<2x1xf32> to vector<2x512xf32>
    %918 = arith.subf %906, %917 : vector<2x512xf32>
    %919 = arith.mulf %916, %918 : vector<2x512xf32>
    %cst_208 = arith.constant dense<0.000000e+00> : vector<2xf32>
    %920 = vector.multi_reduction <add>, %919, %cst_208 [1] : vector<2x512xf32> to vector<2xf32>
    %921 = vector.shape_cast %920 : vector<2xf32> to vector<2x1xf32>
    %cst_209 = arith.constant 5.120000e+02 : f32
    %922 = vector.broadcast %cst_209 : f32 to vector<2x1xf32>
    %923 = arith.divf %921, %922 : vector<2x1xf32>
    %924 = vector.broadcast %914 : vector<2x1xf32> to vector<2x512xf32>
    %925 = arith.subf %906, %924 : vector<2x512xf32>
    %cst_210 = arith.constant 9.99999974E-6 : f32
    %926 = vector.broadcast %cst_210 : f32 to vector<2x1xf32>
    %927 = arith.addf %923, %926 : vector<2x1xf32>
    %928 = math.rsqrt %927 : vector<2x1xf32>
    %929 = vector.broadcast %928 : vector<2x1xf32> to vector<2x512xf32>
    %930 = arith.mulf %925, %929 : vector<2x512xf32>
    %931 = vector.broadcast %908 : vector<1x512xf32> to vector<2x512xf32>
    %932 = arith.mulf %930, %931 : vector<2x512xf32>
    %933 = vector.broadcast %910 : vector<1x512xf32> to vector<2x512xf32>
    %934 = arith.addf %932, %933 : vector<2x512xf32>
    %cst_211 = arith.constant 0.000000e+00 : f32
    %935 = vector.broadcast %cst_211 : f32 to vector<2x512xf32>
    %936 = arith.maximumf %934, %935 : vector<2x512xf32>
    %c0_212 = arith.constant 0 : index
    %c0_213 = arith.constant 0 : index
    %c0_214 = arith.constant 0 : index
    %937 = vector.load %arg23[%c0_212, %c0_213, %c0_214] : memref<1x512x4xf32, #tpu.memory_space<vmem>>, vector<1x512x4xf32>
    %938 = vector.shape_cast %937 : vector<1x512x4xf32> to vector<512x4xf32>
    %cst_215 = arith.constant dense<0.000000e+00> : vector<2x4xf32>
    %939 = tpu.matmul %936, %938, %cst_215 {dimension_numbers = #tpu.dot_dimension_numbers<[1], [0], [0], [1], [0, 0, 1, 1], [], []>} : vector<2x512xf32>, vector<512x4xf32>, vector<2x4xf32> -> vector<2x4xf32>
    %c0_216 = arith.constant 0 : index
    %c0_217 = arith.constant 0 : index
    %c0_218 = arith.constant 0 : index
    %940 = vector.load %arg24[%c0_216, %c0_217, %c0_218] : memref<1x1x4xf32, #tpu.memory_space<vmem>>, vector<1x1x4xf32>
    %941 = vector.shape_cast %940 : vector<1x1x4xf32> to vector<1x4xf32>
    %942 = vector.broadcast %941 : vector<1x4xf32> to vector<2x4xf32>
    %943 = arith.addf %939, %942 : vector<2x4xf32>
    %c0_219 = arith.constant 0 : index
    %c0_220 = arith.constant 0 : index
    %c0_221 = arith.constant 0 : index
    %944 = vector.load %arg25[%c0_219, %c0_220, %c0_221] : memref<1x32x512xf32, #tpu.memory_space<vmem>>, vector<1x32x512xf32>
    %945 = vector.shape_cast %944 : vector<1x32x512xf32> to vector<32x512xf32>
    %cst_222 = arith.constant dense<0.000000e+00> : vector<2x512xf32>
    %946 = tpu.matmul %899, %945, %cst_222 {dimension_numbers = #tpu.dot_dimension_numbers<[1], [0], [0], [1], [0, 0, 1, 1], [], []>} : vector<2x32xf32>, vector<32x512xf32>, vector<2x512xf32> -> vector<2x512xf32>
    %c0_223 = arith.constant 0 : index
    %c0_224 = arith.constant 0 : index
    %c0_225 = arith.constant 0 : index
    %947 = vector.load %arg26[%c0_223, %c0_224, %c0_225] : memref<1x1x512xf32, #tpu.memory_space<vmem>>, vector<1x1x512xf32>
    %948 = vector.shape_cast %947 : vector<1x1x512xf32> to vector<1x512xf32>
    %949 = vector.broadcast %948 : vector<1x512xf32> to vector<2x512xf32>
    %950 = arith.addf %946, %949 : vector<2x512xf32>
    %c0_226 = arith.constant 0 : index
    %c0_227 = arith.constant 0 : index
    %c0_228 = arith.constant 0 : index
    %951 = vector.load %arg27[%c0_226, %c0_227, %c0_228] : memref<1x1x512xf32, #tpu.memory_space<vmem>>, vector<1x1x512xf32>
    %952 = vector.shape_cast %951 : vector<1x1x512xf32> to vector<1x512xf32>
    %c0_229 = arith.constant 0 : index
    %c0_230 = arith.constant 0 : index
    %c0_231 = arith.constant 0 : index
    %953 = vector.load %arg28[%c0_229, %c0_230, %c0_231] : memref<1x1x512xf32, #tpu.memory_space<vmem>>, vector<1x1x512xf32>
    %954 = vector.shape_cast %953 : vector<1x1x512xf32> to vector<1x512xf32>
    %cst_232 = arith.constant dense<0.000000e+00> : vector<2xf32>
    %955 = vector.multi_reduction <add>, %950, %cst_232 [1] : vector<2x512xf32> to vector<2xf32>
    %956 = vector.shape_cast %955 : vector<2xf32> to vector<2x1xf32>
    %cst_233 = arith.constant 5.120000e+02 : f32
    %957 = vector.broadcast %cst_233 : f32 to vector<2x1xf32>
    %958 = arith.divf %956, %957 : vector<2x1xf32>
    %959 = vector.broadcast %958 : vector<2x1xf32> to vector<2x512xf32>
    %960 = arith.subf %950, %959 : vector<2x512xf32>
    %961 = vector.broadcast %958 : vector<2x1xf32> to vector<2x512xf32>
    %962 = arith.subf %950, %961 : vector<2x512xf32>
    %963 = arith.mulf %960, %962 : vector<2x512xf32>
    %cst_234 = arith.constant dense<0.000000e+00> : vector<2xf32>
    %964 = vector.multi_reduction <add>, %963, %cst_234 [1] : vector<2x512xf32> to vector<2xf32>
    %965 = vector.shape_cast %964 : vector<2xf32> to vector<2x1xf32>
    %cst_235 = arith.constant 5.120000e+02 : f32
    %966 = vector.broadcast %cst_235 : f32 to vector<2x1xf32>
    %967 = arith.divf %965, %966 : vector<2x1xf32>
    %968 = vector.broadcast %958 : vector<2x1xf32> to vector<2x512xf32>
    %969 = arith.subf %950, %968 : vector<2x512xf32>
    %cst_236 = arith.constant 9.99999974E-6 : f32
    %970 = vector.broadcast %cst_236 : f32 to vector<2x1xf32>
    %971 = arith.addf %967, %970 : vector<2x1xf32>
    %972 = math.rsqrt %971 : vector<2x1xf32>
    %973 = vector.broadcast %972 : vector<2x1xf32> to vector<2x512xf32>
    %974 = arith.mulf %969, %973 : vector<2x512xf32>
    %975 = vector.broadcast %952 : vector<1x512xf32> to vector<2x512xf32>
    %976 = arith.mulf %974, %975 : vector<2x512xf32>
    %977 = vector.broadcast %954 : vector<1x512xf32> to vector<2x512xf32>
    %978 = arith.addf %976, %977 : vector<2x512xf32>
    %cst_237 = arith.constant 0.000000e+00 : f32
    %979 = vector.broadcast %cst_237 : f32 to vector<2x512xf32>
    %980 = arith.maximumf %978, %979 : vector<2x512xf32>
    %c0_238 = arith.constant 0 : index
    %c0_239 = arith.constant 0 : index
    %c0_240 = arith.constant 0 : index
    %981 = vector.load %arg29[%c0_238, %c0_239, %c0_240] : memref<1x512x1xf32, #tpu.memory_space<vmem>>, vector<1x512x1xf32>
    %982 = vector.shape_cast %981 : vector<1x512x1xf32> to vector<512x1xf32>
    %cst_241 = arith.constant dense<0.000000e+00> : vector<2x1xf32>
    %983 = tpu.matmul %980, %982, %cst_241 {dimension_numbers = #tpu.dot_dimension_numbers<[1], [0], [0], [1], [0, 0, 1, 1], [], []>} : vector<2x512xf32>, vector<512x1xf32>, vector<2x1xf32> -> vector<2x1xf32>
    %c0_242 = arith.constant 0 : index
    %c0_243 = arith.constant 0 : index
    %c0_244 = arith.constant 0 : index
    %984 = vector.load %arg30[%c0_242, %c0_243, %c0_244] : memref<1x1x1xf32, #tpu.memory_space<vmem>>, vector<1x1x1xf32>
    %985 = vector.shape_cast %984 : vector<1x1x1xf32> to vector<1x1xf32>
    %986 = vector.broadcast %985 : vector<1x1xf32> to vector<2x1xf32>
    %987 = arith.addf %983, %986 : vector<2x1xf32>
    %988 = vector.broadcast %987 : vector<2x1xf32> to vector<2x4xf32>
    %989 = arith.addf %988, %943 : vector<2x4xf32>
    %cst_245 = arith.constant dense<0.000000e+00> : vector<2xf32>
    %990 = vector.multi_reduction <add>, %943, %cst_245 [1] : vector<2x4xf32> to vector<2xf32>
    %991 = vector.shape_cast %990 : vector<2xf32> to vector<2x1xf32>
    %cst_246 = arith.constant 4.000000e+00 : f32
    %992 = vector.broadcast %cst_246 : f32 to vector<2x1xf32>
    %993 = arith.divf %991, %992 : vector<2x1xf32>
    %994 = vector.broadcast %993 : vector<2x1xf32> to vector<2x4xf32>
    %995 = arith.subf %989, %994 : vector<2x4xf32>
    %c0_247 = arith.constant 0 : index
    %c0_248 = arith.constant 0 : index
    %c0_249 = arith.constant 0 : index
    %996 = vector.load %arg31[%c0_247, %c0_248, %c0_249] : memref<1x2x4xf32, #tpu.memory_space<vmem>>, vector<1x2x4xf32>
    %997 = vector.shape_cast %996 : vector<1x2x4xf32> to vector<2x4xf32>
    %998 = vector.shape_cast %995 : vector<2x4xf32> to vector<1x2x4xf32>
    tpu.vector_store %arg31[%c0_247, %c0_248, %c0_249], %998 {strides = array<i32>} : memref<1x2x4xf32, #tpu.memory_space<vmem>>, vector<1x2x4xf32>,
    return
  }
  func.func @transform_0(%arg0: i32) -> (i32, i32) {
    %c0_i32 = arith.constant 0 : i32
    %c0_i32_0 = arith.constant 0 : i32
    %c0_i32_1 = arith.constant 0 : i32
    return %c0_i32, %c0_i32_0 : i32, i32
  }
  func.func @transform_1(%arg0: i32) -> (i32, i32, i32) {
    %c0_i32 = arith.constant 0 : i32
    %c0_i32_0 = arith.constant 0 : i32
    %c0_i32_1 = arith.constant 0 : i32
    return %arg0, %c0_i32, %c0_i32_0 : i32, i32, i32
  }
  func.func @transform_2(%arg0: i32) -> (i32, i32, i32) {
    %c0_i32 = arith.constant 0 : i32
    %c0_i32_0 = arith.constant 0 : i32
    %c0_i32_1 = arith.constant 0 : i32
    return %arg0, %c0_i32, %c0_i32_0 : i32, i32, i32
  }
  func.func @transform_3(%arg0: i32) -> (i32, i32, i32) {
    %c0_i32 = arith.constant 0 : i32
    %c0_i32_0 = arith.constant 0 : i32
    %c0_i32_1 = arith.constant 0 : i32
    return %arg0, %c0_i32, %c0_i32_0 : i32, i32, i32
  }
  func.func @transform_4(%arg0: i32) -> (i32, i32, i32) {
    %c0_i32 = arith.constant 0 : i32
    %c0_i32_0 = arith.constant 0 : i32
    %c0_i32_1 = arith.constant 0 : i32
    return %arg0, %c0_i32, %c0_i32_0 : i32, i32, i32
  }
  func.func @transform_5(%arg0: i32) -> (i32, i32, i32) {
    %c0_i32 = arith.constant 0 : i32
    %c0_i32_0 = arith.constant 0 : i32
    %c0_i32_1 = arith.constant 0 : i32
    return %arg0, %c0_i32, %c0_i32_0 : i32, i32, i32
  }
  func.func @transform_6(%arg0: i32) -> (i32, i32, i32) {
    %c0_i32 = arith.constant 0 : i32
    %c0_i32_0 = arith.constant 0 : i32
    %c0_i32_1 = arith.constant 0 : i32
    return %arg0, %c0_i32, %c0_i32_0 : i32, i32, i32
  }
  func.func @transform_7(%arg0: i32) -> (i32, i32, i32) {
    %c0_i32 = arith.constant 0 : i32
    %c0_i32_0 = arith.constant 0 : i32
    %c0_i32_1 = arith.constant 0 : i32
    return %arg0, %c0_i32, %c0_i32_0 : i32, i32, i32
  }
  func.func @transform_8(%arg0: i32) -> (i32, i32, i32) {
    %c0_i32 = arith.constant 0 : i32
    %c0_i32_0 = arith.constant 0 : i32
    %c0_i32_1 = arith.constant 0 : i32
    return %arg0, %c0_i32, %c0_i32_0 : i32, i32, i32
  }
  func.func @transform_9(%arg0: i32) -> (i32, i32, i32) {
    %c0_i32 = arith.constant 0 : i32
    %c0_i32_0 = arith.constant 0 : i32
    %c0_i32_1 = arith.constant 0 : i32
    return %arg0, %c0_i32, %c0_i32_0 : i32, i32, i32
  }
  func.func @transform_10(%arg0: i32) -> (i32, i32, i32) {
    %c0_i32 = arith.constant 0 : i32
    %c0_i32_0 = arith.constant 0 : i32
    %c0_i32_1 = arith.constant 0 : i32
    return %arg0, %c0_i32, %c0_i32_0 : i32, i32, i32
  }
  func.func @transform_11(%arg0: i32) -> (i32, i32, i32) {
    %c0_i32 = arith.constant 0 : i32
    %c0_i32_0 = arith.constant 0 : i32
    %c0_i32_1 = arith.constant 0 : i32
    return %arg0, %c0_i32, %c0_i32_0 : i32, i32, i32
  }
  func.func @transform_12(%arg0: i32) -> (i32, i32, i32) {
    %c0_i32 = arith.constant 0 : i32
    %c0_i32_0 = arith.constant 0 : i32
    %c0_i32_1 = arith.constant 0 : i32
    return %arg0, %c0_i32, %c0_i32_0 : i32, i32, i32
  }
  func.func @transform_13(%arg0: i32) -> (i32, i32, i32) {
    %c0_i32 = arith.constant 0 : i32
    %c0_i32_0 = arith.constant 0 : i32
    %c0_i32_1 = arith.constant 0 : i32
    return %arg0, %c0_i32, %c0_i32_0 : i32, i32, i32
  }
  func.func @transform_14(%arg0: i32) -> (i32, i32, i32) {
    %c0_i32 = arith.constant 0 : i32
    %c0_i32_0 = arith.constant 0 : i32
    %c0_i32_1 = arith.constant 0 : i32
    return %arg0, %c0_i32, %c0_i32_0 : i32, i32, i32
  }
  func.func @transform_15(%arg0: i32) -> (i32, i32, i32) {
    %c0_i32 = arith.constant 0 : i32
    %c0_i32_0 = arith.constant 0 : i32
    %c0_i32_1 = arith.constant 0 : i32
    return %arg0, %c0_i32, %c0_i32_0 : i32, i32, i32
  }
  func.func @transform_16(%arg0: i32) -> (i32, i32, i32) {
    %c0_i32 = arith.constant 0 : i32
    %c0_i32_0 = arith.constant 0 : i32
    %c0_i32_1 = arith.constant 0 : i32
    return %arg0, %c0_i32, %c0_i32_0 : i32, i32, i32
  }
  func.func @transform_17(%arg0: i32) -> (i32, i32, i32) {
    %c0_i32 = arith.constant 0 : i32
    %c0_i32_0 = arith.constant 0 : i32
    %c0_i32_1 = arith.constant 0 : i32
    return %arg0, %c0_i32, %c0_i32_0 : i32, i32, i32
  }
  func.func @transform_18(%arg0: i32) -> (i32, i32, i32) {
    %c0_i32 = arith.constant 0 : i32
    %c0_i32_0 = arith.constant 0 : i32
    %c0_i32_1 = arith.constant 0 : i32
    return %arg0, %c0_i32, %c0_i32_0 : i32, i32, i32
  }
  func.func @transform_19(%arg0: i32) -> (i32, i32, i32) {
    %c0_i32 = arith.constant 0 : i32
    %c0_i32_0 = arith.constant 0 : i32
    %c0_i32_1 = arith.constant 0 : i32
    return %arg0, %c0_i32, %c0_i32_0 : i32, i32, i32
  }
  func.func @transform_20(%arg0: i32) -> (i32, i32, i32) {
    %c0_i32 = arith.constant 0 : i32
    %c0_i32_0 = arith.constant 0 : i32
    %c0_i32_1 = arith.constant 0 : i32
    return %arg0, %c0_i32, %c0_i32_0 : i32, i32, i32
  }
  func.func @transform_21(%arg0: i32) -> (i32, i32, i32) {
    %c0_i32 = arith.constant 0 : i32
    %c0_i32_0 = arith.constant 0 : i32
    %c0_i32_1 = arith.constant 0 : i32
    return %arg0, %c0_i32, %c0_i32_0 : i32, i32, i32
  }
  func.func @transform_22(%arg0: i32) -> (i32, i32, i32) {
    %c0_i32 = arith.constant 0 : i32
    %c0_i32_0 = arith.constant 0 : i32
    %c0_i32_1 = arith.constant 0 : i32
    return %arg0, %c0_i32, %c0_i32_0 : i32, i32, i32
  }
  func.func @transform_23(%arg0: i32) -> (i32, i32, i32) {
    %c0_i32 = arith.constant 0 : i32
    %c0_i32_0 = arith.constant 0 : i32
    %c0_i32_1 = arith.constant 0 : i32
    return %arg0, %c0_i32, %c0_i32_0 : i32, i32, i32
  }
  func.func @transform_24(%arg0: i32) -> (i32, i32, i32) {
    %c0_i32 = arith.constant 0 : i32
    %c0_i32_0 = arith.constant 0 : i32
    %c0_i32_1 = arith.constant 0 : i32
    return %arg0, %c0_i32, %c0_i32_0 : i32, i32, i32
  }
  func.func @transform_25(%arg0: i32) -> (i32, i32, i32) {
    %c0_i32 = arith.constant 0 : i32
    %c0_i32_0 = arith.constant 0 : i32
    %c0_i32_1 = arith.constant 0 : i32
    return %arg0, %c0_i32, %c0_i32_0 : i32, i32, i32
  }
  func.func @transform_26(%arg0: i32) -> (i32, i32, i32) {
    %c0_i32 = arith.constant 0 : i32
    %c0_i32_0 = arith.constant 0 : i32
    %c0_i32_1 = arith.constant 0 : i32
    return %arg0, %c0_i32, %c0_i32_0 : i32, i32, i32
  }
  func.func @transform_27(%arg0: i32) -> (i32, i32, i32) {
    %c0_i32 = arith.constant 0 : i32
    %c0_i32_0 = arith.constant 0 : i32
    %c0_i32_1 = arith.constant 0 : i32
    return %arg0, %c0_i32, %c0_i32_0 : i32, i32, i32
  }
  func.func @transform_28(%arg0: i32) -> (i32, i32, i32) {
    %c0_i32 = arith.constant 0 : i32
    %c0_i32_0 = arith.constant 0 : i32
    %c0_i32_1 = arith.constant 0 : i32
    return %arg0, %c0_i32, %c0_i32_0 : i32, i32, i32
  }
  func.func @transform_29(%arg0: i32) -> (i32, i32, i32) {
    %c0_i32 = arith.constant 0 : i32
    %c0_i32_0 = arith.constant 0 : i32
    %c0_i32_1 = arith.constant 0 : i32
    return %arg0, %c0_i32, %c0_i32_0 : i32, i32, i32
  }
  func.func @transform_30(%arg0: i32) -> (i32, i32, i32) {
    %c0_i32 = arith.constant 0 : i32
    %c0_i32_0 = arith.constant 0 : i32
    %c0_i32_1 = arith.constant 0 : i32
    return %arg0, %c0_i32, %c0_i32_0 : i32, i32, i32
  }
}

</mosaic_0001>

<bundles_post_ra>
// kernel: twinned_q_forward.1
= control target key start
LH: loop header
LB: loop body
LE: loop exit
PB: predicated region body
PF: predicated region fallthrough
CT: control target
= control target key end

     0   :  { %s9161_s6 = smov 1   ;;  %s9162_s10 = smov 2   ;;  %s10863_s0 = inlined_call_operand.smem [shape: u32[31], index: -1, kind: input, shape index: {}] }
   0x1   :  { %s9205_s5 = sld [smem:[%s10863_s0]]   ;;  %s9163_s14 = smov 3  }
   0x2   :  { %s9210_s9 = sld [smem:[%s10863_s0 + %s9161_s6]]   ;;  %s9164_s18 = smov 4  }
   0x3   :  { %s9215_s13 = sld [smem:[%s10863_s0 + %s9162_s10]]   ;;  %s9165_s22 = smov 5  }
   0x4   :  { %s9220_s17 = sld [smem:[%s10863_s0 + %s9163_s14]]   ;;  %s9166_s26 = smov 6  }
   0x5   :  { %s9225_s21 = sld [smem:[%s10863_s0 + %s9164_s18]]   ;;  %s9167_s30 = smov 7  }
   0x6   :  { %s9230_s25 = sld [smem:[%s10863_s0 + %s9165_s22]]   ;;  %s9168_s4 = smov 8  }
   0x7   :  { %s9235_s29 = sld [smem:[%s10863_s0 + %s9166_s26]]   ;;  %s9169_s10 = smov 9  }
   0x8   :  { %s9240_s3 = sld [smem:[%s10863_s0 + %s9167_s30]]   ;;  %s9170_s15 = smov 10  }
   0x9   :  { %s9245_s8 = sld [smem:[%s10863_s0 + %s9168_s4]]   ;;  %s9171_s20 = smov 11  }
   0xa   :  { %s9250_s14 = sld [smem:[%s10863_s0 + %s9169_s10]]   ;;  %s9172_s26 = smov 12  }
   0xb   :  { %s9255_s19 = sld [smem:[%s10863_s0 + %s9170_s15]]   ;;  %s9173_s1 = smov 13  }
   0xc   :  { %s9260_s24 = sld [smem:[%s10863_s0 + %s9171_s20]]   ;;  %s9174_s7 = smov 14  }
   0xd   :  { %s9265_s30 = sld [smem:[%s10863_s0 + %s9172_s26]]   ;;  %s9175_s15 = smov 15  }
   0xe   :  { %s9270_s6 = sld [smem:[%s10863_s0 + %s9173_s1]]   ;;  %s9176_s22 = smov 16  }
   0xf   :  { %s9275_s12 = sld [smem:[%s10863_s0 + %s9174_s7]]   ;;  %s9177_s28 = smov 17  }
  0x10   :  { %s9280_s20 = sld [smem:[%s10863_s0 + %s9175_s15]]   ;;  %s9178_s7 = smov 18  }
  0x11   :  { %s9285_s27 = sld [smem:[%s10863_s0 + %s9176_s22]]   ;;  %s9179_s15 = smov 19  }
  0x12   :  { %s9290_s4 = sld [smem:[%s10863_s0 + %s9177_s28]]   ;;  %s9180_s22 = smov 20  }
  0x13   :  { %s9181_s28 = smov 21  }
  0x14   :  { %10864 = sst [smem:[#allocation2_spill]] %s9270_s6 }
  0x15   :  { %s9295_s6 = sld [smem:[%s10863_s0 + %s9178_s7]]   ;;  %s9182_s7 = smov 22  }
  0x16   :  { %10865 = sst [smem:[#allocation3_spill]] %s9280_s20 }
  0x17   :  { %10866 = sst [smem:[#allocation4_spill]] %s9285_s27 }
  0x18   :  { %10867 = sst [smem:[#allocation5_spill]] %s9290_s4 }
  0x19   :  { %s9300_s20 = sld [smem:[%s10863_s0 + %s9179_s15]]   ;;  %s9183_s15 = smov 23  }
  0x1a   :  { %s9305_s27 = sld [smem:[%s10863_s0 + %s9180_s22]]   ;;  %s9184_s22 = smov 24  }
  0x1b   :  { %10868 = sst [smem:[#allocation6_spill]] %s9295_s6 }
  0x1c   :  { %s9310_s4 = sld [smem:[%s10863_s0 + %s9181_s28]]   ;;  %s9185_s28 = smov 25  }
  0x1d   :  { %s9315_s6 = sld [smem:[%s10863_s0 + %s9182_s7]]   ;;  %s9186_s7 = smov 26  }
  0x1f   :  { %10869 = sst [smem:[#allocation7_spill]] %s9300_s20 }
  0x20   :  { %10870 = sst [smem:[#allocation8_spill]] %s9305_s27 }
  0x21   :  { %s9320_s20 = sld [smem:[%s10863_s0 + %s9183_s15]]   ;;  %s9187_s15 = smov 27  }
  0x22   :  { %10871 = sst [smem:[#allocation9_spill]] %s9310_s4 }
  0x23   :  { %10872 = sst [smem:[#allocation10_spill]] %s9315_s6 }
  0x24   :  { %s9325_s27 = sld [smem:[%s10863_s0 + %s9184_s22]]   ;;  %s9188_s22 = smov 28  }
  0x25   :  { %s9330_s4 = sld [smem:[%s10863_s0 + %s9185_s28]]   ;;  %s9189_s28 = smov 29  }
  0x26   :  { %s9335_s6 = sld [smem:[%s10863_s0 + %s9186_s7]]   ;;  %s9190_s7 = smov 30  }
  0x27   :  { %10873 = sst [smem:[#allocation11_spill]] %s9320_s20 }
  0x28   :  { %s9340_s20 = sld [smem:[%s10863_s0 + %s9187_s15]]   ;;  %s9357_s15 = smov 0  }
  0x2a   :  { %10874 = sst [smem:[#allocation12_spill]] %s9325_s27 }
  0x2b   :  { %10875 = sst [smem:[#allocation13_spill]] %s9330_s4 }
  0x2c   :  { %10876 = sst [smem:[#allocation14_spill]] %s9335_s6 }
  0x2d   :  { %s9345_s27 = sld [smem:[%s10863_s0 + %s9188_s22]]  }
  0x2e   :  { %s9350_s4 = sld [smem:[%s10863_s0 + %s9189_s28]]  }
  0x2f   :  { %s9355_s6 = sld [smem:[%s10863_s0 + %s9190_s7]]  }
  0x30 LB: > { %s7519_s16 = sadd.s32 4294967295, %s9159_s15   ;;  %p7523_p0 = scmp.ge.s32.totalorder %s9159_s15, 1  ;;  %s9159_s15 = sphi %s9357_s15, %s71_s15  }
  0x31   : > { %p1094_p1 = scmp.lt.s32.totalorder %s9159_s15, 3 }
  0x33   : > { %p1095_p2 = pnand %p7523_p0, %p1094_p1 }
  0x34   : > { %p1282_p3 = scmp.lt.s32.totalorder (!%p1095_p2), %s7519_s16, 1  ;;  %s9193_s28 = smov (!%p1095_p2), 32  }
  0x35   : > { %1098 = sbr.rel (%p1095_p2) target bundleno = 17769 (0x4569), region = 140  ;;  %s9194_s7 = smov (!%p1095_p2), 64  }
  0x36   : > { %s9195_s11 = smov (!%p1095_p2), 96  }
  0x3a   : > { %v9191_v0 = vmov 0.0   ;;  %s10891_s16 = smov (!%p1282_p3, %s7519_s16), 1  ;;  %vm9192_vm0 = vmmov 0   ;;  %v1402_v3 = vld [vmem:[%s9205_s5] sm:$0x3]  ;;  %vm1424_vm1 = vcmask 64512  }
  0x3b   : > { %8087 = vmatprep.subr.mxu1 %v9191_v0  ;;  %8082 = vmatprep.subr.mxu0 %v9191_v0  ;;  %s9374_s0 = sshll.u32 %s10891_s16, 5  ;;  %s7524_s22 = sshll.u32 %s10891_s16, 3  ;;  %vm1498_vm2 = vcmask 261120   ;;  %vm1607_vm3 = vcmask 523264   ;;  %vm5529_vm4 = vcmask 254976   ;;  %vm6079_vm5 = vcmask 1041408  }
  0x3c   : > { %8084 = vmatprep.mubr.msk.f32.mxu0 %vm9192_vm0, %v9191_v0  ;;  %8095 = vmatprep.mubr.msk.f32.mxu1 %vm9192_vm0, %v9191_v0  ;;  %s9378_s18 = scalar_lea.vmem %s9215_s13, %s9374_s0  ;;  %s1285_s23 = scalar_lea.vmem %s9210_s9, %s7524_s22  ;;  %vm6063_vm6 = vcmask 9216   ;;  %vm6075_vm7 = vcmask 15360   ;;  %vm7125_vm8 = vcmask 25600  }
  0x3d   : > { %v9381_v1 = vld [vmem:[%s9378_s18 + $0x18] sm:$0xff]  ;;  %v9385_v2 = vld [vmem:[%s9378_s18 + $0x10] sm:$0xff]  ;;  %v1416_v4 = vld [vmem:[%s1285_s23] sm:$0xff]  ;;  %s1293_s26 = scalar_lea.vmem %s9220_s17, %s10891_s16  ;;  %s7621_s1 = sshll.u32 %s10891_s16, 6 }
  0x3e   : > { %8088 = vmatpush3.msra.mxu1 %v9381_v1  ;;  %v9392_v5 = vld [vmem:[%s9378_s18 + $0x8] sm:$0xff]  ;;  %8083 = vmatpush3.msra.mxu0 %v1416_v4  ;;  %v9397_v6 = vld [vmem:[%s9378_s18] sm:$0xff]  ;;  %s9429_s2 = scalar_lea.vmem %s9225_s21, %s7621_s1  ;;  %s9506_s10 = scalar_lea.vmem %s9230_s25, %s10891_s16 }
  0x3f   : > { %8089 = vmatprep.subr.mxu1 %v9191_v0  ;;  %8085 = vmatmul.mubr.msk.f32.vlgmr.msra.gmra.mxu0 %vm1424_vm1, %v1402_v3  ;;  %v7554_v7 = vld [vmem:[%s1293_s26] ss:$0 sm:$0xff]  ;;  %v9432_v25 = vld [vmem:[%s9429_s2 + $0x38] sm:$0xff]  ;;  %v9435_v26 = vld [vmem:[%s9429_s2 + $0x30] sm:$0xff]  ;;  %s1307_s22 = scalar_lea.vmem %s9240_s3, %s10891_s16  ;;  %s1312_s23 = scalar_lea.vmem %s9245_s8, %s9374_s0 }
  0x40   : > { %8090 = vmatpush3.msra.mxu1 %v9385_v2  ;;  %8098 = vmatprep.subr.mxu0 %v9191_v0  ;;  %v9440_v27 = vld [vmem:[%s9429_s2 + $0x28] sm:$0xff]  ;;  %v9445_v28 = vld [vmem:[%s9429_s2 + $0x20] sm:$0xff]  ;;  %v9450_v29 = vld [vmem:[%s9429_s2 + $0x18] sm:$0xff]  ;;  %s1320_s26 = scalar_lea.vmem %s9255_s19, %s9374_s0  ;;  %s1315_s1 = scalar_lea.vmem %s9250_s14, %s10891_s16 }
  0x41   : > { %8091 = vmatprep.subr.mxu1 %v9191_v0  ;;  %8114 = vmatprep.mubr.msk.f32.mxu0 %vm9192_vm0, %v9191_v0  ;;  %v9455_v31 = vld [vmem:[%s9429_s2 + $0x10] sm:$0xff]  ;;  %v9461_v32 = vld [vmem:[%s9429_s2 + $0x8] sm:$0xff]  ;;  %v9468_v33 = vld [vmem:[%s9429_s2] sm:$0xff] }
  0x42   : > { %8092 = vmatpush3.msra.mxu1 %v9392_v5  ;;  %8099 = vmatpush3.msra.mxu0 %v9432_v25  ;;  %v9509_v38 = vld [vmem:[%s9506_s10] ss:$0 sm:$0xff] }
  0x43   : > { %8093 = vmatprep.subr.mxu1 %v9191_v0  ;;  %8100 = vmatprep.subr.mxu0 %v9191_v0 }
  0x44   : > { %8094 = vmatpush3.msra.mxu1 %v9397_v6  ;;  %8101 = vmatpush3.msra.mxu0 %v9435_v26 }
  0x45   : > { %8096 = vmatmul.mubr.f32.vlgmr.msra.gmra.mxu1 %v9191_v0  ;;  %8117 = vmatprep.subr.mxu1 %v9191_v0 }
  0x46   : > { %8118 = vmatpush3.msra.mxu1 %v9381_v1  ;;  %8125 = vmatprep.mubr.msk.f32.mxu1 %vm9192_vm0, %v9191_v0 }
  0x47   : > { %8119 = vmatprep.subr.mxu1 %v9191_v0  ;;  %8102 = vmatprep.subr.mxu0 %v9191_v0 }
  0x48   : > { %8120 = vmatpush3.msra.mxu1 %v9385_v2  ;;  %8103 = vmatpush3.msra.mxu0 %v9440_v27 }
  0x49   : > { %8121 = vmatprep.subr.mxu1 %v9191_v0  ;;  %8104 = vmatprep.subr.mxu0 %v9191_v0 }
  0x4a   : > { %8122 = vmatpush3.msra.mxu1 %v9392_v5  ;;  %8105 = vmatpush3.msra.mxu0 %v9445_v28 }
  0x4b   : > { %8123 = vmatprep.subr.mxu1 %v9191_v0  ;;  %8106 = vmatprep.subr.mxu0 %v9191_v0 }
  0x4c   : > { %8124 = vmatpush3.msra.mxu1 %v9397_v6  ;;  %8107 = vmatpush3.msra.mxu0 %v9450_v29 }
  0x4d   : > { %8128 = vmatprep.subr.mxu1 %v9191_v0  ;;  %8108 = vmatprep.subr.mxu0 %v9191_v0 }
  0x4e   : > { %8109 = vmatpush3.msra.mxu0 %v9455_v31 }
  0x4f   : > { %8110 = vmatprep.subr.mxu0 %v9191_v0 }
  0x50   : > { %8111 = vmatpush3.msra.mxu0 %v9461_v32 }
  0x51   : > { %8112 = vmatprep.subr.mxu0 %v9191_v0 }
  0x52   : > { %8113 = vmatpush3.msra.mxu0 %v9468_v33 }
  0x53   : > { %8147 = vmatprep.subr.mxu0 %v9191_v0 }
  0xff   : > { %v1494_v8 = vpop.f32.mrf.mxu0 }
 0x100   : > { %v9419_v9 = vadd.f32 %v7554_v7, %v1494_v8 }
 0x101   : > { %v8086_v10 = vpop.f32.mrf.mxu0 }
 0x105   : > { %v1568_v11 = vpop.f32.mrf.mxu1 }
 0x106   : > { %v1572_v12 = vadd.f32 %v1568_v11, %v9419_v9 }
 0x107   : > { %v8097_v13 = vpop.f32.mrf.mxu1 }
 0x108   : > { %8797 = vtanh.f32 %v1572_v12  ;;  %v1573_v15 = vsub.f32 0.0, %v1572_v12 }
 0x10a   : > { %v1574_v16 = vmul.f32 1.442695, %v1573_v15 }
 0x10c   : > { %8799 = vpow2.f32 %v1574_v16 }
 0x115   : > { %v8798_v14 = vpop.eup %8797 }
 0x116   : > { %1581 = vrot.lane.b32.xlu0 %v8798_v14, %s9193_s28 }
 0x119   : > { %v8800_v17 = vpop.eup %8799 }
 0x11a   : > { %v1576_v18 = vadd.f32 1.0, %v8800_v17 }
 0x11c   : > { %8801 = vrcp.f32 %v1576_v18 }
 0x129   : > { %v8802_v19 = vpop.eup %8801 }
 0x12a   : > { %v1579_v22 = vmul.f32 0.0, %v8802_v19 }
 0x188   : > { %v1582_v20 = vpop.permute.xlu0 %1581 }
 0x189   : > { %v1584_v21 = vmul.f32 %v8802_v19, %v1582_v20 }
 0x18b   : > { %1586 = vrot.lane.b32.xlu0 %v1584_v21, %s9193_s28 }
 0x1fd   : > { %v1587_v23 = vpop.permute.xlu0 %1586 }
 0x1fe   : > { %v9424_v24 = vadd.f32 %v1587_v23, %v1579_v22 }
 0x200   : > { %8803 = vtanh.f32 %v9424_v24 }
 0x20d   : > { %v8804_v30 = vpop.eup %8803 }
 0x20e   : > { %1592 = vrot.lane.b32.xlu1 %v8804_v30, %s9193_s28 }
 0x280   : > { %v1593_v34 = vpop.permute.xlu1 %1592 }
 0x281   : > { %v1595_v35 = vmul.f32 %v8802_v19, %v1593_v34 }
 0x283   : > { %1597 = vrot.lane.b32.xlu1 %v1595_v35, %s9194_s7 }
 0x2f5   : > { %v1598_v36 = vpop.permute.xlu1 %1597 }
 0x2f6   : > { %v1600_v37 = vsel %vm1498_vm2, %v1598_v36, 0.0  ;;  %8126 = vmatmul.mubr.msk.f32.vlgmr.msra.gmra.mxu1 %vm1498_vm2, %v1598_v36 }
 0x2f7   : > { %8115 = vmatmul.mubr.msk.f32.vlgmr.msra.gmra.mxu0 %vm1607_vm3, %v1600_v37  ;;  %8129 = vmatpush3.msra.mxu1 %v9432_v25 }
 0x2f8   : > { %8130 = vmatprep.subr.mxu1 %v9191_v0  ;;  %8148 = vmatpush3.msra.mxu0 %v9381_v1 }
 0x2f9   : > { %8131 = vmatpush3.msra.mxu1 %v9435_v26  ;;  %8149 = vmatprep.subr.mxu0 %v9191_v0 }
 0x2fa   : > { %8132 = vmatprep.subr.mxu1 %v9191_v0  ;;  %8150 = vmatpush3.msra.mxu0 %v9385_v2 }
 0x2fb   : > { %8133 = vmatpush3.msra.mxu1 %v9440_v27  ;;  %8151 = vmatprep.subr.mxu0 %v9191_v0 }
 0x2fc   : > { %8134 = vmatprep.subr.mxu1 %v9191_v0  ;;  %8152 = vmatpush3.msra.mxu0 %v9392_v5 }
 0x2fd   : > { %8135 = vmatpush3.msra.mxu1 %v9445_v28  ;;  %8153 = vmatprep.subr.mxu0 %v9191_v0 }
 0x2fe   : > { %8136 = vmatprep.subr.mxu1 %v9191_v0  ;;  %8154 = vmatpush3.msra.mxu0 %v9397_v6 }
 0x2ff   : > { %8137 = vmatpush3.msra.mxu1 %v9450_v29  ;;  %8155 = vmatprep.mubr.msk.f32.mxu0 %vm9192_vm0, %v9191_v0 }
 0x300   : > { %8138 = vmatprep.subr.mxu1 %v9191_v0  ;;  %8144 = vmatprep.mubr.msk.f32.mxu1 %vm9192_vm0, %v9191_v0 }
 0x301   : > { %8139 = vmatpush3.msra.mxu1 %v9455_v31  ;;  %8158 = vmatprep.subr.mxu0 %v9191_v0 }
 0x302   : > { %8140 = vmatprep.subr.mxu1 %v9191_v0 }
 0x303   : > { %8141 = vmatpush3.msra.mxu1 %v9461_v32 }
 0x304   : > { %8142 = vmatprep.subr.mxu1 %v9191_v0 }
 0x305   : > { %8143 = vmatpush3.msra.mxu1 %v9468_v33 }
 0x306   : > { %8177 = vmatprep.subr.mxu1 %v9191_v0 }
 0x3b6   : > { %v1772_v39 = vpop.f32.mrf.mxu1 }
 0x3b7   : > { %v1776_v40 = vadd.f32 %v1772_v39, %v9419_v9  ;;  %v1677_v41 = vpop.f32.mrf.mxu0 }
 0x3b8   : > { %v1678_v42 = vadd.f32 %v9509_v38, %v1677_v41  ;;  %v8127_v43 = vpop.f32.mrf.mxu1 }
 0x3b9   : > { %8805 = vtanh.f32 %v1776_v40  ;;  %v8116_v44 = vpop.f32.mrf.mxu0  ;;  %v1777_v47 = vsub.f32 0.0, %v1776_v40 }
 0x3ba   : > { %8807 = vtanh.f32 %v1678_v42  ;;  %v1681_v48 = vsub.f32 0.0, %v1678_v42 }
 0x3bb   : > { %v1778_v49 = vmul.f32 1.442695, %v1777_v47 }
 0x3bc   : > { %v1682_v50 = vmul.f32 1.442695, %v1681_v48 }
 0x3bd   : > { %8809 = vpow2.f32 %v1778_v49 }
 0x3be   : > { %8811 = vpow2.f32 %v1682_v50 }
 0x3c6   : > { %v8806_v45 = vpop.eup %8805 }
 0x3c7   : > { %v8808_v46 = vpop.eup %8807  ;;  %1785 = vrot.lane.b32.xlu1 %v8806_v45, %s9193_s28 }
 0x3c8   : > { %1689 = vrot.lane.b32.xlu0 %v8808_v46, %s9193_s28 }
 0x3ca   : > { %v8810_v51 = vpop.eup %8809 }
 0x3cb   : > { %v8812_v52 = vpop.eup %8811  ;;  %v1780_v53 = vadd.f32 1.0, %v8810_v51 }
 0x3cc   : > { %v1684_v54 = vadd.f32 1.0, %v8812_v52 }
 0x3cd   : > { %8813 = vrcp.f32 %v1780_v53 }
 0x3ce   : > { %8815 = vrcp.f32 %v1684_v54 }
 0x3da   : > { %v8814_v55 = vpop.eup %8813 }
 0x3db   : > { %v8816_v57 = vpop.eup %8815  ;;  %v1783_v61 = vmul.f32 %v8814_v55, %v9424_v24 }
 0x3dc   : > { %v1687_v63 = vmul.f32 0.0, %v8816_v57 }
 0x439   : > { %v1786_v56 = vpop.permute.xlu1 %1785 }
 0x43a   : > { %v1788_v58 = vmul.f32 %v8814_v55, %v1786_v56  ;;  %v1690_v59 = vpop.permute.xlu0 %1689 }
 0x43b   : > { %v1692_v60 = vmul.f32 %v8816_v57, %v1690_v59 }
 0x43c   : > { %1790 = vrot.lane.b32.xlu1 %v1788_v58, %s9193_s28 }
 0x43d   : > { %1694 = vrot.lane.b32.xlu0 %v1692_v60, %s9193_s28 }
 0x4ae   : > { %v1791_v62 = vpop.permute.xlu1 %1790 }
 0x4af   : > { %v9518_v3 = vadd.f32 %v1791_v62, %v1783_v61  ;;  %v1695_v4 = vpop.permute.xlu0 %1694 }
 0x4b0   : > { %v9520_v7 = vadd.f32 %v1695_v4, %v1687_v63 }
 0x4b1   : > { %8817 = vtanh.f32 %v9518_v3 }
 0x4b2   : > { %8819 = vtanh.f32 %v9520_v7 }
 0x4be   : > { %v8818_v8 = vpop.eup %8817 }
 0x4bf   : > { %v8820_v10 = vpop.eup %8819  ;;  %1796 = vrot.lane.b32.xlu1 %v8818_v8, %s9193_s28 }
 0x4c0   : > { %1700 = vrot.lane.b32.xlu0 %v8820_v10, %s9193_s28 }
 0x531   : > { %v1797_v11 = vpop.permute.xlu1 %1796 }
 0x532   : > { %v1799_v12 = vmul.f32 %v8814_v55, %v1797_v11  ;;  %v1701_v13 = vpop.permute.xlu0 %1700 }
 0x533   : > { %v1703_v14 = vmul.f32 %v8816_v57, %v1701_v13 }
 0x534   : > { %1801 = vrot.lane.b32.xlu0 %v1799_v12, %s9194_s7 }
 0x535   : > { %1805 = vrot.lane.b32.xlu1 %v1703_v14, %s9195_s11 }
 0x5a6   : > { %v1802_v15 = vpop.permute.xlu0 %1801 }
 0x5a7   : > { %v1806_v16 = vpop.permute.xlu1 %1805  ;;  %8156 = vmatmul.mubr.msk.f32.vlgmr.msra.gmra.mxu0 %vm1498_vm2, %v1802_v15 }
 0x5a8   : > { %v1808_v17 = vsel %vm1498_vm2, %v1802_v15, %v1806_v16  ;;  %8159 = vmatpush3.msra.mxu0 %v9432_v25  ;;  %8174 = vmatprep.mubr.msk.f32.mxu0 %vm9192_vm0, %v9191_v0 }
 0x5a9   : > { %8145 = vmatmul.mubr.msk.f32.vlgmr.msra.gmra.mxu1 %vm1607_vm3, %v1808_v17  ;;  %8160 = vmatprep.subr.mxu0 %v9191_v0 }
 0x5aa   : > { %8161 = vmatpush3.msra.mxu0 %v9435_v26  ;;  %8178 = vmatpush3.msra.mxu1 %v9381_v1 }
 0x5ab   : > { %8162 = vmatprep.subr.mxu0 %v9191_v0  ;;  %8179 = vmatprep.subr.mxu1 %v9191_v0 }
 0x5ac   : > { %8163 = vmatpush3.msra.mxu0 %v9440_v27  ;;  %8180 = vmatpush3.msra.mxu1 %v9385_v2 }
 0x5ad   : > { %8164 = vmatprep.subr.mxu0 %v9191_v0  ;;  %8181 = vmatprep.subr.mxu1 %v9191_v0 }
 0x5ae   : > { %8165 = vmatpush3.msra.mxu0 %v9445_v28  ;;  %8182 = vmatpush3.msra.mxu1 %v9392_v5 }
 0x5af   : > { %8166 = vmatprep.subr.mxu0 %v9191_v0  ;;  %8183 = vmatprep.subr.mxu1 %v9191_v0 }
 0x5b0   : > { %8167 = vmatpush3.msra.mxu0 %v9450_v29  ;;  %8184 = vmatpush3.msra.mxu1 %v9397_v6 }
 0x5b1   : > { %8168 = vmatprep.subr.mxu0 %v9191_v0  ;;  %8185 = vmatprep.mubr.msk.f32.mxu1 %vm9192_vm0, %v9191_v0 }
 0x5b2   : > { %8169 = vmatpush3.msra.mxu0 %v9455_v31  ;;  %8188 = vmatprep.subr.mxu1 %v9191_v0 }
 0x5b3   : > { %8170 = vmatprep.subr.mxu0 %v9191_v0 }
 0x5b4   : > { %8171 = vmatpush3.msra.mxu0 %v9461_v32 }
 0x5b5   : > { %8172 = vmatprep.subr.mxu0 %v9191_v0 }
 0x5b6   : > { %8173 = vmatpush3.msra.mxu0 %v9468_v33 }
 0x5b7   : > { %8207 = vmatprep.subr.mxu0 %v9191_v0 }
 0x667   : > { %v1973_v18 = vpop.f32.mrf.mxu0 }
 0x668   : > { %v1977_v19 = vadd.f32 %v1973_v18, %v9419_v9 }
 0x669   : > { %v1878_v20 = vpop.f32.mrf.mxu1  ;;  %v8157_v21 = vpop.f32.mrf.mxu0 }
 0x66a   : > { %8821 = vtanh.f32 %v1977_v19  ;;  %v1879_v22 = vadd.f32 %v9509_v38, %v1878_v20  ;;  %v1978_v34 = vsub.f32 0.0, %v1977_v19 }
 0x66b   : > { %v8146_v23 = vpop.f32.mrf.mxu1 }
 0x66c   : > { %8823 = vtanh.f32 %v1879_v22  ;;  %v1882_v35 = vsub.f32 0.0, %v1879_v22  ;;  %v1979_v36 = vmul.f32 1.442695, %v1978_v34 }
 0x66e   : > { %v1883_v37 = vmul.f32 1.442695, %v1882_v35  ;;  %8825 = vpow2.f32 %v1979_v36 }
 0x670   : > { %8827 = vpow2.f32 %v1883_v37 }
 0x677   : > { %v8822_v24 = vpop.eup %8821 }
 0x678   : > { %1986 = vrot.lane.b32.xlu1 %v8822_v24, %s9193_s28 }
 0x679   : > { %v8824_v30 = vpop.eup %8823 }
 0x67a   : > { %1890 = vrot.lane.b32.xlu0 %v8824_v30, %s9193_s28 }
 0x67b   : > { %v8826_v39 = vpop.eup %8825 }
 0x67c   : > { %v1981_v41 = vadd.f32 1.0, %v8826_v39 }
 0x67d   : > { %v8828_v40 = vpop.eup %8827 }
 0x67e   : > { %v1885_v42 = vadd.f32 1.0, %v8828_v40  ;;  %8829 = vrcp.f32 %v1981_v41 }
 0x680   : > { %8831 = vrcp.f32 %v1885_v42 }
 0x68b   : > { %v8830_v43 = vpop.eup %8829 }
 0x68c   : > { %v1984_v49 = vmul.f32 %v8830_v43, %v9518_v3 }
 0x68d   : > { %v8832_v46 = vpop.eup %8831 }
 0x68e   : > { %v1888_v52 = vmul.f32 %v8832_v46, %v9520_v7 }
 0x6ea   : > { %v1987_v44 = vpop.permute.xlu1 %1986 }
 0x6eb   : > { %v1989_v45 = vmul.f32 %v8830_v43, %v1987_v44 }
 0x6ec   : > { %v1891_v47 = vpop.permute.xlu0 %1890 }
 0x6ed   : > { %v1893_v48 = vmul.f32 %v8832_v46, %v1891_v47  ;;  %1991 = vrot.lane.b32.xlu1 %v1989_v45, %s9193_s28 }
 0x6ef   : > { %1895 = vrot.lane.b32.xlu0 %v1893_v48, %s9193_s28 }
 0x75f   : > { %v1992_v50 = vpop.permute.xlu1 %1991 }
 0x760   : > { %v9566_v51 = vadd.f32 %v1992_v50, %v1984_v49 }
 0x761   : > { %v1896_v53 = vpop.permute.xlu0 %1895 }
 0x762   : > { %8833 = vtanh.f32 %v9566_v51  ;;  %v9570_v54 = vadd.f32 %v1896_v53, %v1888_v52 }
 0x764   : > { %8835 = vtanh.f32 %v9570_v54 }
 0x76f   : > { %v8834_v55 = vpop.eup %8833 }
 0x770   : > { %1997 = vrot.lane.b32.xlu1 %v8834_v55, %s9193_s28 }
 0x771   : > { %v8836_v56 = vpop.eup %8835 }
 0x772   : > { %1901 = vrot.lane.b32.xlu0 %v8836_v56, %s9193_s28 }
 0x7e2   : > { %v1998_v57 = vpop.permute.xlu1 %1997 }
 0x7e3   : > { %v2000_v58 = vmul.f32 %v8830_v43, %v1998_v57 }
 0x7e4   : > { %v1902_v59 = vpop.permute.xlu0 %1901 }
 0x7e5   : > { %v1904_v60 = vmul.f32 %v8832_v46, %v1902_v59  ;;  %2002 = vrot.lane.b32.xlu0 %v2000_v58, %s9194_s7 }
 0x7e7   : > { %2006 = vrot.lane.b32.xlu1 %v1904_v60, %s9195_s11 }
 0x857   : > { %v2003_v61 = vpop.permute.xlu0 %2002 }
 0x858   : > { %8186 = vmatmul.mubr.msk.f32.vlgmr.msra.gmra.mxu1 %vm1498_vm2, %v2003_v61 }
 0x859   : > { %v2007_v62 = vpop.permute.xlu1 %2006  ;;  %8189 = vmatpush3.msra.mxu1 %v9432_v25  ;;  %8204 = vmatprep.mubr.msk.f32.mxu1 %vm9192_vm0, %v9191_v0 }
 0x85a   : > { %v2009_v63 = vsel %vm1498_vm2, %v2003_v61, %v2007_v62  ;;  %8190 = vmatprep.subr.mxu1 %v9191_v0 }
 0x85b   : > { %8175 = vmatmul.mubr.msk.f32.vlgmr.msra.gmra.mxu0 %vm1607_vm3, %v2009_v63  ;;  %8191 = vmatpush3.msra.mxu1 %v9435_v26 }
 0x85c   : > { %8192 = vmatprep.subr.mxu1 %v9191_v0  ;;  %8208 = vmatpush3.msra.mxu0 %v9381_v1 }
 0x85d   : > { %8193 = vmatpush3.msra.mxu1 %v9440_v27  ;;  %8209 = vmatprep.subr.mxu0 %v9191_v0 }
 0x85e   : > { %8194 = vmatprep.subr.mxu1 %v9191_v0  ;;  %8210 = vmatpush3.msra.mxu0 %v9385_v2 }
 0x85f   : > { %8195 = vmatpush3.msra.mxu1 %v9445_v28  ;;  %8211 = vmatprep.subr.mxu0 %v9191_v0 }
 0x860   : > { %8196 = vmatprep.subr.mxu1 %v9191_v0  ;;  %8212 = vmatpush3.msra.mxu0 %v9392_v5 }
 0x861   : > { %8197 = vmatpush3.msra.mxu1 %v9450_v29  ;;  %8213 = vmatprep.subr.mxu0 %v9191_v0 }
 0x862   : > { %8198 = vmatprep.subr.mxu1 %v9191_v0  ;;  %8214 = vmatpush3.msra.mxu0 %v9397_v6 }
 0x863   : > { %8199 = vmatpush3.msra.mxu1 %v9455_v31  ;;  %8215 = vmatprep.mubr.msk.f32.mxu0 %vm9192_vm0, %v9191_v0 }
 0x864   : > { %8200 = vmatprep.subr.mxu1 %v9191_v0  ;;  %8218 = vmatprep.subr.mxu0 %v9191_v0 }
 0x865   : > { %8201 = vmatpush3.msra.mxu1 %v9461_v32 }
 0x866   : > { %8202 = vmatprep.subr.mxu1 %v9191_v0 }
 0x867   : > { %8203 = vmatpush3.msra.mxu1 %v9468_v33 }
 0x868   : > { %8237 = vmatprep.subr.mxu1 %v9191_v0 }
 0x918   : > { %v2174_v3 = vpop.f32.mrf.mxu1 }
 0x919   : > { %v2178_v4 = vadd.f32 %v2174_v3, %v9419_v9 }
 0x91a   : > { %v8187_v7 = vpop.f32.mrf.mxu1 }
 0x91b   : > { %8837 = vtanh.f32 %v2178_v4  ;;  %v2079_v8 = vpop.f32.mrf.mxu0  ;;  %v2179_v14 = vsub.f32 0.0, %v2178_v4 }
 0x91c   : > { %v2080_v10 = vadd.f32 %v9509_v38, %v2079_v8 }
 0x91d   : > { %v8176_v11 = vpop.f32.mrf.mxu0  ;;  %v2180_v16 = vmul.f32 1.442695, %v2179_v14 }
 0x91e   : > { %8839 = vtanh.f32 %v2080_v10  ;;  %v2083_v15 = vsub.f32 0.0, %v2080_v10 }
 0x91f   : > { %8841 = vpow2.f32 %v2180_v16 }
 0x920   : > { %v2084_v17 = vmul.f32 1.442695, %v2083_v15 }
 0x922   : > { %8843 = vpow2.f32 %v2084_v17 }
 0x928   : > { %v8838_v12 = vpop.eup %8837 }
 0x929   : > { %2187 = vrot.lane.b32.xlu1 %v8838_v12, %s9193_s28 }
 0x92b   : > { %v8840_v13 = vpop.eup %8839 }
 0x92c   : > { %2091 = vrot.lane.b32.xlu0 %v8840_v13, %s9193_s28  ;;  %v8842_v18 = vpop.eup %8841 }
 0x92d   : > { %v2182_v20 = vadd.f32 1.0, %v8842_v18 }
 0x92f   : > { %v8844_v19 = vpop.eup %8843  ;;  %8845 = vrcp.f32 %v2182_v20 }
 0x930   : > { %v2086_v21 = vadd.f32 1.0, %v8844_v19 }
 0x932   : > { %8847 = vrcp.f32 %v2086_v21 }
 0x93c   : > { %v8846_v22 = vpop.eup %8845 }
 0x93d   : > { %v2185_v36 = vmul.f32 %v8846_v22, %v9566_v51 }
 0x93f   : > { %v8848_v30 = vpop.eup %8847 }
 0x940   : > { %v2089_v40 = vmul.f32 %v8848_v30, %v9570_v54 }
 0x99b   : > { %v2188_v23 = vpop.permute.xlu1 %2187 }
 0x99c   : > { %v2190_v24 = vmul.f32 %v8846_v22, %v2188_v23 }
 0x99e   : > { %2192 = vrot.lane.b32.xlu1 %v2190_v24, %s9193_s28  ;;  %v2092_v34 = vpop.permute.xlu0 %2091 }
 0x99f   : > { %v2094_v35 = vmul.f32 %v8848_v30, %v2092_v34 }
 0x9a1   : > { %2096 = vrot.lane.b32.xlu0 %v2094_v35, %s9193_s28 }
 0xa10   : > { %v2193_v37 = vpop.permute.xlu1 %2192 }
 0xa11   : > { %v9615_v39 = vadd.f32 %v2193_v37, %v2185_v36 }
 0xa13   : > { %8849 = vtanh.f32 %v9615_v39  ;;  %v2097_v41 = vpop.permute.xlu0 %2096 }
 0xa14   : > { %v9619_v42 = vadd.f32 %v2097_v41, %v2089_v40 }
 0xa16   : > { %8851 = vtanh.f32 %v9619_v42 }
 0xa20   : > { %v8850_v43 = vpop.eup %8849 }
 0xa21   : > { %2198 = vrot.lane.b32.xlu1 %v8850_v43, %s9193_s28 }
 0xa23   : > { %v8852_v44 = vpop.eup %8851 }
 0xa24   : > { %2102 = vrot.lane.b32.xlu0 %v8852_v44, %s9193_s28 }
 0xa93   : > { %v2199_v45 = vpop.permute.xlu1 %2198 }
 0xa94   : > { %v2201_v46 = vmul.f32 %v8846_v22, %v2199_v45 }
 0xa96   : > { %2203 = vrot.lane.b32.xlu0 %v2201_v46, %s9194_s7  ;;  %v2103_v47 = vpop.permute.xlu0 %2102 }
 0xa97   : > { %v2105_v48 = vmul.f32 %v8848_v30, %v2103_v47 }
 0xa99   : > { %2207 = vrot.lane.b32.xlu1 %v2105_v48, %s9195_s11 }
 0xb08   : > { %v2204_v49 = vpop.permute.xlu0 %2203 }
 0xb09   : > { %8216 = vmatmul.mubr.msk.f32.vlgmr.msra.gmra.mxu0 %vm1498_vm2, %v2204_v49 }
 0xb0a   : > { %8219 = vmatpush3.msra.mxu0 %v9432_v25  ;;  %8234 = vmatprep.mubr.msk.f32.mxu0 %vm9192_vm0, %v9191_v0 }
 0xb0b   : > { %v2208_v50 = vpop.permute.xlu1 %2207  ;;  %8220 = vmatprep.subr.mxu0 %v9191_v0 }
 0xb0c   : > { %v2210_v51 = vsel %vm1498_vm2, %v2204_v49, %v2208_v50  ;;  %8221 = vmatpush3.msra.mxu0 %v9435_v26 }
 0xb0d   : > { %8205 = vmatmul.mubr.msk.f32.vlgmr.msra.gmra.mxu1 %vm1607_vm3, %v2210_v51  ;;  %8222 = vmatprep.subr.mxu0 %v9191_v0 }
 0xb0e   : > { %8238 = vmatpush3.msra.mxu1 %v9381_v1  ;;  %8223 = vmatpush3.msra.mxu0 %v9440_v27 }
 0xb0f   : > { %8239 = vmatprep.subr.mxu1 %v9191_v0  ;;  %8224 = vmatprep.subr.mxu0 %v9191_v0 }
 0xb10   : > { %8240 = vmatpush3.msra.mxu1 %v9385_v2  ;;  %8225 = vmatpush3.msra.mxu0 %v9445_v28 }
 0xb11   : > { %8241 = vmatprep.subr.mxu1 %v9191_v0  ;;  %8226 = vmatprep.subr.mxu0 %v9191_v0 }
 0xb12   : > { %8242 = vmatpush3.msra.mxu1 %v9392_v5  ;;  %8227 = vmatpush3.msra.mxu0 %v9450_v29 }
 0xb13   : > { %8243 = vmatprep.subr.mxu1 %v9191_v0  ;;  %8228 = vmatprep.subr.mxu0 %v9191_v0 }
 0xb14   : > { %8244 = vmatpush3.msra.mxu1 %v9397_v6  ;;  %8245 = vmatprep.mubr.msk.f32.mxu1 %vm9192_vm0, %v9191_v0 }
 0xb15   : > { %8229 = vmatpush3.msra.mxu0 %v9455_v31  ;;  %8248 = vmatprep.subr.mxu1 %v9191_v0 }
 0xb16   : > { %8230 = vmatprep.subr.mxu0 %v9191_v0 }
 0xb17   : > { %8231 = vmatpush3.msra.mxu0 %v9461_v32 }
 0xb18   : > { %8232 = vmatprep.subr.mxu0 %v9191_v0 }
 0xb19   : > { %8233 = vmatpush3.msra.mxu0 %v9468_v33 }
 0xb1a   : > { %8267 = vmatprep.subr.mxu0 %v9191_v0 }
 0xbc9   : > { %v2375_v52 = vpop.f32.mrf.mxu0 }
 0xbca   : > { %v2379_v53 = vadd.f32 %v2375_v52, %v9419_v9 }
 0xbcb   : > { %v8217_v54 = vpop.f32.mrf.mxu0 }
 0xbcc   : > { %8853 = vtanh.f32 %v2379_v53  ;;  %v2380_v60 = vsub.f32 0.0, %v2379_v53 }
 0xbcd   : > { %v2280_v55 = vpop.f32.mrf.mxu1 }
 0xbce   : > { %v2281_v56 = vadd.f32 %v9509_v38, %v2280_v55  ;;  %v2381_v61 = vmul.f32 1.442695, %v2380_v60 }
 0xbcf   : > { %v8206_v57 = vpop.f32.mrf.mxu1 }
 0xbd0   : > { %8855 = vtanh.f32 %v2281_v56  ;;  %v2284_v62 = vsub.f32 0.0, %v2281_v56 }
 0xbd1   : > { %8857 = vpow2.f32 %v2381_v61 }
 0xbd2   : > { %v2285_v63 = vmul.f32 1.442695, %v2284_v62 }
 0xbd4   : > { %8859 = vpow2.f32 %v2285_v63 }
 0xbd9   : > { %v8854_v58 = vpop.eup %8853 }
 0xbda   : > { %2388 = vrot.lane.b32.xlu1 %v8854_v58, %s9193_s28 }
 0xbdd   : > { %v8856_v59 = vpop.eup %8855 }
 0xbde   : > { %2292 = vrot.lane.b32.xlu0 %v8856_v59, %s9193_s28  ;;  %v8858_v3 = vpop.eup %8857 }
 0xbdf   : > { %v2383_v4 = vadd.f32 1.0, %v8858_v3 }
 0xbe1   : > { %v8860_v7 = vpop.eup %8859  ;;  %8861 = vrcp.f32 %v2383_v4 }
 0xbe2   : > { %v2287_v8 = vadd.f32 1.0, %v8860_v7 }
 0xbe4   : > { %8863 = vrcp.f32 %v2287_v8 }
 0xbee   : > { %v8862_v10 = vpop.eup %8861 }
 0xbef   : > { %v2386_v16 = vmul.f32 %v8862_v10, %v9615_v39 }
 0xbf1   : > { %v8864_v13 = vpop.eup %8863 }
 0xbf2   : > { %v2290_v19 = vmul.f32 %v8864_v13, %v9619_v42 }
 0xc4c   : > { %v2389_v11 = vpop.permute.xlu1 %2388 }
 0xc4d   : > { %v2391_v12 = vmul.f32 %v8862_v10, %v2389_v11 }
 0xc4f   : > { %2393 = vrot.lane.b32.xlu1 %v2391_v12, %s9193_s28 }
 0xc50   : > { %v2293_v14 = vpop.permute.xlu0 %2292 }
 0xc51   : > { %v2295_v15 = vmul.f32 %v8864_v13, %v2293_v14 }
 0xc53   : > { %2297 = vrot.lane.b32.xlu0 %v2295_v15, %s9193_s28 }
 0xcc1   : > { %v2394_v17 = vpop.permute.xlu1 %2393 }
 0xcc2   : > { %v9664_v18 = vadd.f32 %v2394_v17, %v2386_v16 }
 0xcc4   : > { %8865 = vtanh.f32 %v9664_v18 }
 0xcc5   : > { %v2298_v20 = vpop.permute.xlu0 %2297 }
 0xcc6   : > { %v9668_v21 = vadd.f32 %v2298_v20, %v2290_v19 }
 0xcc8   : > { %8867 = vtanh.f32 %v9668_v21 }
 0xcd1   : > { %v8866_v22 = vpop.eup %8865 }
 0xcd2   : > { %2399 = vrot.lane.b32.xlu1 %v8866_v22, %s9193_s28 }
 0xcd5   : > { %v8868_v23 = vpop.eup %8867 }
 0xcd6   : > { %2303 = vrot.lane.b32.xlu0 %v8868_v23, %s9193_s28 }
 0xd44   : > { %v2400_v24 = vpop.permute.xlu1 %2399 }
 0xd45   : > { %v2402_v30 = vmul.f32 %v8862_v10, %v2400_v24 }
 0xd47   : > { %2404 = vrot.lane.b32.xlu0 %v2402_v30, %s9194_s7 }
 0xd48   : > { %v2304_v34 = vpop.permute.xlu0 %2303 }
 0xd49   : > { %v2306_v35 = vmul.f32 %v8864_v13, %v2304_v34 }
 0xd4b   : > { %2408 = vrot.lane.b32.xlu1 %v2306_v35, %s9195_s11 }
 0xdb9   : > { %v2405_v36 = vpop.permute.xlu0 %2404 }
 0xdba   : > { %8246 = vmatmul.mubr.msk.f32.vlgmr.msra.gmra.mxu1 %vm1498_vm2, %v2405_v36 }
 0xdbb   : > { %8249 = vmatpush3.msra.mxu1 %v9432_v25  ;;  %8264 = vmatprep.mubr.msk.f32.mxu1 %vm9192_vm0, %v9191_v0 }
 0xdbc   : > { %8250 = vmatprep.subr.mxu1 %v9191_v0 }
 0xdbd   : > { %8251 = vmatpush3.msra.mxu1 %v9435_v26  ;;  %v2409_v37 = vpop.permute.xlu1 %2408 }
 0xdbe   : > { %8252 = vmatprep.subr.mxu1 %v9191_v0  ;;  %v2411_v39 = vsel %vm1498_vm2, %v2405_v36, %v2409_v37 }
 0xdbf   : > { %8253 = vmatpush3.msra.mxu1 %v9440_v27  ;;  %8235 = vmatmul.mubr.msk.f32.vlgmr.msra.gmra.mxu0 %vm1607_vm3, %v2411_v39 }
 0xdc0   : > { %8254 = vmatprep.subr.mxu1 %v9191_v0  ;;  %8268 = vmatpush3.msra.mxu0 %v9381_v1 }
 0xdc1   : > { %8255 = vmatpush3.msra.mxu1 %v9445_v28  ;;  %8269 = vmatprep.subr.mxu0 %v9191_v0 }
 0xdc2   : > { %8256 = vmatprep.subr.mxu1 %v9191_v0  ;;  %8270 = vmatpush3.msra.mxu0 %v9385_v2 }
 0xdc3   : > { %8257 = vmatpush3.msra.mxu1 %v9450_v29  ;;  %8271 = vmatprep.subr.mxu0 %v9191_v0 }
 0xdc4   : > { %8275 = vmatprep.mubr.msk.f32.mxu0 %vm9192_vm0, %v9191_v0  ;;  %8272 = vmatpush3.msra.mxu0 %v9392_v5 }
 0xdc5   : > { %8258 = vmatprep.subr.mxu1 %v9191_v0  ;;  %8273 = vmatprep.subr.mxu0 %v9191_v0 }
 0xdc6   : > { %8259 = vmatpush3.msra.mxu1 %v9455_v31  ;;  %8274 = vmatpush3.msra.mxu0 %v9397_v6 }
 0xdc7   : > { %8260 = vmatprep.subr.mxu1 %v9191_v0  ;;  %8278 = vmatprep.subr.mxu0 %v9191_v0 }
 0xdc8   : > { %8261 = vmatpush3.msra.mxu1 %v9461_v32 }
 0xdc9   : > { %8262 = vmatprep.subr.mxu1 %v9191_v0 }
 0xdca   : > { %8263 = vmatpush3.msra.mxu1 %v9468_v33 }
 0xdcb   : > { %8297 = vmatprep.subr.mxu1 %v9191_v0 }
 0xe7a   : > { %v2576_v2 = vpop.f32.mrf.mxu1 }
 0xe7b   : > { %v2580_v40 = vadd.f32 %v2576_v2, %v9419_v9 }
 0xe7c   : > { %v8247_v41 = vpop.f32.mrf.mxu1 }
 0xe7d   : > { %8869 = vtanh.f32 %v2580_v40  ;;  %v2581_v47 = vsub.f32 0.0, %v2580_v40 }
 0xe7f   : > { %v2481_v42 = vpop.f32.mrf.mxu0  ;;  %v2582_v48 = vmul.f32 1.442695, %v2581_v47 }
 0xe80   : > { %v2482_v43 = vadd.f32 %v9509_v38, %v2481_v42 }
 0xe81   : > { %v8236_v44 = vpop.f32.mrf.mxu0 }
 0xe82   : > { %8871 = vtanh.f32 %v2482_v43  ;;  %v2485_v49 = vsub.f32 0.0, %v2482_v43 }
 0xe83   : > { %8873 = vpow2.f32 %v2582_v48 }
 0xe84   : > { %v2486_v50 = vmul.f32 1.442695, %v2485_v49 }
 0xe86   : > { %8875 = vpow2.f32 %v2486_v50 }
 0xe8a   : > { %v8870_v45 = vpop.eup %8869 }
 0xe8b   : > { %2589 = vrot.lane.b32.xlu1 %v8870_v45, %s9193_s28 }
 0xe8f   : > { %v8872_v46 = vpop.eup %8871 }
 0xe90   : > { %2493 = vrot.lane.b32.xlu0 %v8872_v46, %s9193_s28  ;;  %v8874_v51 = vpop.eup %8873 }
 0xe91   : > { %v2584_v52 = vadd.f32 1.0, %v8874_v51  ;;  %v9778_v51 = vld [vmem:[%s9429_s2 + $0x38] sm:$0xff] }
 0xe93   : > { %v8876_v53 = vpop.eup %8875  ;;  %8877 = vrcp.f32 %v2584_v52  ;;  %v9785_v52 = vld [vmem:[%s9429_s2 + $0x30] sm:$0xff] }
 0xe94   : > { %v2488_v54 = vadd.f32 1.0, %v8876_v53  ;;  %v9790_v53 = vld [vmem:[%s9429_s2 + $0x28] sm:$0xff] }
 0xe96   : > { %8879 = vrcp.f32 %v2488_v54 }
 0xea0   : > { %v8878_v55 = vpop.eup %8877 }
 0xea1   : > { %v2587_v61 = vmul.f32 %v8878_v55, %v9664_v18 }
 0xea3   : > { %v8880_v58 = vpop.eup %8879 }
 0xea4   : > { %v2491_v3 = vmul.f32 %v8880_v58, %v9668_v21 }
 0xefd   : > { %v2590_v56 = vpop.permute.xlu1 %2589 }
 0xefe   : > { %v2592_v57 = vmul.f32 %v8878_v55, %v2590_v56  ;;  %v9796_v56 = vld [vmem:[%s9429_s2 + $0x20] sm:$0xff] }
 0xf00   : > { %2594 = vrot.lane.b32.xlu1 %v2592_v57, %s9193_s28  ;;  %v9802_v57 = vld [vmem:[%s9378_s18 + $0x18] sm:$0xff] }
 0xf02   : > { %v2494_v59 = vpop.permute.xlu0 %2493 }
 0xf03   : > { %v2496_v60 = vmul.f32 %v8880_v58, %v2494_v59  ;;  %v9816_v59 = vld [vmem:[%s9429_s2 + $0x10] sm:$0xff] }
 0xf05   : > { %2498 = vrot.lane.b32.xlu0 %v2496_v60, %s9193_s28  ;;  %v9820_v60 = vld [vmem:[%s9378_s18 + $0x8] sm:$0xff] }
 0xf72   : > { %v2595_v62 = vpop.permute.xlu1 %2594 }
 0xf73   : > { %v9713_v63 = vadd.f32 %v2595_v62, %v2587_v61  ;;  %v9826_v61 = vld [vmem:[%s9429_s2 + $0x8] sm:$0xff]  ;;  %v9830_v62 = vld [vmem:[%s9378_s18] sm:$0xff] }
 0xf75   : > { %8881 = vtanh.f32 %v9713_v63 }
 0xf77   : > { %v2499_v4 = vpop.permute.xlu0 %2498 }
 0xf78   : > { %v9717_v7 = vadd.f32 %v2499_v4, %v2491_v3 }
 0xf7a   : > { %8883 = vtanh.f32 %v9717_v7 }
 0xf82   : > { %v8882_v8 = vpop.eup %8881 }
 0xf83   : > { %2600 = vrot.lane.b32.xlu1 %v8882_v8, %s9193_s28 }
 0xf87   : > { %v8884_v10 = vpop.eup %8883 }
 0xf88   : > { %2504 = vrot.lane.b32.xlu0 %v8884_v10, %s9193_s28 }
 0xff5   : > { %v2601_v11 = vpop.permute.xlu1 %2600 }
 0xff6   : > { %v2603_v12 = vmul.f32 %v8878_v55, %v2601_v11 }
 0xff8   : > { %2605 = vrot.lane.b32.xlu0 %v2603_v12, %s9194_s7 }
 0xffa   : > { %v2505_v13 = vpop.permute.xlu0 %2504 }
 0xffb   : > { %v2507_v14 = vmul.f32 %v8880_v58, %v2505_v13  ;;  %v9809_v58 = vld [vmem:[%s9429_s2 + $0x18] sm:$0xff] }
 0xffd   : > { %2609 = vrot.lane.b32.xlu1 %v2507_v14, %s9195_s11 }
0x106a   : > { %v2606_v15 = vpop.permute.xlu0 %2605 }
0x106b   : > { %8276 = vmatmul.mubr.msk.f32.vlgmr.msra.gmra.mxu0 %vm1498_vm2, %v2606_v15 }
0x106c   : > { %8279 = vmatpush3.msra.mxu0 %v9432_v25  ;;  %8294 = vmatprep.mubr.msk.f32.mxu0 %vm9192_vm0, %v9191_v0  ;;  %v9742_v25 = vld [vmem:[%s9378_s18 + $0x10] sm:$0xff] }
0x106d   : > { %8280 = vmatprep.subr.mxu0 %v9191_v0 }
0x106e   : > { %8281 = vmatpush3.msra.mxu0 %v9435_v26 }
0x106f   : > { %8282 = vmatprep.subr.mxu0 %v9191_v0  ;;  %v2610_v16 = vpop.permute.xlu1 %2609 }
0x1070   : > { %8283 = vmatpush3.msra.mxu0 %v9440_v27  ;;  %v2612_v17 = vsel %vm1498_vm2, %v2606_v15, %v2610_v16 }
0x1071   : > { %8284 = vmatprep.subr.mxu0 %v9191_v0  ;;  %8265 = vmatmul.mubr.msk.f32.vlgmr.msra.gmra.mxu1 %vm1607_vm3, %v2612_v17 }
0x1072   : > { %8285 = vmatpush3.msra.mxu0 %v9445_v28  ;;  %8298 = vmatpush3.msra.mxu1 %v9381_v1 }
0x1073   : > { %8286 = vmatprep.subr.mxu0 %v9191_v0  ;;  %8299 = vmatprep.subr.mxu1 %v9191_v0 }
0x1074   : > { %8305 = vmatprep.mubr.msk.f32.mxu1 %vm9192_vm0, %v9191_v0  ;;  %8300 = vmatpush3.msra.mxu1 %v9742_v25 }
0x1075   : > { %8287 = vmatpush3.msra.mxu0 %v9450_v29  ;;  %8301 = vmatprep.subr.mxu1 %v9191_v0 }
0x1076   : > { %8288 = vmatprep.subr.mxu0 %v9191_v0  ;;  %8302 = vmatpush3.msra.mxu1 %v9392_v5 }
0x1077   : > { %8289 = vmatpush3.msra.mxu0 %v9455_v31  ;;  %8303 = vmatprep.subr.mxu1 %v9191_v0 }
0x1078   : > { %8290 = vmatprep.subr.mxu0 %v9191_v0  ;;  %8304 = vmatpush3.msra.mxu1 %v9397_v6 }
0x1079   : > { %8291 = vmatpush3.msra.mxu0 %v9461_v32  ;;  %8308 = vmatprep.subr.mxu1 %v9191_v0 }
0x107a   : > { %8292 = vmatprep.subr.mxu0 %v9191_v0 }
0x107b   : > { %8293 = vmatpush3.msra.mxu0 %v9468_v33 }
0x107c   : > { %8327 = vmatprep.subr.mxu0 %v9191_v0 }
0x112b   : > { %v2777_v1 = vpop.f32.mrf.mxu0 }
0x112c   : > { %v2781_v5 = vadd.f32 %v2777_v1, %v9419_v9 }
0x112d   : > { %v8277_v26 = vpop.f32.mrf.mxu0 }
0x112e   : > { %8885 = vtanh.f32 %v2781_v5  ;;  %v2782_v32 = vsub.f32 0.0, %v2781_v5 }
0x1130   : > { %v2783_v33 = vmul.f32 1.442695, %v2782_v32 }
0x1131   : > { %v2682_v27 = vpop.f32.mrf.mxu1 }
0x1132   : > { %v2683_v28 = vadd.f32 %v9509_v38, %v2682_v27 }
0x1133   : > { %v8266_v29 = vpop.f32.mrf.mxu1 }
0x1134   : > { %8887 = vtanh.f32 %v2683_v28  ;;  %v2686_v18 = vsub.f32 0.0, %v2683_v28 }
0x1135   : > { %8889 = vpow2.f32 %v2783_v33 }
0x1136   : > { %v2687_v19 = vmul.f32 1.442695, %v2686_v18 }
0x1138   : > { %8891 = vpow2.f32 %v2687_v19 }
0x113b   : > { %v8886_v6 = vpop.eup %8885 }
0x113c   : > { %2790 = vrot.lane.b32.xlu1 %v8886_v6, %s9193_s28 }
0x1141   : > { %v8888_v31 = vpop.eup %8887 }
0x1142   : > { %2694 = vrot.lane.b32.xlu0 %v8888_v31, %s9193_s28  ;;  %v8890_v20 = vpop.eup %8889 }
0x1143   : > { %v2785_v21 = vadd.f32 1.0, %v8890_v20 }
0x1145   : > { %v8892_v22 = vpop.eup %8891  ;;  %8893 = vrcp.f32 %v2785_v21 }
0x1146   : > { %v2689_v23 = vadd.f32 1.0, %v8892_v22 }
0x1148   : > { %8895 = vrcp.f32 %v2689_v23 }
0x1152   : > { %v8894_v24 = vpop.eup %8893 }
0x1153   : > { %v2788_v39 = vmul.f32 %v8894_v24, %v9713_v63  ;;  %v9835_v63 = vld [vmem:[%s9429_s2] sm:$0xff] }
0x1155   : > { %v8896_v35 = vpop.eup %8895 }
0x1156   : > { %v2692_v41 = vmul.f32 %v8896_v35, %v9717_v7 }
0x11ae   : > { %v2791_v30 = vpop.permute.xlu1 %2790 }
0x11af   : > { %v2793_v34 = vmul.f32 %v8894_v24, %v2791_v30 }
0x11b1   : > { %2795 = vrot.lane.b32.xlu1 %v2793_v34, %s9193_s28 }
0x11b4   : > { %v2695_v36 = vpop.permute.xlu0 %2694 }
0x11b5   : > { %v2697_v37 = vmul.f32 %v8896_v35, %v2695_v36 }
0x11b7   : > { %2699 = vrot.lane.b32.xlu0 %v2697_v37, %s9193_s28 }
0x1223   : > { %v2796_v2 = vpop.permute.xlu1 %2795 }
0x1224   : > { %v9765_v40 = vadd.f32 %v2796_v2, %v2788_v39 }
0x1226   : > { %8897 = vtanh.f32 %v9765_v40 }
0x1229   : > { %v2700_v42 = vpop.permute.xlu0 %2699 }
0x122a   : > { %v9769_v43 = vadd.f32 %v2700_v42, %v2692_v41 }
0x122c   : > { %8899 = vtanh.f32 %v9769_v43 }
0x1233   : > { %v8898_v44 = vpop.eup %8897 }
0x1234   : > { %2801 = vrot.lane.b32.xlu1 %v8898_v44, %s9193_s28  ;;  %v9891_v44 = vld [vmem:[%s9506_s10] ss:$0 sm:$0xff] }
0x1239   : > { %v8900_v45 = vpop.eup %8899 }
0x123a   : > { %2705 = vrot.lane.b32.xlu0 %v8900_v45, %s9193_s28 }
0x12a6   : > { %v2802_v46 = vpop.permute.xlu1 %2801 }
0x12a7   : > { %v2804_v47 = vmul.f32 %v8894_v24, %v2802_v46 }
0x12a9   : > { %2806 = vrot.lane.b32.xlu0 %v2804_v47, %s9194_s7 }
0x12ac   : > { %v2706_v48 = vpop.permute.xlu0 %2705 }
0x12ad   : > { %v2708_v49 = vmul.f32 %v8896_v35, %v2706_v48 }
0x12af   : > { %2810 = vrot.lane.b32.xlu1 %v2708_v49, %s9195_s11 }
0x131b   : > { %v2807_v50 = vpop.permute.xlu0 %2806 }
0x131c   : > { %8306 = vmatmul.mubr.msk.f32.vlgmr.msra.gmra.mxu1 %vm1498_vm2, %v2807_v50 }
0x131d   : > { %8309 = vmatpush3.msra.mxu1 %v9778_v51  ;;  %8324 = vmatprep.mubr.msk.f32.mxu1 %vm9192_vm0, %v9191_v0 }
0x131e   : > { %8310 = vmatprep.subr.mxu1 %v9191_v0 }
0x131f   : > { %8311 = vmatpush3.msra.mxu1 %v9785_v52 }
0x1320   : > { %8312 = vmatprep.subr.mxu1 %v9191_v0 }
0x1321   : > { %8313 = vmatpush3.msra.mxu1 %v9790_v53  ;;  %v2811_v54 = vpop.permute.xlu1 %2810 }
0x1322   : > { %8314 = vmatprep.subr.mxu1 %v9191_v0  ;;  %v2813_v55 = vsel %vm1498_vm2, %v2807_v50, %v2811_v54 }
0x1323   : > { %8315 = vmatpush3.msra.mxu1 %v9796_v56  ;;  %8295 = vmatmul.mubr.msk.f32.vlgmr.msra.gmra.mxu0 %vm1607_vm3, %v2813_v55 }
0x1324   : > { %8316 = vmatprep.subr.mxu1 %v9191_v0  ;;  %8328 = vmatpush3.msra.mxu0 %v9802_v57 }
0x1325   : > { %8335 = vmatprep.mubr.msk.f32.mxu0 %vm9192_vm0, %v9191_v0  ;;  %8329 = vmatprep.subr.mxu0 %v9191_v0 }
0x1326   : > { %8317 = vmatpush3.msra.mxu1 %v9809_v58  ;;  %8330 = vmatpush3.msra.mxu0 %v9742_v25 }
0x1327   : > { %8318 = vmatprep.subr.mxu1 %v9191_v0  ;;  %8331 = vmatprep.subr.mxu0 %v9191_v0 }
0x1328   : > { %8319 = vmatpush3.msra.mxu1 %v9816_v59  ;;  %8332 = vmatpush3.msra.mxu0 %v9820_v60 }
0x1329   : > { %8320 = vmatprep.subr.mxu1 %v9191_v0  ;;  %8333 = vmatprep.subr.mxu0 %v9191_v0 }
0x132a   : > { %8321 = vmatpush3.msra.mxu1 %v9826_v61  ;;  %8334 = vmatpush3.msra.mxu0 %v9830_v62 }
0x132b   : > { %8322 = vmatprep.subr.mxu1 %v9191_v0  ;;  %8338 = vmatprep.subr.mxu0 %v9191_v0 }
0x132c   : > { %8323 = vmatpush3.msra.mxu1 %v9835_v63 }
0x132d   : > { %8357 = vmatprep.subr.mxu1 %v9191_v0 }
0x13dc   : > { %v2978_v3 = vpop.f32.mrf.mxu1 }
0x13dd   : > { %v2982_v4 = vadd.f32 %v2978_v3, %v9419_v9 }
0x13de   : > { %v8307_v7 = vpop.f32.mrf.mxu1 }
0x13df   : > { %8901 = vtanh.f32 %v2982_v4  ;;  %v2983_v14 = vsub.f32 0.0, %v2982_v4 }
0x13e1   : > { %v2984_v15 = vmul.f32 1.442695, %v2983_v14 }
0x13e3   : > { %v2883_v8 = vpop.f32.mrf.mxu0 }
0x13e4   : > { %v2884_v10 = vadd.f32 %v9509_v38, %v2883_v8 }
0x13e5   : > { %v8296_v11 = vpop.f32.mrf.mxu0 }
0x13e6   : > { %8903 = vtanh.f32 %v2884_v10  ;;  %v2887_v16 = vsub.f32 0.0, %v2884_v10 }
0x13e7   : > { %8905 = vpow2.f32 %v2984_v15 }
0x13e8   : > { %v2888_v17 = vmul.f32 1.442695, %v2887_v16 }
0x13ea   : > { %8907 = vpow2.f32 %v2888_v17 }
0x13ec   : > { %v8902_v12 = vpop.eup %8901 }
0x13ed   : > { %2991 = vrot.lane.b32.xlu1 %v8902_v12, %s9193_s28 }
0x13f3   : > { %v8904_v13 = vpop.eup %8903 }
0x13f4   : > { %2895 = vrot.lane.b32.xlu0 %v8904_v13, %s9193_s28  ;;  %v8906_v1 = vpop.eup %8905 }
0x13f5   : > { %v2986_v5 = vadd.f32 1.0, %v8906_v1 }
0x13f7   : > { %8909 = vrcp.f32 %v2986_v5  ;;  %v8908_v26 = vpop.eup %8907 }
0x13f8   : > { %v2890_v27 = vadd.f32 1.0, %v8908_v26 }
0x13fa   : > { %8911 = vrcp.f32 %v2890_v27 }
0x1404   : > { %v8910_v38 = vpop.eup %8909 }
0x1405   : > { %v2989_v33 = vmul.f32 %v8910_v38, %v9765_v40 }
0x1407   : > { %v8912_v6 = vpop.eup %8911 }
0x1408   : > { %v2893_v20 = vmul.f32 %v8912_v6, %v9769_v43 }
0x145f   : > { %v2992_v28 = vpop.permute.xlu1 %2991 }
0x1460   : > { %v2994_v29 = vmul.f32 %v8910_v38, %v2992_v28 }
0x1462   : > { %2996 = vrot.lane.b32.xlu1 %v2994_v29, %s9193_s28 }
0x1466   : > { %v2896_v31 = vpop.permute.xlu0 %2895 }
0x1467   : > { %v2898_v32 = vmul.f32 %v8912_v6, %v2896_v31 }
0x1469   : > { %2900 = vrot.lane.b32.xlu0 %v2898_v32, %s9193_s28 }
0x14d4   : > { %v2997_v18 = vpop.permute.xlu1 %2996 }
0x14d5   : > { %v9847_v19 = vadd.f32 %v2997_v18, %v2989_v33 }
0x14d7   : > { %8913 = vtanh.f32 %v9847_v19 }
0x14db   : > { %v2901_v21 = vpop.permute.xlu0 %2900 }
0x14dc   : > { %v9851_v22 = vadd.f32 %v2901_v21, %v2893_v20 }
0x14de   : > { %8915 = vtanh.f32 %v9851_v22 }
0x14e4   : > { %v8914_v23 = vpop.eup %8913 }
0x14e5   : > { %3002 = vrot.lane.b32.xlu1 %v8914_v23, %s9193_s28 }
0x14eb   : > { %v8916_v24 = vpop.eup %8915 }
0x14ec   : > { %2906 = vrot.lane.b32.xlu0 %v8916_v24, %s9193_s28 }
0x1557   : > { %v3003_v30 = vpop.permute.xlu1 %3002 }
0x1558   : > { %v3005_v34 = vmul.f32 %v8910_v38, %v3003_v30 }
0x155a   : > { %3007 = vrot.lane.b32.xlu0 %v3005_v34, %s9194_s7 }
0x155e   : > { %v2907_v35 = vpop.permute.xlu0 %2906 }
0x155f   : > { %v2909_v36 = vmul.f32 %v8912_v6, %v2907_v35 }
0x1561   : > { %3011 = vrot.lane.b32.xlu1 %v2909_v36, %s9195_s11 }
0x15cc   : > { %v3008_v37 = vpop.permute.xlu0 %3007 }
0x15cd   : > { %8336 = vmatmul.mubr.msk.f32.vlgmr.msra.gmra.mxu0 %vm1498_vm2, %v3008_v37 }
0x15ce   : > { %8339 = vmatpush3.msra.mxu0 %v9778_v51  ;;  %8354 = vmatprep.mubr.msk.f32.mxu0 %vm9192_vm0, %v9191_v0 }
0x15cf   : > { %8340 = vmatprep.subr.mxu0 %v9191_v0 }
0x15d0   : > { %8341 = vmatpush3.msra.mxu0 %v9785_v52 }
0x15d1   : > { %8342 = vmatprep.subr.mxu0 %v9191_v0 }
0x15d2   : > { %8343 = vmatpush3.msra.mxu0 %v9790_v53 }
0x15d3   : > { %8344 = vmatprep.subr.mxu0 %v9191_v0  ;;  %v3012_v39 = vpop.permute.xlu1 %3011 }
0x15d4   : > { %8345 = vmatpush3.msra.mxu0 %v9796_v56  ;;  %v3014_v2 = vsel %vm1498_vm2, %v3008_v37, %v3012_v39 }
0x15d5   : > { %8346 = vmatprep.subr.mxu0 %v9191_v0  ;;  %8325 = vmatmul.mubr.msk.f32.vlgmr.msra.gmra.mxu1 %vm1607_vm3, %v3014_v2 }
0x15d6   : > { %8347 = vmatpush3.msra.mxu0 %v9809_v58  ;;  %8358 = vmatpush3.msra.mxu1 %v9802_v57 }
0x15d7   : > { %8365 = vmatprep.mubr.msk.f32.mxu1 %vm9192_vm0, %v9191_v0  ;;  %8359 = vmatprep.subr.mxu1 %v9191_v0 }
0x15d8   : > { %8348 = vmatprep.subr.mxu0 %v9191_v0  ;;  %8360 = vmatpush3.msra.mxu1 %v9742_v25 }
0x15d9   : > { %8349 = vmatpush3.msra.mxu0 %v9816_v59  ;;  %8361 = vmatprep.subr.mxu1 %v9191_v0 }
0x15da   : > { %8350 = vmatprep.subr.mxu0 %v9191_v0  ;;  %8362 = vmatpush3.msra.mxu1 %v9820_v60 }
0x15db   : > { %8351 = vmatpush3.msra.mxu0 %v9826_v61  ;;  %8363 = vmatprep.subr.mxu1 %v9191_v0 }
0x15dc   : > { %8352 = vmatprep.subr.mxu0 %v9191_v0  ;;  %8364 = vmatpush3.msra.mxu1 %v9830_v62 }
0x15dd   : > { %8353 = vmatpush3.msra.mxu0 %v9835_v63  ;;  %8368 = vmatprep.subr.mxu1 %v9191_v0 }
0x15de   : > { %8387 = vmatprep.subr.mxu0 %v9191_v0 }
0x168d   : > { %v3179_v40 = vpop.f32.mrf.mxu0 }
0x168e   : > { %v3183_v41 = vadd.f32 %v3179_v40, %v9419_v9 }
0x168f   : > { %v8337_v42 = vpop.f32.mrf.mxu0 }
0x1690   : > { %8917 = vtanh.f32 %v3183_v41  ;;  %v3184_v49 = vsub.f32 0.0, %v3183_v41 }
0x1692   : > { %v3185_v50 = vmul.f32 1.442695, %v3184_v49 }
0x1695   : > { %v3084_v43 = vpop.f32.mrf.mxu1 }
0x1696   : > { %v3085_v45 = vadd.f32 %v9891_v44, %v3084_v43 }
0x1697   : > { %v8326_v46 = vpop.f32.mrf.mxu1 }
0x1698   : > { %8919 = vtanh.f32 %v3085_v45  ;;  %v3088_v54 = vsub.f32 0.0, %v3085_v45 }
0x1699   : > { %8921 = vpow2.f32 %v3185_v50 }
0x169a   : > { %v3089_v55 = vmul.f32 1.442695, %v3088_v54 }
0x169c   : > { %8923 = vpow2.f32 %v3089_v55 }
0x169d   : > { %v8918_v47 = vpop.eup %8917 }
0x169e   : > { %3192 = vrot.lane.b32.xlu1 %v8918_v47, %s9193_s28 }
0x16a5   : > { %v8920_v48 = vpop.eup %8919 }
0x16a6   : > { %3096 = vrot.lane.b32.xlu0 %v8920_v48, %s9193_s28  ;;  %v8922_v3 = vpop.eup %8921 }
0x16a7   : > { %v3187_v4 = vadd.f32 1.0, %v8922_v3 }
0x16a9   : > { %8925 = vrcp.f32 %v3187_v4  ;;  %v8924_v7 = vpop.eup %8923 }
0x16aa   : > { %v3091_v8 = vadd.f32 1.0, %v8924_v7 }
0x16ac   : > { %8927 = vrcp.f32 %v3091_v8 }
0x16b6   : > { %v8926_v10 = vpop.eup %8925 }
0x16b7   : > { %v3190_v16 = vmul.f32 %v8926_v10, %v9847_v19 }
0x16b9   : > { %v8928_v13 = vpop.eup %8927 }
0x16ba   : > { %v3094_v5 = vmul.f32 %v8928_v13, %v9851_v22 }
0x1710   : > { %v3193_v11 = vpop.permute.xlu1 %3192 }
0x1711   : > { %v3195_v12 = vmul.f32 %v8926_v10, %v3193_v11 }
0x1713   : > { %3197 = vrot.lane.b32.xlu1 %v3195_v12, %s9193_s28 }
0x1718   : > { %v3097_v14 = vpop.permute.xlu0 %3096 }
0x1719   : > { %v3099_v15 = vmul.f32 %v8928_v13, %v3097_v14 }
0x171b   : > { %3101 = vrot.lane.b32.xlu0 %v3099_v15, %s9193_s28 }
0x1785   : > { %v3198_v17 = vpop.permute.xlu1 %3197 }
0x1786   : > { %v9899_v1 = vadd.f32 %v3198_v17, %v3190_v16 }
0x1788   : > { %8929 = vtanh.f32 %v9899_v1 }
0x178d   : > { %v3102_v26 = vpop.permute.xlu0 %3101 }
0x178e   : > { %v9903_v27 = vadd.f32 %v3102_v26, %v3094_v5 }
0x1790   : > { %8931 = vtanh.f32 %v9903_v27 }
0x1795   : > { %v8930_v38 = vpop.eup %8929 }
0x1796   : > { %3203 = vrot.lane.b32.xlu1 %v8930_v38, %s9193_s28 }
0x179d   : > { %v8932_v28 = vpop.eup %8931 }
0x179e   : > { %3107 = vrot.lane.b32.xlu0 %v8932_v28, %s9193_s28 }
0x1808   : > { %v3204_v29 = vpop.permute.xlu1 %3203 }
0x1809   : > { %v3206_v6 = vmul.f32 %v8926_v10, %v3204_v29 }
0x180b   : > { %3208 = vrot.lane.b32.xlu0 %v3206_v6, %s9194_s7 }
0x1810   : > { %v3108_v31 = vpop.permute.xlu0 %3107 }
0x1811   : > { %v3110_v32 = vmul.f32 %v8928_v13, %v3108_v31 }
0x1813   : > { %3212 = vrot.lane.b32.xlu1 %v3110_v32, %s9195_s11 }
0x187d   : > { %v3209_v33 = vpop.permute.xlu0 %3208 }
0x187e   : > { %8366 = vmatmul.mubr.msk.f32.vlgmr.msra.gmra.mxu1 %vm1498_vm2, %v3209_v33 }
0x187f   : > { %8369 = vmatpush3.msra.mxu1 %v9778_v51  ;;  %8384 = vmatprep.mubr.msk.f32.mxu1 %vm9192_vm0, %v9191_v0 }
0x1880   : > { %8370 = vmatprep.subr.mxu1 %v9191_v0 }
0x1881   : > { %8371 = vmatpush3.msra.mxu1 %v9785_v52 }
0x1882   : > { %8372 = vmatprep.subr.mxu1 %v9191_v0 }
0x1883   : > { %8373 = vmatpush3.msra.mxu1 %v9790_v53 }
0x1884   : > { %8374 = vmatprep.subr.mxu1 %v9191_v0 }
0x1885   : > { %8375 = vmatpush3.msra.mxu1 %v9796_v56  ;;  %v3213_v18 = vpop.permute.xlu1 %3212 }
0x1886   : > { %8376 = vmatprep.subr.mxu1 %v9191_v0  ;;  %v3215_v19 = vsel %vm1498_vm2, %v3209_v33, %v3213_v18 }
0x1887   : > { %8377 = vmatpush3.msra.mxu1 %v9809_v58  ;;  %8355 = vmatmul.mubr.msk.f32.vlgmr.msra.gmra.mxu0 %vm1607_vm3, %v3215_v19 }
0x1888   : > { %8378 = vmatprep.subr.mxu1 %v9191_v0  ;;  %8388 = vmatpush3.msra.mxu0 %v9802_v57 }
0x1889   : > { %8395 = vmatprep.mubr.msk.f32.mxu0 %vm9192_vm0, %v9191_v0  ;;  %8389 = vmatprep.subr.mxu0 %v9191_v0 }
0x188a   : > { %8379 = vmatpush3.msra.mxu1 %v9816_v59  ;;  %8390 = vmatpush3.msra.mxu0 %v9742_v25 }
0x188b   : > { %8380 = vmatprep.subr.mxu1 %v9191_v0  ;;  %8391 = vmatprep.subr.mxu0 %v9191_v0 }
0x188c   : > { %8381 = vmatpush3.msra.mxu1 %v9826_v61  ;;  %8392 = vmatpush3.msra.mxu0 %v9820_v60 }
0x188d   : > { %8382 = vmatprep.subr.mxu1 %v9191_v0  ;;  %8393 = vmatprep.subr.mxu0 %v9191_v0 }
0x188e   : > { %8383 = vmatpush3.msra.mxu1 %v9835_v63  ;;  %8394 = vmatpush3.msra.mxu0 %v9830_v62 }
0x188f   : > { %8417 = vmatprep.subr.mxu1 %v9191_v0  ;;  %8398 = vmatprep.subr.mxu0 %v9191_v0 }
0x193e   : > { %v3380_v20 = vpop.f32.mrf.mxu1 }
0x193f   : > { %v3384_v21 = vadd.f32 %v3380_v20, %v9419_v9 }
0x1940   : > { %v8367_v22 = vpop.f32.mrf.mxu1 }
0x1941   : > { %8933 = vtanh.f32 %v3384_v21  ;;  %v3385_v36 = vsub.f32 0.0, %v3384_v21 }
0x1943   : > { %v3386_v37 = vmul.f32 1.442695, %v3385_v36 }
0x1947   : > { %v3285_v23 = vpop.f32.mrf.mxu0 }
0x1948   : > { %v3286_v24 = vadd.f32 %v9891_v44, %v3285_v23 }
0x1949   : > { %v8356_v30 = vpop.f32.mrf.mxu0 }
0x194a   : > { %8935 = vtanh.f32 %v3286_v24  ;;  %v3289_v39 = vsub.f32 0.0, %v3286_v24 }
0x194b   : > { %8937 = vpow2.f32 %v3386_v37 }
0x194c   : > { %v3290_v2 = vmul.f32 1.442695, %v3289_v39 }
0x194e   : > { %v8934_v34 = vpop.eup %8933  ;;  %8939 = vpow2.f32 %v3290_v2 }
0x194f   : > { %3393 = vrot.lane.b32.xlu1 %v8934_v34, %s9193_s28 }
0x1957   : > { %v8936_v35 = vpop.eup %8935 }
0x1958   : > { %3297 = vrot.lane.b32.xlu0 %v8936_v35, %s9193_s28  ;;  %v8938_v40 = vpop.eup %8937 }
0x1959   : > { %v3388_v41 = vadd.f32 1.0, %v8938_v40 }
0x195b   : > { %8941 = vrcp.f32 %v3388_v41  ;;  %v8940_v42 = vpop.eup %8939 }
0x195c   : > { %v3292_v43 = vadd.f32 1.0, %v8940_v42 }
0x195e   : > { %8943 = vrcp.f32 %v3292_v43 }
0x1968   : > { %v8942_v45 = vpop.eup %8941 }
0x1969   : > { %v3391_v54 = vmul.f32 %v8942_v45, %v9899_v1 }
0x196b   : > { %v8944_v48 = vpop.eup %8943 }
0x196c   : > { %v3295_v4 = vmul.f32 %v8944_v48, %v9903_v27 }
0x19c1   : > { %v3394_v46 = vpop.permute.xlu1 %3393 }
0x19c2   : > { %v3396_v47 = vmul.f32 %v8942_v45, %v3394_v46 }
0x19c4   : > { %3398 = vrot.lane.b32.xlu1 %v3396_v47, %s9193_s28 }
0x19ca   : > { %v3298_v49 = vpop.permute.xlu0 %3297 }
0x19cb   : > { %v3300_v50 = vmul.f32 %v8944_v48, %v3298_v49 }
0x19cd   : > { %3302 = vrot.lane.b32.xlu0 %v3300_v50, %s9193_s28 }
0x1a36   : > { %v3399_v55 = vpop.permute.xlu1 %3398 }
0x1a37   : > { %v9948_v3 = vadd.f32 %v3399_v55, %v3391_v54 }
0x1a39   : > { %8945 = vtanh.f32 %v9948_v3 }
0x1a3f   : > { %v3303_v7 = vpop.permute.xlu0 %3302 }
0x1a40   : > { %v9952_v8 = vadd.f32 %v3303_v7, %v3295_v4 }
0x1a42   : > { %8947 = vtanh.f32 %v9952_v8 }
0x1a46   : > { %v8946_v10 = vpop.eup %8945 }
0x1a47   : > { %3404 = vrot.lane.b32.xlu1 %v8946_v10, %s9193_s28 }
0x1a4f   : > { %v8948_v11 = vpop.eup %8947 }
0x1a50   : > { %3308 = vrot.lane.b32.xlu0 %v8948_v11, %s9193_s28 }
0x1ab9   : > { %v3405_v12 = vpop.permute.xlu1 %3404 }
0x1aba   : > { %v3407_v13 = vmul.f32 %v8942_v45, %v3405_v12 }
0x1abc   : > { %3409 = vrot.lane.b32.xlu0 %v3407_v13, %s9194_s7 }
0x1ac2   : > { %v3309_v14 = vpop.permute.xlu0 %3308 }
0x1ac3   : > { %v3311_v15 = vmul.f32 %v8944_v48, %v3309_v14 }
0x1ac5   : > { %3413 = vrot.lane.b32.xlu1 %v3311_v15, %s9195_s11 }
0x1b2e   : > { %v3410_v16 = vpop.permute.xlu0 %3409 }
0x1b2f   : > { %8396 = vmatmul.mubr.msk.f32.vlgmr.msra.gmra.mxu0 %vm1498_vm2, %v3410_v16 }
0x1b30   : > { %8399 = vmatpush3.msra.mxu0 %v9778_v51  ;;  %8414 = vmatprep.mubr.msk.f32.mxu0 %vm9192_vm0, %v9191_v0 }
0x1b31   : > { %8400 = vmatprep.subr.mxu0 %v9191_v0 }
0x1b32   : > { %8401 = vmatpush3.msra.mxu0 %v9785_v52 }
0x1b33   : > { %8402 = vmatprep.subr.mxu0 %v9191_v0 }
0x1b34   : > { %8403 = vmatpush3.msra.mxu0 %v9790_v53 }
0x1b35   : > { %8404 = vmatprep.subr.mxu0 %v9191_v0 }
0x1b36   : > { %8405 = vmatpush3.msra.mxu0 %v9796_v56 }
0x1b37   : > { %8406 = vmatprep.subr.mxu0 %v9191_v0  ;;  %v3414_v17 = vpop.permute.xlu1 %3413 }
0x1b38   : > { %8407 = vmatpush3.msra.mxu0 %v9809_v58  ;;  %v3416_v1 = vsel %vm1498_vm2, %v3410_v16, %v3414_v17 }
0x1b39   : > { %8408 = vmatprep.subr.mxu0 %v9191_v0  ;;  %8385 = vmatmul.mubr.msk.f32.vlgmr.msra.gmra.mxu1 %vm1607_vm3, %v3416_v1 }
0x1b3a   : > { %8409 = vmatpush3.msra.mxu0 %v9816_v59  ;;  %8418 = vmatpush3.msra.mxu1 %v9802_v57 }
0x1b3b   : > { %8425 = vmatprep.mubr.msk.f32.mxu1 %vm9192_vm0, %v9191_v0  ;;  %8419 = vmatprep.subr.mxu1 %v9191_v0 }
0x1b3c   : > { %8410 = vmatprep.subr.mxu0 %v9191_v0  ;;  %8420 = vmatpush3.msra.mxu1 %v9742_v25 }
0x1b3d   : > { %8411 = vmatpush3.msra.mxu0 %v9826_v61  ;;  %8421 = vmatprep.subr.mxu1 %v9191_v0 }
0x1b3e   : > { %8412 = vmatprep.subr.mxu0 %v9191_v0  ;;  %8422 = vmatpush3.msra.mxu1 %v9820_v60 }
0x1b3f   : > { %8413 = vmatpush3.msra.mxu0 %v9835_v63  ;;  %8423 = vmatprep.subr.mxu1 %v9191_v0 }
0x1b40   : > { %8447 = vmatprep.subr.mxu0 %v9191_v0  ;;  %8424 = vmatpush3.msra.mxu1 %v9830_v62 }
0x1b41   : > { %8428 = vmatprep.subr.mxu1 %v9191_v0 }
0x1bef   : > { %v3581_v5 = vpop.f32.mrf.mxu0 }
0x1bf0   : > { %v3585_v26 = vadd.f32 %v3581_v5, %v9419_v9 }
0x1bf1   : > { %v8397_v27 = vpop.f32.mrf.mxu0 }
0x1bf2   : > { %8949 = vtanh.f32 %v3585_v26  ;;  %v3586_v32 = vsub.f32 0.0, %v3585_v26 }
0x1bf4   : > { %v3587_v33 = vmul.f32 1.442695, %v3586_v32 }
0x1bf9   : > { %v3486_v38 = vpop.f32.mrf.mxu1 }
0x1bfa   : > { %v3487_v28 = vadd.f32 %v9891_v44, %v3486_v38 }
0x1bfb   : > { %v8386_v29 = vpop.f32.mrf.mxu1 }
0x1bfc   : > { %8951 = vtanh.f32 %v3487_v28  ;;  %v3490_v18 = vsub.f32 0.0, %v3487_v28 }
0x1bfd   : > { %8953 = vpow2.f32 %v3587_v33 }
0x1bfe   : > { %v3491_v19 = vmul.f32 1.442695, %v3490_v18 }
0x1bff   : > { %v8950_v6 = vpop.eup %8949 }
0x1c00   : > { %3594 = vrot.lane.b32.xlu1 %v8950_v6, %s9193_s28  ;;  %8955 = vpow2.f32 %v3491_v19 }
0x1c09   : > { %v8952_v31 = vpop.eup %8951 }
0x1c0a   : > { %3498 = vrot.lane.b32.xlu0 %v8952_v31, %s9193_s28  ;;  %v8954_v20 = vpop.eup %8953 }
0x1c0b   : > { %v3589_v21 = vadd.f32 1.0, %v8954_v20 }
0x1c0d   : > { %8957 = vrcp.f32 %v3589_v21  ;;  %v8956_v22 = vpop.eup %8955 }
0x1c0e   : > { %v3493_v23 = vadd.f32 1.0, %v8956_v22 }
0x1c10   : > { %8959 = vrcp.f32 %v3493_v23 }
0x1c1a   : > { %v8958_v24 = vpop.eup %8957 }
0x1c1b   : > { %v3592_v39 = vmul.f32 %v8958_v24, %v9948_v3 }
0x1c1d   : > { %v8960_v35 = vpop.eup %8959 }
0x1c1e   : > { %v3496_v41 = vmul.f32 %v8960_v35, %v9952_v8 }
0x1c72   : > { %v3595_v30 = vpop.permute.xlu1 %3594 }
0x1c73   : > { %v3597_v34 = vmul.f32 %v8958_v24, %v3595_v30 }
0x1c75   : > { %3599 = vrot.lane.b32.xlu1 %v3597_v34, %s9193_s28 }
0x1c7c   : > { %v3499_v36 = vpop.permute.xlu0 %3498 }
0x1c7d   : > { %v3501_v37 = vmul.f32 %v8960_v35, %v3499_v36 }
0x1c7f   : > { %3503 = vrot.lane.b32.xlu0 %v3501_v37, %s9193_s28 }
0x1ce7   : > { %v3600_v2 = vpop.permute.xlu1 %3599 }
0x1ce8   : > { %v9997_v40 = vadd.f32 %v3600_v2, %v3592_v39 }
0x1cea   : > { %8961 = vtanh.f32 %v9997_v40 }
0x1cf1   : > { %v3504_v42 = vpop.permute.xlu0 %3503 }
0x1cf2   : > { %v10001_v43 = vadd.f32 %v3504_v42, %v3496_v41 }
0x1cf4   : > { %8963 = vtanh.f32 %v10001_v43 }
0x1cf7   : > { %v8962_v45 = vpop.eup %8961 }
0x1cf8   : > { %3605 = vrot.lane.b32.xlu1 %v8962_v45, %s9193_s28 }
0x1d01   : > { %v8964_v46 = vpop.eup %8963 }
0x1d02   : > { %3509 = vrot.lane.b32.xlu0 %v8964_v46, %s9193_s28 }
0x1d6a   : > { %v3606_v47 = vpop.permute.xlu1 %3605 }
0x1d6b   : > { %v3608_v48 = vmul.f32 %v8958_v24, %v3606_v47 }
0x1d6d   : > { %3610 = vrot.lane.b32.xlu0 %v3608_v48, %s9194_s7 }
0x1d74   : > { %v3510_v49 = vpop.permute.xlu0 %3509 }
0x1d75   : > { %v3512_v50 = vmul.f32 %v8960_v35, %v3510_v49 }
0x1d77   : > { %3614 = vrot.lane.b32.xlu1 %v3512_v50, %s9195_s11 }
0x1ddf   : > { %v3611_v54 = vpop.permute.xlu0 %3610 }
0x1de0   : > { %8426 = vmatmul.mubr.msk.f32.vlgmr.msra.gmra.mxu1 %vm1498_vm2, %v3611_v54 }
0x1de1   : > { %8429 = vmatpush3.msra.mxu1 %v9778_v51  ;;  %8444 = vmatprep.mubr.msk.f32.mxu1 %vm9192_vm0, %v9191_v0 }
0x1de2   : > { %8430 = vmatprep.subr.mxu1 %v9191_v0 }
0x1de3   : > { %8431 = vmatpush3.msra.mxu1 %v9785_v52 }
0x1de4   : > { %8432 = vmatprep.subr.mxu1 %v9191_v0 }
0x1de5   : > { %8433 = vmatpush3.msra.mxu1 %v9790_v53 }
0x1de6   : > { %8434 = vmatprep.subr.mxu1 %v9191_v0 }
0x1de7   : > { %8435 = vmatpush3.msra.mxu1 %v9796_v56 }
0x1de8   : > { %8436 = vmatprep.subr.mxu1 %v9191_v0 }
0x1de9   : > { %8437 = vmatpush3.msra.mxu1 %v9809_v58  ;;  %v3615_v55 = vpop.permute.xlu1 %3614 }
0x1dea   : > { %8438 = vmatprep.subr.mxu1 %v9191_v0  ;;  %v3617_v3 = vsel %vm1498_vm2, %v3611_v54, %v3615_v55 }
0x1deb   : > { %8439 = vmatpush3.msra.mxu1 %v9816_v59  ;;  %8415 = vmatmul.mubr.msk.f32.vlgmr.msra.gmra.mxu0 %vm1607_vm3, %v3617_v3 }
0x1dec   : > { %8440 = vmatprep.subr.mxu1 %v9191_v0  ;;  %8448 = vmatpush3.msra.mxu0 %v9802_v57 }
0x1ded   : > { %8455 = vmatprep.mubr.msk.f32.mxu0 %vm9192_vm0, %v9191_v0  ;;  %8449 = vmatprep.subr.mxu0 %v9191_v0 }
0x1dee   : > { %8441 = vmatpush3.msra.mxu1 %v9826_v61  ;;  %8450 = vmatpush3.msra.mxu0 %v9742_v25 }
0x1def   : > { %8442 = vmatprep.subr.mxu1 %v9191_v0  ;;  %8451 = vmatprep.subr.mxu0 %v9191_v0 }
0x1df0   : > { %8443 = vmatpush3.msra.mxu1 %v9835_v63  ;;  %8452 = vmatpush3.msra.mxu0 %v9820_v60 }
0x1df1   : > { %8477 = vmatprep.subr.mxu1 %v9191_v0  ;;  %8453 = vmatprep.subr.mxu0 %v9191_v0 }
0x1df2   : > { %8454 = vmatpush3.msra.mxu0 %v9830_v62 }
0x1df3   : > { %8458 = vmatprep.subr.mxu0 %v9191_v0 }
0x1ea0   : > { %v3782_v4 = vpop.f32.mrf.mxu1 }
0x1ea1   : > { %v3786_v7 = vadd.f32 %v3782_v4, %v9419_v9 }
0x1ea2   : > { %v8427_v8 = vpop.f32.mrf.mxu1 }
0x1ea3   : > { %8965 = vtanh.f32 %v3786_v7  ;;  %v3787_v15 = vsub.f32 0.0, %v3786_v7 }
0x1ea5   : > { %v3788_v16 = vmul.f32 1.442695, %v3787_v15 }
0x1eab   : > { %v3687_v10 = vpop.f32.mrf.mxu0 }
0x1eac   : > { %v3688_v11 = vadd.f32 %v9891_v44, %v3687_v10 }
0x1ead   : > { %v8416_v12 = vpop.f32.mrf.mxu0 }
0x1eae   : > { %8967 = vtanh.f32 %v3688_v11  ;;  %v3691_v17 = vsub.f32 0.0, %v3688_v11 }
0x1eaf   : > { %8969 = vpow2.f32 %v3788_v16 }
0x1eb0   : > { %v8966_v13 = vpop.eup %8965  ;;  %v3692_v1 = vmul.f32 1.442695, %v3691_v17 }
0x1eb1   : > { %3795 = vrot.lane.b32.xlu1 %v8966_v13, %s9193_s28 }
0x1eb2   : > { %8971 = vpow2.f32 %v3692_v1 }
0x1ebb   : > { %v8968_v14 = vpop.eup %8967 }
0x1ebc   : > { %3699 = vrot.lane.b32.xlu0 %v8968_v14, %s9193_s28  ;;  %v8970_v5 = vpop.eup %8969 }
0x1ebd   : > { %v3790_v26 = vadd.f32 1.0, %v8970_v5 }
0x1ebf   : > { %8973 = vrcp.f32 %v3790_v26  ;;  %v8972_v27 = vpop.eup %8971 }
0x1ec0   : > { %v3694_v38 = vadd.f32 1.0, %v8972_v27 }
0x1ec2   : > { %8975 = vrcp.f32 %v3694_v38 }
0x1ecc   : > { %v8974_v28 = vpop.eup %8973 }
0x1ecd   : > { %v3793_v18 = vmul.f32 %v8974_v28, %v9997_v40 }
0x1ecf   : > { %v8976_v31 = vpop.eup %8975 }
0x1ed0   : > { %v3697_v21 = vmul.f32 %v8976_v31, %v10001_v43 }
0x1f23   : > { %v3796_v29 = vpop.permute.xlu1 %3795 }
0x1f24   : > { %v3798_v6 = vmul.f32 %v8974_v28, %v3796_v29 }
0x1f26   : > { %3800 = vrot.lane.b32.xlu1 %v3798_v6, %s9193_s28 }
0x1f2e   : > { %v3700_v32 = vpop.permute.xlu0 %3699 }
0x1f2f   : > { %v3702_v33 = vmul.f32 %v8976_v31, %v3700_v32 }
0x1f31   : > { %3704 = vrot.lane.b32.xlu0 %v3702_v33, %s9193_s28 }
0x1f98   : > { %v3801_v19 = vpop.permute.xlu1 %3800 }
0x1f99   : > { %v10046_v20 = vadd.f32 %v3801_v19, %v3793_v18 }
0x1f9b   : > { %8977 = vtanh.f32 %v10046_v20 }
0x1fa3   : > { %v3705_v22 = vpop.permute.xlu0 %3704 }
0x1fa4   : > { %v10050_v23 = vadd.f32 %v3705_v22, %v3697_v21 }
0x1fa6   : > { %8979 = vtanh.f32 %v10050_v23 }
0x1fa8   : > { %v8978_v24 = vpop.eup %8977 }
0x1fa9   : > { %3806 = vrot.lane.b32.xlu1 %v8978_v24, %s9193_s28 }
0x1fb3   : > { %v8980_v30 = vpop.eup %8979 }
0x1fb4   : > { %3710 = vrot.lane.b32.xlu0 %v8980_v30, %s9193_s28 }
0x201b   : > { %v3807_v34 = vpop.permute.xlu1 %3806 }
0x201c   : > { %v3809_v35 = vmul.f32 %v8974_v28, %v3807_v34 }
0x201e   : > { %3811 = vrot.lane.b32.xlu0 %v3809_v35, %s9194_s7 }
0x2026   : > { %v3711_v36 = vpop.permute.xlu0 %3710 }
0x2027   : > { %v3713_v37 = vmul.f32 %v8976_v31, %v3711_v36 }
0x2029   : > { %3815 = vrot.lane.b32.xlu1 %v3713_v37, %s9195_s11 }
0x2090   : > { %v3812_v39 = vpop.permute.xlu0 %3811 }
0x2091   : > { %8456 = vmatmul.mubr.msk.f32.vlgmr.msra.gmra.mxu0 %vm1498_vm2, %v3812_v39 }
0x2092   : > { %8459 = vmatpush3.msra.mxu0 %v9778_v51  ;;  %8474 = vmatprep.mubr.msk.f32.mxu0 %vm9192_vm0, %v9191_v0 }
0x2093   : > { %8460 = vmatprep.subr.mxu0 %v9191_v0 }
0x2094   : > { %8461 = vmatpush3.msra.mxu0 %v9785_v52 }
0x2095   : > { %8462 = vmatprep.subr.mxu0 %v9191_v0 }
0x2096   : > { %8463 = vmatpush3.msra.mxu0 %v9790_v53 }
0x2097   : > { %8464 = vmatprep.subr.mxu0 %v9191_v0 }
0x2098   : > { %8465 = vmatpush3.msra.mxu0 %v9796_v56 }
0x2099   : > { %8466 = vmatprep.subr.mxu0 %v9191_v0 }
0x209a   : > { %8467 = vmatpush3.msra.mxu0 %v9809_v58 }
0x209b   : > { %8468 = vmatprep.subr.mxu0 %v9191_v0  ;;  %v3816_v2 = vpop.permute.xlu1 %3815 }
0x209c   : > { %8469 = vmatpush3.msra.mxu0 %v9816_v59  ;;  %v3818_v40 = vsel %vm1498_vm2, %v3812_v39, %v3816_v2 }
0x209d   : > { %8470 = vmatprep.subr.mxu0 %v9191_v0  ;;  %8445 = vmatmul.mubr.msk.f32.vlgmr.msra.gmra.mxu1 %vm1607_vm3, %v3818_v40 }
0x209e   : > { %8471 = vmatpush3.msra.mxu0 %v9826_v61  ;;  %8478 = vmatpush3.msra.mxu1 %v9802_v57 }
0x209f   : > { %8485 = vmatprep.mubr.msk.f32.mxu1 %vm9192_vm0, %v9191_v0  ;;  %8479 = vmatprep.subr.mxu1 %v9191_v0 }
0x20a0   : > { %8472 = vmatprep.subr.mxu0 %v9191_v0  ;;  %8480 = vmatpush3.msra.mxu1 %v9742_v25 }
0x20a1   : > { %8473 = vmatpush3.msra.mxu0 %v9835_v63  ;;  %8481 = vmatprep.subr.mxu1 %v9191_v0 }
0x20a2   : > { %8507 = vmatprep.subr.mxu0 %v9191_v0  ;;  %8482 = vmatpush3.msra.mxu1 %v9820_v60 }
0x20a3   : > { %8483 = vmatprep.subr.mxu1 %v9191_v0 }
0x20a4   : > { %8484 = vmatpush3.msra.mxu1 %v9830_v62 }
0x20a5   : > { %8488 = vmatprep.subr.mxu1 %v9191_v0 }
0x2151   : > { %v3983_v41 = vpop.f32.mrf.mxu0 }
0x2152   : > { %v3987_v42 = vadd.f32 %v3983_v41, %v9419_v9 }
0x2153   : > { %v8457_v43 = vpop.f32.mrf.mxu0 }
0x2154   : > { %8981 = vtanh.f32 %v3987_v42  ;;  %v3988_v49 = vsub.f32 0.0, %v3987_v42 }
0x2156   : > { %v3989_v50 = vmul.f32 1.442695, %v3988_v49 }
0x215d   : > { %v3888_v25 = vpop.f32.mrf.mxu1 }
0x215e   : > { %v3889_v45 = vadd.f32 %v9891_v44, %v3888_v25 }
0x215f   : > { %v8446_v46 = vpop.f32.mrf.mxu1 }
0x2160   : > { %8983 = vtanh.f32 %v3889_v45  ;;  %v3892_v54 = vsub.f32 0.0, %v3889_v45 }
0x2161   : > { %v8982_v47 = vpop.eup %8981  ;;  %8985 = vpow2.f32 %v3989_v50 }
0x2162   : > { %3996 = vrot.lane.b32.xlu1 %v8982_v47, %s9193_s28  ;;  %v3893_v55 = vmul.f32 1.442695, %v3892_v54 }
0x2164   : > { %8987 = vpow2.f32 %v3893_v55 }
0x216d   : > { %v8984_v48 = vpop.eup %8983 }
0x216e   : > { %3900 = vrot.lane.b32.xlu0 %v8984_v48, %s9193_s28  ;;  %v8986_v3 = vpop.eup %8985 }
0x216f   : > { %v3991_v4 = vadd.f32 1.0, %v8986_v3  ;;  %v10160_v3 = vld [vmem:[%s9429_s2 + $0x38] sm:$0xff] }
0x2171   : > { %8989 = vrcp.f32 %v3991_v4  ;;  %v8988_v7 = vpop.eup %8987  ;;  %v10167_v4 = vld [vmem:[%s9429_s2 + $0x30] sm:$0xff] }
0x2172   : > { %v3895_v8 = vadd.f32 1.0, %v8988_v7  ;;  %v10172_v7 = vld [vmem:[%s9429_s2 + $0x28] sm:$0xff] }
0x2174   : > { %8991 = vrcp.f32 %v3895_v8  ;;  %v10177_v8 = vld [vmem:[%s9429_s2 + $0x20] sm:$0xff] }
0x217e   : > { %v8990_v10 = vpop.eup %8989 }
0x217f   : > { %v3994_v16 = vmul.f32 %v8990_v10, %v10046_v20 }
0x2181   : > { %v8992_v13 = vpop.eup %8991 }
0x2182   : > { %v3898_v5 = vmul.f32 %v8992_v13, %v10050_v23 }
0x21d4   : > { %v3997_v11 = vpop.permute.xlu1 %3996 }
0x21d5   : > { %v3999_v12 = vmul.f32 %v8990_v10, %v3997_v11  ;;  %v10187_v11 = vld [vmem:[%s9429_s2 + $0x10] sm:$0xff] }
0x21d7   : > { %4001 = vrot.lane.b32.xlu1 %v3999_v12, %s9193_s28 }
0x21e0   : > { %v3901_v14 = vpop.permute.xlu0 %3900 }
0x21e1   : > { %v3903_v15 = vmul.f32 %v8992_v13, %v3901_v14 }
0x21e3   : > { %3905 = vrot.lane.b32.xlu0 %v3903_v15, %s9193_s28  ;;  %v10199_v15 = vld [vmem:[%s9429_s2] sm:$0xff] }
0x2249   : > { %v4002_v17 = vpop.permute.xlu1 %4001 }
0x224a   : > { %v10095_v1 = vadd.f32 %v4002_v17, %v3994_v16  ;;  %v10203_v16 = vld [vmem:[%s9378_s18 + $0x18] sm:$0xff]  ;;  %v10213_v17 = vld [vmem:[%s9378_s18 + $0x8] sm:$0xff] }
0x224c   : > { %8993 = vtanh.f32 %v10095_v1 }
0x2255   : > { %v3906_v26 = vpop.permute.xlu0 %3905 }
0x2256   : > { %v10099_v27 = vadd.f32 %v3906_v26, %v3898_v5 }
0x2258   : > { %8995 = vtanh.f32 %v10099_v27 }
0x2259   : > { %v8994_v38 = vpop.eup %8993 }
0x225a   : > { %4007 = vrot.lane.b32.xlu1 %v8994_v38, %s9193_s28 }
0x2265   : > { %v8996_v28 = vpop.eup %8995 }
0x2266   : > { %3911 = vrot.lane.b32.xlu0 %v8996_v28, %s9193_s28 }
0x22cc   : > { %v4008_v29 = vpop.permute.xlu1 %4007 }
0x22cd   : > { %v4010_v6 = vmul.f32 %v8990_v10, %v4008_v29  ;;  %v10182_v10 = vld [vmem:[%s9429_s2 + $0x18] sm:$0xff] }
0x22cf   : > { %4012 = vrot.lane.b32.xlu0 %v4010_v6, %s9194_s7 }
0x22d8   : > { %v3912_v31 = vpop.permute.xlu0 %3911 }
0x22d9   : > { %v3914_v32 = vmul.f32 %v8992_v13, %v3912_v31  ;;  %v10192_v13 = vld [vmem:[%s9429_s2 + $0x8] sm:$0xff]  ;;  %s1336_s2 = scalar_lea.vmem %s9275_s12, %s9374_s0 }
0x22db   : > { %4016 = vrot.lane.b32.xlu1 %v3914_v32, %s9195_s11 }
0x2341   : > { %v4013_v33 = vpop.permute.xlu0 %4012 }
0x2342   : > { %8486 = vmatmul.mubr.msk.f32.vlgmr.msra.gmra.mxu1 %vm1498_vm2, %v4013_v33 }
0x2343   : > { %8489 = vmatpush3.msra.mxu1 %v9778_v51  ;;  %8504 = vmatprep.mubr.msk.f32.mxu1 %vm9192_vm0, %v9191_v0 }
0x2344   : > { %8490 = vmatprep.subr.mxu1 %v9191_v0 }
0x2345   : > { %8491 = vmatpush3.msra.mxu1 %v9785_v52 }
0x2346   : > { %8492 = vmatprep.subr.mxu1 %v9191_v0 }
0x2347   : > { %8493 = vmatpush3.msra.mxu1 %v9790_v53  ;;  %v10131_v53 = vld [vmem:[%s9378_s18 + $0x10] sm:$0xff] }
0x2348   : > { %8494 = vmatprep.subr.mxu1 %v9191_v0 }
0x2349   : > { %8495 = vmatpush3.msra.mxu1 %v9796_v56 }
0x234a   : > { %8496 = vmatprep.subr.mxu1 %v9191_v0 }
0x234b   : > { %8497 = vmatpush3.msra.mxu1 %v9809_v58 }
0x234c   : > { %8498 = vmatprep.subr.mxu1 %v9191_v0 }
0x234d   : > { %8499 = vmatpush3.msra.mxu1 %v9816_v59  ;;  %v4017_v51 = vpop.permute.xlu1 %4016 }
0x234e   : > { %8500 = vmatprep.subr.mxu1 %v9191_v0  ;;  %v4019_v52 = vsel %vm1498_vm2, %v4013_v33, %v4017_v51 }
0x234f   : > { %8501 = vmatpush3.msra.mxu1 %v9826_v61  ;;  %8475 = vmatmul.mubr.msk.f32.vlgmr.msra.gmra.mxu0 %vm1607_vm3, %v4019_v52 }
0x2350   : > { %8502 = vmatprep.subr.mxu1 %v9191_v0  ;;  %8508 = vmatpush3.msra.mxu0 %v9802_v57 }
0x2351   : > { %8515 = vmatprep.mubr.msk.f32.mxu0 %vm9192_vm0, %v9191_v0  ;;  %8509 = vmatprep.subr.mxu0 %v9191_v0 }
0x2352   : > { %8503 = vmatpush3.msra.mxu1 %v9835_v63  ;;  %8510 = vmatpush3.msra.mxu0 %v10131_v53 }
0x2353   : > { %8537 = vmatprep.subr.mxu1 %v9191_v0  ;;  %8511 = vmatprep.subr.mxu0 %v9191_v0 }
0x2354   : > { %8512 = vmatpush3.msra.mxu0 %v9820_v60 }
0x2355   : > { %8513 = vmatprep.subr.mxu0 %v9191_v0 }
0x2356   : > { %8514 = vmatpush3.msra.mxu0 %v9830_v62 }
0x2357   : > { %8518 = vmatprep.subr.mxu0 %v9191_v0 }
0x2402   : > { %v4184_v56 = vpop.f32.mrf.mxu1 }
0x2403   : > { %v4188_v57 = vadd.f32 %v4184_v56, %v9419_v9 }
0x2404   : > { %v8487_v58 = vpop.f32.mrf.mxu1 }
0x2405   : > { %8997 = vtanh.f32 %v4188_v57  ;;  %v4189_v19 = vsub.f32 0.0, %v4188_v57 }
0x2407   : > { %v4190_v62 = vmul.f32 1.442695, %v4189_v19 }
0x240f   : > { %v4089_v59 = vpop.f32.mrf.mxu0 }
0x2410   : > { %v4090_v61 = vadd.f32 %v9891_v44, %v4089_v59 }
0x2411   : > { %v8476_v18 = vpop.f32.mrf.mxu0 }
0x2412   : > { %v8998_v63 = vpop.eup %8997  ;;  %8999 = vtanh.f32 %v4090_v61  ;;  %v4093_v20 = vsub.f32 0.0, %v4090_v61 }
0x2413   : > { %4197 = vrot.lane.b32.xlu1 %v8998_v63, %s9193_s28  ;;  %9001 = vpow2.f32 %v4190_v62 }
0x2414   : > { %v4094_v21 = vmul.f32 1.442695, %v4093_v20 }
0x2416   : > { %9003 = vpow2.f32 %v4094_v21 }
0x241f   : > { %v9000_v60 = vpop.eup %8999 }
0x2420   : > { %4101 = vrot.lane.b32.xlu0 %v9000_v60, %s9193_s28  ;;  %v9002_v22 = vpop.eup %9001 }
0x2421   : > { %v4192_v23 = vadd.f32 1.0, %v9002_v22 }
0x2423   : > { %9005 = vrcp.f32 %v4192_v23  ;;  %v9004_v24 = vpop.eup %9003 }
0x2424   : > { %v4096_v30 = vadd.f32 1.0, %v9004_v24 }
0x2426   : > { %9007 = vrcp.f32 %v4096_v30 }
0x2430   : > { %v9006_v34 = vpop.eup %9005 }
0x2431   : > { %v4195_v40 = vmul.f32 %v9006_v34, %v10095_v1  ;;  %v10218_v1 = vld [vmem:[%s9378_s18] sm:$0xff]  ;;  %s1304_s18 = scalar_lea.vmem %s9235_s29, %s10891_s16 }
0x2433   : > { %v9008_v37 = vpop.eup %9007 }
0x2434   : > { %v4099_v43 = vmul.f32 %v9008_v37, %v10099_v27 }
0x2485   : > { %v4198_v35 = vpop.permute.xlu1 %4197 }
0x2486   : > { %v4200_v36 = vmul.f32 %v9006_v34, %v4198_v35 }
0x2488   : > { %4202 = vrot.lane.b32.xlu1 %v4200_v36, %s9193_s28 }
0x2492   : > { %v4102_v39 = vpop.permute.xlu0 %4101 }
0x2493   : > { %v4104_v2 = vmul.f32 %v9008_v37, %v4102_v39 }
0x2495   : > { %4106 = vrot.lane.b32.xlu0 %v4104_v2, %s9193_s28 }
0x24fa   : > { %v4203_v41 = vpop.permute.xlu1 %4202 }
0x24fb   : > { %v10147_v42 = vadd.f32 %v4203_v41, %v4195_v40 }
0x24fd   : > { %9009 = vtanh.f32 %v10147_v42 }
0x2507   : > { %v4107_v25 = vpop.permute.xlu0 %4106 }
0x2508   : > { %v10151_v45 = vadd.f32 %v4107_v25, %v4099_v43 }
0x250a   : > { %v9010_v46 = vpop.eup %9009  ;;  %9011 = vtanh.f32 %v10151_v45 }
0x250b   : > { %4208 = vrot.lane.b32.xlu1 %v9010_v46, %s9193_s28 }
0x2517   : > { %v9012_v47 = vpop.eup %9011 }
0x2518   : > { %4112 = vrot.lane.b32.xlu0 %v9012_v47, %s9193_s28  ;;  %v10273_v47 = vld [vmem:[%s9506_s10] ss:$0 sm:$0xff]  ;;  %s1323_s10 = scalar_lea.vmem %s9260_s24, %s10891_s16 }
0x257d   : > { %v4209_v48 = vpop.permute.xlu1 %4208 }
0x257e   : > { %v4211_v49 = vmul.f32 %v9006_v34, %v4209_v48 }
0x2580   : > { %4213 = vrot.lane.b32.xlu0 %v4211_v49, %s9194_s7 }
0x258a   : > { %v4113_v50 = vpop.permute.xlu0 %4112 }
0x258b   : > { %v4115_v54 = vmul.f32 %v9008_v37, %v4113_v50 }
0x258d   : > { %4217 = vrot.lane.b32.xlu1 %v4115_v54, %s9195_s11 }
0x25f2   : > { %v4214_v55 = vpop.permute.xlu0 %4213 }
0x25f3   : > { %8516 = vmatmul.mubr.msk.f32.vlgmr.msra.gmra.mxu0 %vm1498_vm2, %v4214_v55 }
0x25f4   : > { %8519 = vmatpush3.msra.mxu0 %v10160_v3  ;;  %8534 = vmatprep.mubr.msk.f32.mxu0 %vm9192_vm0, %v9191_v0 }
0x25f5   : > { %8520 = vmatprep.subr.mxu0 %v9191_v0 }
0x25f6   : > { %8521 = vmatpush3.msra.mxu0 %v10167_v4 }
0x25f7   : > { %8522 = vmatprep.subr.mxu0 %v9191_v0 }
0x25f8   : > { %8523 = vmatpush3.msra.mxu0 %v10172_v7 }
0x25f9   : > { %8524 = vmatprep.subr.mxu0 %v9191_v0 }
0x25fa   : > { %8525 = vmatpush3.msra.mxu0 %v10177_v8 }
0x25fb   : > { %8526 = vmatprep.subr.mxu0 %v9191_v0 }
0x25fc   : > { %8527 = vmatpush3.msra.mxu0 %v10182_v10 }
0x25fd   : > { %8528 = vmatprep.subr.mxu0 %v9191_v0 }
0x25fe   : > { %8529 = vmatpush3.msra.mxu0 %v10187_v11 }
0x25ff   : > { %8530 = vmatprep.subr.mxu0 %v9191_v0  ;;  %v4218_v12 = vpop.permute.xlu1 %4217 }
0x2600   : > { %8531 = vmatpush3.msra.mxu0 %v10192_v13  ;;  %v4220_v14 = vsel %vm1498_vm2, %v4214_v55, %v4218_v12 }
0x2601   : > { %8532 = vmatprep.subr.mxu0 %v9191_v0  ;;  %8505 = vmatmul.mubr.msk.f32.vlgmr.msra.gmra.mxu1 %vm1607_vm3, %v4220_v14 }
0x2602   : > { %8533 = vmatpush3.msra.mxu0 %v10199_v15  ;;  %8538 = vmatpush3.msra.mxu1 %v10203_v16 }
0x2603   : > { %8545 = vmatprep.mubr.msk.f32.mxu1 %vm9192_vm0, %v9191_v0  ;;  %8539 = vmatprep.subr.mxu1 %v9191_v0 }
0x2604   : > { %8567 = vmatprep.subr.mxu0 %v9191_v0  ;;  %8540 = vmatpush3.msra.mxu1 %v10131_v53 }
0x2605   : > { %8541 = vmatprep.subr.mxu1 %v9191_v0 }
0x2606   : > { %8542 = vmatpush3.msra.mxu1 %v10213_v17 }
0x2607   : > { %8543 = vmatprep.subr.mxu1 %v9191_v0 }
0x2608   : > { %8544 = vmatpush3.msra.mxu1 %v10218_v1 }
0x2609   : > { %8548 = vmatprep.subr.mxu1 %v9191_v0 }
0x26b3   : > { %v4385_v5 = vpop.f32.mrf.mxu0 }
0x26b4   : > { %v4389_v26 = vadd.f32 %v4385_v5, %v9419_v9 }
0x26b5   : > { %v8517_v27 = vpop.f32.mrf.mxu0 }
0x26b6   : > { %9013 = vtanh.f32 %v4389_v26  ;;  %v4390_v32 = vsub.f32 0.0, %v4389_v26 }
0x26b8   : > { %v4391_v33 = vmul.f32 1.442695, %v4390_v32 }
0x26c1   : > { %v4290_v38 = vpop.f32.mrf.mxu1 }
0x26c2   : > { %v4291_v29 = vadd.f32 %v9891_v44, %v4290_v38 }
0x26c3   : > { %v9014_v28 = vpop.eup %9013  ;;  %v8506_v6 = vpop.f32.mrf.mxu1 }
0x26c4   : > { %4398 = vrot.lane.b32.xlu1 %v9014_v28, %s9193_s28  ;;  %9015 = vtanh.f32 %v4291_v29  ;;  %v4294_v51 = vsub.f32 0.0, %v4291_v29 }
0x26c5   : > { %9017 = vpow2.f32 %v4391_v33 }
0x26c6   : > { %v4295_v52 = vmul.f32 1.442695, %v4294_v51 }
0x26c8   : > { %9019 = vpow2.f32 %v4295_v52 }
0x26d1   : > { %v9016_v31 = vpop.eup %9015 }
0x26d2   : > { %4302 = vrot.lane.b32.xlu0 %v9016_v31, %s9193_s28  ;;  %v9018_v56 = vpop.eup %9017 }
0x26d3   : > { %v4393_v57 = vadd.f32 1.0, %v9018_v56 }
0x26d5   : > { %9021 = vrcp.f32 %v4393_v57  ;;  %v9020_v58 = vpop.eup %9019 }
0x26d6   : > { %v4297_v59 = vadd.f32 1.0, %v9020_v58 }
0x26d8   : > { %9023 = vrcp.f32 %v4297_v59 }
0x26e2   : > { %v9022_v61 = vpop.eup %9021 }
0x26e3   : > { %v4396_v62 = vmul.f32 %v9022_v61, %v10147_v42 }
0x26e5   : > { %v9024_v18 = vpop.eup %9023 }
0x26e6   : > { %v4300_v22 = vmul.f32 %v9024_v18, %v10151_v45 }
0x2736   : > { %v4399_v44 = vpop.permute.xlu1 %4398 }
0x2737   : > { %v4401_v63 = vmul.f32 %v9022_v61, %v4399_v44 }
0x2739   : > { %4403 = vrot.lane.b32.xlu1 %v4401_v63, %s9193_s28 }
0x2744   : > { %v4303_v60 = vpop.permute.xlu0 %4302 }
0x2745   : > { %v4305_v19 = vmul.f32 %v9024_v18, %v4303_v60 }
0x2747   : > { %4307 = vrot.lane.b32.xlu0 %v4305_v19, %s9193_s28 }
0x27ab   : > { %v4404_v20 = vpop.permute.xlu1 %4403 }
0x27ac   : > { %v10229_v21 = vadd.f32 %v4404_v20, %v4396_v62 }
0x27ae   : > { %9025 = vtanh.f32 %v10229_v21 }
0x27b9   : > { %v4308_v23 = vpop.permute.xlu0 %4307 }
0x27ba   : > { %v10233_v30 = vadd.f32 %v4308_v23, %v4300_v22 }
0x27bb   : > { %v9026_v24 = vpop.eup %9025 }
0x27bc   : > { %4409 = vrot.lane.b32.xlu1 %v9026_v24, %s9193_s28  ;;  %9027 = vtanh.f32 %v10233_v30 }
0x27c9   : > { %v9028_v34 = vpop.eup %9027 }
0x27ca   : > { %4313 = vrot.lane.b32.xlu0 %v9028_v34, %s9193_s28 }
0x282e   : > { %v4410_v35 = vpop.permute.xlu1 %4409 }
0x282f   : > { %v4412_v36 = vmul.f32 %v9022_v61, %v4410_v35 }
0x2831   : > { %4414 = vrot.lane.b32.xlu0 %v4412_v36, %s9194_s7 }
0x283c   : > { %v4314_v37 = vpop.permute.xlu0 %4313 }
0x283d   : > { %v4316_v39 = vmul.f32 %v9024_v18, %v4314_v37 }
0x283f   : > { %4418 = vrot.lane.b32.xlu1 %v4316_v39, %s9195_s11 }
0x28a3   : > { %v4415_v2 = vpop.permute.xlu0 %4414 }
0x28a4   : > { %8546 = vmatmul.mubr.msk.f32.vlgmr.msra.gmra.mxu1 %vm1498_vm2, %v4415_v2 }
0x28a5   : > { %8549 = vmatpush3.msra.mxu1 %v10160_v3  ;;  %8564 = vmatprep.mubr.msk.f32.mxu1 %vm9192_vm0, %v9191_v0 }
0x28a6   : > { %8550 = vmatprep.subr.mxu1 %v9191_v0 }
0x28a7   : > { %8551 = vmatpush3.msra.mxu1 %v10167_v4 }
0x28a8   : > { %8552 = vmatprep.subr.mxu1 %v9191_v0 }
0x28a9   : > { %8553 = vmatpush3.msra.mxu1 %v10172_v7 }
0x28aa   : > { %8554 = vmatprep.subr.mxu1 %v9191_v0 }
0x28ab   : > { %8555 = vmatpush3.msra.mxu1 %v10177_v8 }
0x28ac   : > { %8556 = vmatprep.subr.mxu1 %v9191_v0 }
0x28ad   : > { %8557 = vmatpush3.msra.mxu1 %v10182_v10 }
0x28ae   : > { %8558 = vmatprep.subr.mxu1 %v9191_v0 }
0x28af   : > { %8559 = vmatpush3.msra.mxu1 %v10187_v11 }
0x28b0   : > { %8560 = vmatprep.subr.mxu1 %v9191_v0 }
0x28b1   : > { %8561 = vmatpush3.msra.mxu1 %v10192_v13  ;;  %v4419_v40 = vpop.permute.xlu1 %4418 }
0x28b2   : > { %8562 = vmatprep.subr.mxu1 %v9191_v0  ;;  %v4421_v41 = vsel %vm1498_vm2, %v4415_v2, %v4419_v40 }
0x28b3   : > { %8563 = vmatpush3.msra.mxu1 %v10199_v15  ;;  %8535 = vmatmul.mubr.msk.f32.vlgmr.msra.gmra.mxu0 %vm1607_vm3, %v4421_v41 }
0x28b4   : > { %8597 = vmatprep.subr.mxu1 %v9191_v0  ;;  %8568 = vmatpush3.msra.mxu0 %v10203_v16 }
0x28b5   : > { %8575 = vmatprep.mubr.msk.f32.mxu0 %vm9192_vm0, %v9191_v0  ;;  %8569 = vmatprep.subr.mxu0 %v9191_v0 }
0x28b6   : > { %8570 = vmatpush3.msra.mxu0 %v10131_v53 }
0x28b7   : > { %8571 = vmatprep.subr.mxu0 %v9191_v0 }
0x28b8   : > { %8572 = vmatpush3.msra.mxu0 %v10213_v17 }
0x28b9   : > { %8573 = vmatprep.subr.mxu0 %v9191_v0 }
0x28ba   : > { %8574 = vmatpush3.msra.mxu0 %v10218_v1 }
0x28bb   : > { %8578 = vmatprep.subr.mxu0 %v9191_v0 }
0x2964   : > { %v4586_v42 = vpop.f32.mrf.mxu1 }
0x2965   : > { %v4590_v43 = vadd.f32 %v4586_v42, %v9419_v9 }
0x2966   : > { %v8547_v25 = vpop.f32.mrf.mxu1 }
0x2967   : > { %9029 = vtanh.f32 %v4590_v43  ;;  %v4591_v54 = vsub.f32 0.0, %v4590_v43 }
0x2969   : > { %v4592_v55 = vmul.f32 1.442695, %v4591_v54 }
0x2973   : > { %v4491_v46 = vpop.f32.mrf.mxu0 }
0x2974   : > { %v9030_v45 = vpop.eup %9029  ;;  %v4492_v48 = vadd.f32 %v10273_v47, %v4491_v46 }
0x2975   : > { %4599 = vrot.lane.b32.xlu1 %v9030_v45, %s9193_s28  ;;  %v8536_v49 = vpop.f32.mrf.mxu0 }
0x2976   : > { %9031 = vtanh.f32 %v4492_v48  ;;  %v4495_v12 = vsub.f32 0.0, %v4492_v48 }
0x2977   : > { %9033 = vpow2.f32 %v4592_v55 }
0x2978   : > { %v4496_v14 = vmul.f32 1.442695, %v4495_v12 }
0x297a   : > { %9035 = vpow2.f32 %v4496_v14 }
0x2983   : > { %v9032_v50 = vpop.eup %9031 }
0x2984   : > { %4503 = vrot.lane.b32.xlu0 %v9032_v50, %s9193_s28  ;;  %v9034_v5 = vpop.eup %9033 }
0x2985   : > { %v4594_v26 = vadd.f32 1.0, %v9034_v5 }
0x2987   : > { %9037 = vrcp.f32 %v4594_v26  ;;  %v9036_v27 = vpop.eup %9035 }
0x2988   : > { %v4498_v38 = vadd.f32 1.0, %v9036_v27 }
0x298a   : > { %9039 = vrcp.f32 %v4498_v38 }
0x2994   : > { %v9038_v28 = vpop.eup %9037 }
0x2995   : > { %v4597_v51 = vmul.f32 %v9038_v28, %v10229_v21 }
0x2997   : > { %v9040_v31 = vpop.eup %9039 }
0x2998   : > { %v4501_v57 = vmul.f32 %v9040_v31, %v10233_v30 }
0x29e7   : > { %v4600_v29 = vpop.permute.xlu1 %4599 }
0x29e8   : > { %v4602_v6 = vmul.f32 %v9038_v28, %v4600_v29 }
0x29ea   : > { %4604 = vrot.lane.b32.xlu1 %v4602_v6, %s9193_s28 }
0x29f6   : > { %v4504_v32 = vpop.permute.xlu0 %4503 }
0x29f7   : > { %v4506_v33 = vmul.f32 %v9040_v31, %v4504_v32 }
0x29f9   : > { %4508 = vrot.lane.b32.xlu0 %v4506_v33, %s9193_s28 }
0x2a5c   : > { %v4605_v52 = vpop.permute.xlu1 %4604 }
0x2a5d   : > { %v10281_v56 = vadd.f32 %v4605_v52, %v4597_v51 }
0x2a5f   : > { %9041 = vtanh.f32 %v10281_v56 }
0x2a6b   : > { %v4509_v59 = vpop.permute.xlu0 %4508 }
0x2a6c   : > { %v9042_v58 = vpop.eup %9041  ;;  %v10285_v61 = vadd.f32 %v4509_v59, %v4501_v57 }
0x2a6d   : > { %4610 = vrot.lane.b32.xlu1 %v9042_v58, %s9193_s28 }
0x2a6e   : > { %9043 = vtanh.f32 %v10285_v61 }
0x2a7b   : > { %v9044_v44 = vpop.eup %9043 }
0x2a7c   : > { %4514 = vrot.lane.b32.xlu0 %v9044_v44, %s9193_s28 }
0x2adf   : > { %v4611_v63 = vpop.permute.xlu1 %4610 }
0x2ae0   : > { %v4613_v18 = vmul.f32 %v9038_v28, %v4611_v63 }
0x2ae2   : > { %4615 = vrot.lane.b32.xlu0 %v4613_v18, %s9194_s7 }
0x2aee   : > { %v4515_v60 = vpop.permute.xlu0 %4514 }
0x2aef   : > { %v4517_v19 = vmul.f32 %v9040_v31, %v4515_v60 }
0x2af1   : > { %4619 = vrot.lane.b32.xlu1 %v4517_v19, %s9195_s11 }
0x2b54   : > { %v4616_v62 = vpop.permute.xlu0 %4615 }
0x2b55   : > { %8576 = vmatmul.mubr.msk.f32.vlgmr.msra.gmra.mxu0 %vm1498_vm2, %v4616_v62 }
0x2b56   : > { %8579 = vmatpush3.msra.mxu0 %v10160_v3  ;;  %8594 = vmatprep.mubr.msk.f32.mxu0 %vm9192_vm0, %v9191_v0 }
0x2b57   : > { %8580 = vmatprep.subr.mxu0 %v9191_v0 }
0x2b58   : > { %8581 = vmatpush3.msra.mxu0 %v10167_v4 }
0x2b59   : > { %8582 = vmatprep.subr.mxu0 %v9191_v0 }
0x2b5a   : > { %8583 = vmatpush3.msra.mxu0 %v10172_v7 }
0x2b5b   : > { %8584 = vmatprep.subr.mxu0 %v9191_v0 }
0x2b5c   : > { %8585 = vmatpush3.msra.mxu0 %v10177_v8 }
0x2b5d   : > { %8586 = vmatprep.subr.mxu0 %v9191_v0 }
0x2b5e   : > { %8587 = vmatpush3.msra.mxu0 %v10182_v10 }
0x2b5f   : > { %8588 = vmatprep.subr.mxu0 %v9191_v0 }
0x2b60   : > { %8589 = vmatpush3.msra.mxu0 %v10187_v11 }
0x2b61   : > { %8590 = vmatprep.subr.mxu0 %v9191_v0 }
0x2b62   : > { %8591 = vmatpush3.msra.mxu0 %v10192_v13 }
0x2b63   : > { %8592 = vmatprep.subr.mxu0 %v9191_v0  ;;  %v4620_v20 = vpop.permute.xlu1 %4619 }
0x2b64   : > { %8593 = vmatpush3.msra.mxu0 %v10199_v15  ;;  %v4622_v21 = vsel %vm1498_vm2, %v4616_v62, %v4620_v20 }
0x2b65   : > { %8627 = vmatprep.subr.mxu0 %v9191_v0  ;;  %8565 = vmatmul.mubr.msk.f32.vlgmr.msra.gmra.mxu1 %vm1607_vm3, %v4622_v21 }
0x2b66   : > { %8598 = vmatpush3.msra.mxu1 %v10203_v16  ;;  %8605 = vmatprep.mubr.msk.f32.mxu1 %vm9192_vm0, %v9191_v0 }
0x2b67   : > { %8599 = vmatprep.subr.mxu1 %v9191_v0 }
0x2b68   : > { %8600 = vmatpush3.msra.mxu1 %v10131_v53 }
0x2b69   : > { %8601 = vmatprep.subr.mxu1 %v9191_v0 }
0x2b6a   : > { %8602 = vmatpush3.msra.mxu1 %v10213_v17 }
0x2b6b   : > { %8603 = vmatprep.subr.mxu1 %v9191_v0 }
0x2b6c   : > { %8604 = vmatpush3.msra.mxu1 %v10218_v1 }
0x2b6d   : > { %8608 = vmatprep.subr.mxu1 %v9191_v0 }
0x2c15   : > { %v4787_v22 = vpop.f32.mrf.mxu0 }
0x2c16   : > { %v4791_v23 = vadd.f32 %v4787_v22, %v9419_v9 }
0x2c17   : > { %v8577_v24 = vpop.f32.mrf.mxu0 }
0x2c18   : > { %9045 = vtanh.f32 %v4791_v23  ;;  %v4792_v39 = vsub.f32 0.0, %v4791_v23 }
0x2c1a   : > { %v4793_v2 = vmul.f32 1.442695, %v4792_v39 }
0x2c25   : > { %v9046_v30 = vpop.eup %9045  ;;  %v4692_v34 = vpop.f32.mrf.mxu1 }
0x2c26   : > { %4800 = vrot.lane.b32.xlu1 %v9046_v30, %s9193_s28  ;;  %v4693_v35 = vadd.f32 %v10273_v47, %v4692_v34 }
0x2c27   : > { %v8566_v36 = vpop.f32.mrf.mxu1 }
0x2c28   : > { %9047 = vtanh.f32 %v4693_v35  ;;  %v4696_v40 = vsub.f32 0.0, %v4693_v35 }
0x2c29   : > { %9049 = vpow2.f32 %v4793_v2 }
0x2c2a   : > { %v4697_v42 = vmul.f32 1.442695, %v4696_v40 }
0x2c2c   : > { %9051 = vpow2.f32 %v4697_v42 }
0x2c35   : > { %v9048_v37 = vpop.eup %9047 }
0x2c36   : > { %4704 = vrot.lane.b32.xlu0 %v9048_v37, %s9193_s28  ;;  %v9050_v41 = vpop.eup %9049 }
0x2c37   : > { %v4795_v43 = vadd.f32 1.0, %v9050_v41 }
0x2c39   : > { %9053 = vrcp.f32 %v4795_v43  ;;  %v9052_v25 = vpop.eup %9051 }
0x2c3a   : > { %v4699_v46 = vadd.f32 1.0, %v9052_v25 }
0x2c3c   : > { %9055 = vrcp.f32 %v4699_v46 }
0x2c46   : > { %v9054_v45 = vpop.eup %9053 }
0x2c47   : > { %v4798_v12 = vmul.f32 %v9054_v45, %v10281_v56 }
0x2c49   : > { %v9056_v50 = vpop.eup %9055 }
0x2c4a   : > { %v4702_v27 = vmul.f32 %v9056_v50, %v10285_v61 }
0x2c98   : > { %v4801_v48 = vpop.permute.xlu1 %4800 }
0x2c99   : > { %v4803_v49 = vmul.f32 %v9054_v45, %v4801_v48 }
0x2c9b   : > { %4805 = vrot.lane.b32.xlu1 %v4803_v49, %s9193_s28 }
0x2ca8   : > { %v4705_v54 = vpop.permute.xlu0 %4704 }
0x2ca9   : > { %v4707_v55 = vmul.f32 %v9056_v50, %v4705_v54 }
0x2cab   : > { %4709 = vrot.lane.b32.xlu0 %v4707_v55, %s9193_s28 }
0x2d0d   : > { %v4806_v14 = vpop.permute.xlu1 %4805 }
0x2d0e   : > { %v10330_v5 = vadd.f32 %v4806_v14, %v4798_v12 }
0x2d10   : > { %9057 = vtanh.f32 %v10330_v5 }
0x2d1d   : > { %v9058_v26 = vpop.eup %9057  ;;  %v4710_v38 = vpop.permute.xlu0 %4709 }
0x2d1e   : > { %4811 = vrot.lane.b32.xlu1 %v9058_v26, %s9193_s28  ;;  %v10335_v28 = vadd.f32 %v4710_v38, %v4702_v27 }
0x2d20   : > { %9059 = vtanh.f32 %v10335_v28 }
0x2d2d   : > { %v9060_v29 = vpop.eup %9059 }
0x2d2e   : > { %4715 = vrot.lane.b32.xlu0 %v9060_v29, %s9193_s28 }
0x2d90   : > { %v4812_v6 = vpop.permute.xlu1 %4811 }
0x2d91   : > { %v4814_v31 = vmul.f32 %v9054_v45, %v4812_v6 }
0x2d93   : > { %4816 = vrot.lane.b32.xlu0 %v4814_v31, %s9194_s7 }
0x2da0   : > { %v4716_v32 = vpop.permute.xlu0 %4715 }
0x2da1   : > { %v4718_v33 = vmul.f32 %v9056_v50, %v4716_v32 }
0x2da3   : > { %4820 = vrot.lane.b32.xlu1 %v4718_v33, %s9195_s11 }
0x2e05   : > { %v4817_v51 = vpop.permute.xlu0 %4816 }
0x2e06   : > { %8606 = vmatmul.mubr.msk.f32.vlgmr.msra.gmra.mxu1 %vm1498_vm2, %v4817_v51 }
0x2e07   : > { %8609 = vmatpush3.msra.mxu1 %v10160_v3  ;;  %8624 = vmatprep.mubr.msk.f32.mxu1 %vm9192_vm0, %v9191_v0 }
0x2e08   : > { %8610 = vmatprep.subr.mxu1 %v9191_v0 }
0x2e09   : > { %8611 = vmatpush3.msra.mxu1 %v10167_v4 }
0x2e0a   : > { %8612 = vmatprep.subr.mxu1 %v9191_v0 }
0x2e0b   : > { %8613 = vmatpush3.msra.mxu1 %v10172_v7 }
0x2e0c   : > { %8614 = vmatprep.subr.mxu1 %v9191_v0 }
0x2e0d   : > { %8615 = vmatpush3.msra.mxu1 %v10177_v8 }
0x2e0e   : > { %8616 = vmatprep.subr.mxu1 %v9191_v0 }
0x2e0f   : > { %8617 = vmatpush3.msra.mxu1 %v10182_v10 }
0x2e10   : > { %8618 = vmatprep.subr.mxu1 %v9191_v0 }
0x2e11   : > { %8619 = vmatpush3.msra.mxu1 %v10187_v11 }
0x2e12   : > { %8620 = vmatprep.subr.mxu1 %v9191_v0 }
0x2e13   : > { %8621 = vmatpush3.msra.mxu1 %v10192_v13 }
0x2e14   : > { %8622 = vmatprep.subr.mxu1 %v9191_v0 }
0x2e15   : > { %8623 = vmatpush3.msra.mxu1 %v10199_v15  ;;  %v4821_v52 = vpop.permute.xlu1 %4820 }
0x2e16   : > { %8657 = vmatprep.subr.mxu1 %v9191_v0  ;;  %v4823_v56 = vsel %vm1498_vm2, %v4817_v51, %v4821_v52 }
0x2e17   : > { %8595 = vmatmul.mubr.msk.f32.vlgmr.msra.gmra.mxu0 %vm1607_vm3, %v4823_v56 }
0x2e18   : > { %8628 = vmatpush3.msra.mxu0 %v10203_v16  ;;  %8635 = vmatprep.mubr.msk.f32.mxu0 %vm9192_vm0, %v9191_v0 }
0x2e19   : > { %8629 = vmatprep.subr.mxu0 %v9191_v0 }
0x2e1a   : > { %8630 = vmatpush3.msra.mxu0 %v10131_v53 }
0x2e1b   : > { %8631 = vmatprep.subr.mxu0 %v9191_v0 }
0x2e1c   : > { %8632 = vmatpush3.msra.mxu0 %v10213_v17 }
0x2e1d   : > { %8633 = vmatprep.subr.mxu0 %v9191_v0 }
0x2e1e   : > { %8634 = vmatpush3.msra.mxu0 %v10218_v1 }
0x2e1f   : > { %8638 = vmatprep.subr.mxu0 %v9191_v0 }
0x2ec6   : > { %v4988_v57 = vpop.f32.mrf.mxu1 }
0x2ec7   : > { %v4992_v58 = vadd.f32 %v4988_v57, %v9419_v9 }
0x2ec8   : > { %v8607_v59 = vpop.f32.mrf.mxu1 }
0x2ec9   : > { %9061 = vtanh.f32 %v4992_v58  ;;  %v4993_v19 = vsub.f32 0.0, %v4992_v58 }
0x2ecb   : > { %v4994_v62 = vmul.f32 1.442695, %v4993_v19 }
0x2ed6   : > { %v9062_v61 = vpop.eup %9061 }
0x2ed7   : > { %5001 = vrot.lane.b32.xlu1 %v9062_v61, %s9193_s28  ;;  %v4893_v44 = vpop.f32.mrf.mxu0 }
0x2ed8   : > { %v4894_v63 = vadd.f32 %v10273_v47, %v4893_v44 }
0x2ed9   : > { %v8596_v18 = vpop.f32.mrf.mxu0 }
0x2eda   : > { %9063 = vtanh.f32 %v4894_v63  ;;  %v4897_v20 = vsub.f32 0.0, %v4894_v63 }
0x2edb   : > { %9065 = vpow2.f32 %v4994_v62 }
0x2edc   : > { %v4898_v22 = vmul.f32 1.442695, %v4897_v20 }
0x2ede   : > { %9067 = vpow2.f32 %v4898_v22 }
0x2ee7   : > { %v9064_v60 = vpop.eup %9063 }
0x2ee8   : > { %4905 = vrot.lane.b32.xlu0 %v9064_v60, %s9193_s28  ;;  %v9066_v21 = vpop.eup %9065 }
0x2ee9   : > { %v4996_v23 = vadd.f32 1.0, %v9066_v21 }
0x2eeb   : > { %9069 = vrcp.f32 %v4996_v23  ;;  %v9068_v24 = vpop.eup %9067 }
0x2eec   : > { %v4900_v35 = vadd.f32 1.0, %v9068_v24 }
0x2eee   : > { %9071 = vrcp.f32 %v4900_v35 }
0x2ef8   : > { %v9070_v30 = vpop.eup %9069 }
0x2ef9   : > { %v4999_v40 = vmul.f32 %v9070_v30, %v10330_v5 }
0x2efb   : > { %v9072_v37 = vpop.eup %9071 }
0x2efc   : > { %v4903_v25 = vmul.f32 %v9072_v37, %v10335_v28 }
0x2f49   : > { %v5002_v34 = vpop.permute.xlu1 %5001 }
0x2f4a   : > { %v5004_v36 = vmul.f32 %v9070_v30, %v5002_v34 }
0x2f4c   : > { %5006 = vrot.lane.b32.xlu1 %v5004_v36, %s9193_s28 }
0x2f5a   : > { %v4906_v39 = vpop.permute.xlu0 %4905 }
0x2f5b   : > { %v4908_v2 = vmul.f32 %v9072_v37, %v4906_v39 }
0x2f5d   : > { %4910 = vrot.lane.b32.xlu0 %v4908_v2, %s9193_s28 }
0x2fbe   : > { %v5007_v41 = vpop.permute.xlu1 %5006 }
0x2fbf   : > { %v10379_v42 = vadd.f32 %v5007_v41, %v4999_v40 }
0x2fc1   : > { %9073 = vtanh.f32 %v10379_v42 }
0x2fce   : > { %v9074_v43 = vpop.eup %9073 }
0x2fcf   : > { %5012 = vrot.lane.b32.xlu1 %v9074_v43, %s9193_s28  ;;  %v4911_v45 = vpop.permute.xlu0 %4910 }
0x2fd0   : > { %v10384_v46 = vadd.f32 %v4911_v45, %v4903_v25 }
0x2fd2   : > { %9075 = vtanh.f32 %v10384_v46 }
0x2fdf   : > { %v9076_v48 = vpop.eup %9075 }
0x2fe0   : > { %4916 = vrot.lane.b32.xlu0 %v9076_v48, %s9193_s28 }
0x3041   : > { %v5013_v49 = vpop.permute.xlu1 %5012 }
0x3042   : > { %v5015_v50 = vmul.f32 %v9070_v30, %v5013_v49 }
0x3044   : > { %5017 = vrot.lane.b32.xlu0 %v5015_v50, %s9194_s7 }
0x3052   : > { %v4917_v54 = vpop.permute.xlu0 %4916 }
0x3053   : > { %v4919_v55 = vmul.f32 %v9072_v37, %v4917_v54 }
0x3055   : > { %5021 = vrot.lane.b32.xlu1 %v4919_v55, %s9195_s11 }
0x30b6   : > { %v5018_v12 = vpop.permute.xlu0 %5017 }
0x30b7   : > { %8636 = vmatmul.mubr.msk.f32.vlgmr.msra.gmra.mxu0 %vm1498_vm2, %v5018_v12 }
0x30b8   : > { %8639 = vmatpush3.msra.mxu0 %v10160_v3  ;;  %8654 = vmatprep.mubr.msk.f32.mxu0 %vm9192_vm0, %v9191_v0 }
0x30b9   : > { %8640 = vmatprep.subr.mxu0 %v9191_v0 }
0x30ba   : > { %8641 = vmatpush3.msra.mxu0 %v10167_v4 }
0x30bb   : > { %8642 = vmatprep.subr.mxu0 %v9191_v0 }
0x30bc   : > { %8643 = vmatpush3.msra.mxu0 %v10172_v7 }
0x30bd   : > { %8644 = vmatprep.subr.mxu0 %v9191_v0 }
0x30be   : > { %8645 = vmatpush3.msra.mxu0 %v10177_v8 }
0x30bf   : > { %8646 = vmatprep.subr.mxu0 %v9191_v0 }
0x30c0   : > { %8647 = vmatpush3.msra.mxu0 %v10182_v10 }
0x30c1   : > { %8648 = vmatprep.subr.mxu0 %v9191_v0 }
0x30c2   : > { %8649 = vmatpush3.msra.mxu0 %v10187_v11 }
0x30c3   : > { %8650 = vmatprep.subr.mxu0 %v9191_v0 }
0x30c4   : > { %8651 = vmatpush3.msra.mxu0 %v10192_v13 }
0x30c5   : > { %8652 = vmatprep.subr.mxu0 %v9191_v0 }
0x30c6   : > { %8653 = vmatpush3.msra.mxu0 %v10199_v15 }
0x30c7   : > { %8687 = vmatprep.subr.mxu0 %v9191_v0  ;;  %v5022_v14 = vpop.permute.xlu1 %5021 }
0x30c8   : > { %v5024_v5 = vsel %vm1498_vm2, %v5018_v12, %v5022_v14 }
0x30c9   : > { %8625 = vmatmul.mubr.msk.f32.vlgmr.msra.gmra.mxu1 %vm1607_vm3, %v5024_v5 }
0x30ca   : > { %8658 = vmatpush3.msra.mxu1 %v10203_v16  ;;  %8665 = vmatprep.mubr.msk.f32.mxu1 %vm9192_vm0, %v9191_v0 }
0x30cb   : > { %8659 = vmatprep.subr.mxu1 %v9191_v0 }
0x30cc   : > { %8660 = vmatpush3.msra.mxu1 %v10131_v53 }
0x30cd   : > { %8661 = vmatprep.subr.mxu1 %v9191_v0 }
0x30ce   : > { %8662 = vmatpush3.msra.mxu1 %v10213_v17 }
0x30cf   : > { %8663 = vmatprep.subr.mxu1 %v9191_v0 }
0x30d0   : > { %8664 = vmatpush3.msra.mxu1 %v10218_v1 }
0x30d1   : > { %8668 = vmatprep.subr.mxu1 %v9191_v0 }
0x3177   : > { %v5189_v26 = vpop.f32.mrf.mxu0 }
0x3178   : > { %v5193_v16 = vadd.f32 %v5189_v26, %v9419_v9 }
0x3179   : > { %v8637_v27 = vpop.f32.mrf.mxu0 }
0x317a   : > { %9077 = vtanh.f32 %v5193_v16  ;;  %v5194_v6 = vsub.f32 0.0, %v5193_v16 }
0x317c   : > { %v5195_v1 = vmul.f32 1.442695, %v5194_v6 }
0x3187   : > { %v9078_v38 = vpop.eup %9077 }
0x3188   : > { %5202 = vrot.lane.b32.xlu1 %v9078_v38, %s9193_s28 }
0x3189   : > { %v5094_v28 = vpop.f32.mrf.mxu1 }
0x318a   : > { %v5095_v53 = vadd.f32 %v10273_v47, %v5094_v28 }
0x318b   : > { %v8626_v29 = vpop.f32.mrf.mxu1 }
0x318c   : > { %9079 = vtanh.f32 %v5095_v53  ;;  %v5098_v31 = vsub.f32 0.0, %v5095_v53 }
0x318d   : > { %9081 = vpow2.f32 %v5195_v1 }
0x318e   : > { %v5099_v33 = vmul.f32 1.442695, %v5098_v31 }
0x3190   : > { %9083 = vpow2.f32 %v5099_v33 }
0x3199   : > { %v9080_v17 = vpop.eup %9079 }
0x319a   : > { %5106 = vrot.lane.b32.xlu0 %v9080_v17, %s9193_s28  ;;  %v9082_v32 = vpop.eup %9081 }
0x319b   : > { %v5197_v51 = vadd.f32 1.0, %v9082_v32 }
0x319d   : > { %9085 = vrcp.f32 %v5197_v51  ;;  %v9084_v52 = vpop.eup %9083 }
0x319e   : > { %v5101_v59 = vadd.f32 1.0, %v9084_v52 }
0x31a0   : > { %9087 = vrcp.f32 %v5101_v59 }
0x31aa   : > { %v9086_v56 = vpop.eup %9085 }
0x31ab   : > { %v5200_v18 = vmul.f32 %v9086_v56, %v10379_v42 }
0x31ad   : > { %v9088_v61 = vpop.eup %9087 }
0x31ae   : > { %v5104_v20 = vmul.f32 %v9088_v61, %v10384_v46 }
0x31fa   : > { %v5203_v57 = vpop.permute.xlu1 %5202 }
0x31fb   : > { %v5205_v58 = vmul.f32 %v9086_v56, %v5203_v57 }
0x31fd   : > { %5207 = vrot.lane.b32.xlu1 %v5205_v58, %s9193_s28 }
0x320c   : > { %v5107_v44 = vpop.permute.xlu0 %5106 }
0x320d   : > { %v5109_v63 = vmul.f32 %v9088_v61, %v5107_v44 }
0x320f   : > { %5111 = vrot.lane.b32.xlu0 %v5109_v63, %s9193_s28 }
0x326f   : > { %v5208_v60 = vpop.permute.xlu1 %5207 }
0x3270   : > { %v10428_v19 = vadd.f32 %v5208_v60, %v5200_v18 }
0x3272   : > { %9089 = vtanh.f32 %v10428_v19 }
0x327f   : > { %v9090_v62 = vpop.eup %9089 }
0x3280   : > { %5213 = vrot.lane.b32.xlu1 %v9090_v62, %s9193_s28 }
0x3281   : > { %v5112_v21 = vpop.permute.xlu0 %5111 }
0x3282   : > { %v10433_v22 = vadd.f32 %v5112_v21, %v5104_v20 }
0x3284   : > { %9091 = vtanh.f32 %v10433_v22 }
0x3291   : > { %v9092_v23 = vpop.eup %9091 }
0x3292   : > { %5117 = vrot.lane.b32.xlu0 %v9092_v23, %s9193_s28 }
0x32f2   : > { %v5214_v24 = vpop.permute.xlu1 %5213 }
0x32f3   : > { %v5216_v30 = vmul.f32 %v9086_v56, %v5214_v24  ;;  %v7596_v24 = vld [vmem:[%s1304_s18] ss:$0 sm:$0xff]  ;;  %s10878_s18 = sld [smem:[#allocation3_spill]] }
0x32f5   : > { %5218 = vrot.lane.b32.xlu0 %v5216_v30, %s9194_s7 }
0x3304   : > { %v5118_v34 = vpop.permute.xlu0 %5117 }
0x3305   : > { %v5120_v35 = vmul.f32 %v9088_v61, %v5118_v34 }
0x3307   : > { %5222 = vrot.lane.b32.xlu1 %v5120_v35, %s9195_s11 }
0x3367   : > { %v5219_v36 = vpop.permute.xlu0 %5218 }
0x3368   : > { %8666 = vmatmul.mubr.msk.f32.vlgmr.msra.gmra.mxu1 %vm1498_vm2, %v5219_v36 }
0x3369   : > { %8669 = vmatpush3.msra.mxu1 %v10160_v3  ;;  %8684 = vmatprep.mubr.msk.f32.mxu1 %vm9192_vm0, %v9191_v0 }
0x336a   : > { %8670 = vmatprep.subr.mxu1 %v9191_v0 }
0x336b   : > { %8671 = vmatpush3.msra.mxu1 %v10167_v4 }
0x336c   : > { %8672 = vmatprep.subr.mxu1 %v9191_v0 }
0x336d   : > { %8673 = vmatpush3.msra.mxu1 %v10172_v7 }
0x336e   : > { %8674 = vmatprep.subr.mxu1 %v9191_v0 }
0x336f   : > { %8675 = vmatpush3.msra.mxu1 %v10177_v8 }
0x3370   : > { %8676 = vmatprep.subr.mxu1 %v9191_v0 }
0x3371   : > { %8677 = vmatpush3.msra.mxu1 %v10182_v10 }
0x3372   : > { %8678 = vmatprep.subr.mxu1 %v9191_v0 }
0x3373   : > { %8679 = vmatpush3.msra.mxu1 %v10187_v11 }
0x3374   : > { %8680 = vmatprep.subr.mxu1 %v9191_v0 }
0x3375   : > { %8681 = vmatpush3.msra.mxu1 %v10192_v13 }
0x3376   : > { %8682 = vmatprep.subr.mxu1 %v9191_v0 }
0x3377   : > { %8683 = vmatpush3.msra.mxu1 %v10199_v15 }
0x3378   : > { %8709 = vmatprep.subr.mxu1 %v9191_v0 }
0x3379   : > { %v5223_v3 = vpop.permute.xlu1 %5222 }
0x337a   : > { %v5225_v4 = vsel %vm1498_vm2, %v5219_v36, %v5223_v3 }
0x337b   : > { %8655 = vmatmul.mubr.msk.f32.vlgmr.msra.gmra.mxu0 %vm1607_vm3, %v5225_v4 }
0x337c   : > { %8695 = vmatprep.mubr.msk.f32.mxu0 %vm9192_vm0, %v9191_v0 }
0x3428   : > { %v5390_v7 = vpop.f32.mrf.mxu1 }
0x3429   : > { %v5394_v8 = vadd.f32 %v5390_v7, %v9419_v9  ;;  %v7597_v7 = vld [vmem:[%s1307_s22] ss:$0 sm:$0xff]  ;;  %s10879_s22 = sld [smem:[#allocation2_spill]] }
0x342a   : > { %v8667_v10 = vpop.f32.mrf.mxu1 }
0x342b   : > { %9093 = vtanh.f32 %v5394_v8  ;;  %v5395_v2 = vsub.f32 0.0, %v5394_v8  ;;  %v5569_v8 = vld [vmem:[%s1312_s23 + $0x18] sm:$0xff]  ;;  %v5568_v10 = vld [vmem:[%s1312_s23 + $0x10] sm:$0xff] }
0x342c   : > { %8688 = vmatpush3.msra.mxu0 %v5569_v8 }
0x342d   : > { %v5396_v40 = vmul.f32 1.442695, %v5395_v2  ;;  %8689 = vmatprep.subr.mxu0 %v9191_v0 }
0x342e   : > { %8690 = vmatpush3.msra.mxu0 %v5568_v10 }
0x342f   : > { %8691 = vmatprep.subr.mxu0 %v9191_v0 }
0x3438   : > { %v9094_v11 = vpop.eup %9093 }
0x3439   : > { %5403 = vrot.lane.b32.xlu1 %v9094_v11, %s9193_s28  ;;  %v5567_v11 = vld [vmem:[%s1312_s23 + $0x8] sm:$0xff] }
0x343a   : > { %8692 = vmatpush3.msra.mxu0 %v5567_v11 }
0x343b   : > { %v5295_v13 = vpop.f32.mrf.mxu0  ;;  %8693 = vmatprep.subr.mxu0 %v9191_v0 }
0x343c   : > { %v5296_v15 = vadd.f32 %v10273_v47, %v5295_v13  ;;  %v5566_v13 = vld [vmem:[%s1312_s23] sm:$0xff]  ;;  %s1339_s23 = scalar_lea.vmem %s10878_s18, %s10891_s16 }
0x343d   : > { %v8656_v37 = vpop.f32.mrf.mxu0  ;;  %8694 = vmatpush3.msra.mxu0 %v5566_v13 }
0x343e   : > { %9095 = vtanh.f32 %v5296_v15  ;;  %v5299_v42 = vsub.f32 0.0, %v5296_v15  ;;  %8698 = vmatprep.subr.mxu0 %v9191_v0 }
0x343f   : > { %9097 = vpow2.f32 %v5396_v40 }
0x3440   : > { %v5300_v9 = vmul.f32 1.442695, %v5299_v42 }
0x344b   : > { %v9096_v39 = vpop.eup %9095 }
0x344c   : > { %5307 = vrot.lane.b32.xlu0 %v9096_v39, %s9193_s28  ;;  %v9098_v41 = vpop.eup %9097 }
0x344d   : > { %v5398_v43 = vadd.f32 1.0, %v9098_v41 }
0x344f   : > { %9099 = vrcp.f32 %v5398_v43 }
0x3450   : > { %9101 = vpow2.f32 %v5300_v9 }
0x345c   : > { %v9100_v25 = vpop.eup %9099 }
0x345d   : > { %v9102_v46 = vpop.eup %9101  ;;  %v5401_v12 = vmul.f32 %v9100_v25, %v10428_v19 }
0x345e   : > { %v5302_v49 = vadd.f32 1.0, %v9102_v46  ;;  %v5655_v46 = vld [vmem:[%s1320_s26 + $0x10] sm:$0xff] }
0x3460   : > { %9103 = vrcp.f32 %v5302_v49  ;;  %v5653_v49 = vld [vmem:[%s1320_s26] sm:$0xff] }
0x346d   : > { %v9104_v50 = vpop.eup %9103 }
0x346e   : > { %v5305_v16 = vmul.f32 %v9104_v50, %v10433_v22 }
0x34ab   : > { %v5404_v45 = vpop.permute.xlu1 %5403 }
0x34ac   : > { %v5406_v48 = vmul.f32 %v9100_v25, %v5404_v45 }
0x34ae   : > { %5408 = vrot.lane.b32.xlu1 %v5406_v48, %s9193_s28  ;;  %v5654_v48 = vld [vmem:[%s1320_s26 + $0x8] sm:$0xff] }
0x34be   : > { %v5308_v54 = vpop.permute.xlu0 %5307 }
0x34bf   : > { %v5310_v55 = vmul.f32 %v9104_v50, %v5308_v54  ;;  %v7598_v54 = vld [vmem:[%s1315_s1] ss:$0 sm:$0xff]  ;;  %s10881_s1 = sld [smem:[#allocation6_spill]] }
0x34c1   : > { %5312 = vrot.lane.b32.xlu0 %v5310_v55, %s9193_s28 }
0x3520   : > { %v5409_v14 = vpop.permute.xlu1 %5408 }
0x3521   : > { %v5411_v5 = vadd.f32 %v5409_v14, %v5401_v12 }
0x3523   : > { %9105 = vtanh.f32 %v5411_v5 }
0x3530   : > { %v9106_v26 = vpop.eup %9105 }
0x3531   : > { %5414 = vrot.lane.b32.xlu1 %v9106_v26, %s9193_s28  ;;  %v5827_v26 = vld [vmem:[%s1336_s2 + $0x18] sm:$0xff] }
0x3533   : > { %v5313_v27 = vpop.permute.xlu0 %5312 }
0x3534   : > { %v5315_v38 = vadd.f32 %v5313_v27, %v5305_v16  ;;  %v5826_v27 = vld [vmem:[%s1336_s2 + $0x10] sm:$0xff] }
0x3536   : > { %9107 = vtanh.f32 %v5315_v38 }
0x3543   : > { %v9108_v28 = vpop.eup %9107 }
0x3544   : > { %5318 = vrot.lane.b32.xlu0 %v9108_v28, %s9193_s28  ;;  %v5825_v28 = vld [vmem:[%s1336_s2 + $0x8] sm:$0xff] }
0x35a3   : > { %v5415_v53 = vpop.permute.xlu1 %5414 }
0x35a4   : > { %v5417_v29 = vmul.f32 %v9100_v25, %v5415_v53  ;;  %v5656_v25 = vld [vmem:[%s1320_s26 + $0x18] sm:$0xff]  ;;  %s1331_s26 = scalar_lea.vmem %s10879_s22, %s10891_s16  ;;  %s10883_s22 = sld [smem:[#allocation10_spill]] }
0x35a6   : > { %5419 = vrot.lane.b32.xlu0 %v5417_v29, %s9194_s7  ;;  %v5824_v29 = vld [vmem:[%s1336_s2] sm:$0xff]  ;;  %s7627_s2 = sshll.u32 %s10891_s16, 7 }
0x35b6   : > { %v5319_v17 = vpop.permute.xlu0 %5318 }
0x35b7   : > { %v5321_v6 = vmul.f32 %v9104_v50, %v5319_v17  ;;  %v7600_v17 = vld [vmem:[%s1323_s10] ss:$0 sm:$0xff]  ;;  %s10882_s10 = sld [smem:[#allocation7_spill]] }
0x35b9   : > { %5423 = vrot.lane.b32.xlu1 %v5321_v6, %s9195_s11 }
0x3618   : > { %v5420_v1 = vpop.permute.xlu0 %5419 }
0x362b   : > { %v5424_v31 = vpop.permute.xlu1 %5423 }
0x362c   : > { %v5426_v32 = vsel %vm1498_vm2, %v5420_v1, %v5424_v31 }
0x362d   : > { %8685 = vmatmul.mubr.msk.f32.vlgmr.msra.gmra.mxu1 %vm1607_vm3, %v5426_v32 }
0x362e   : > { %8717 = vmatprep.mubr.msk.f32.mxu1 %vm9192_vm0, %v9191_v0 }
0x36ed   : > { %v5496_v33 = vpop.f32.mrf.mxu1 }
0x36ee   : > { %v5497_v51 = vadd.f32 %v10273_v47, %v5496_v33 }
0x36ef   : > { %v8686_v52 = vpop.f32.mrf.mxu1 }
0x36f0   : > { %9109 = vtanh.f32 %v5497_v51  ;;  %v5500_v57 = vsub.f32 0.0, %v5497_v51 }
0x36f2   : > { %v5501_v58 = vmul.f32 1.442695, %v5500_v57 }
0x36f4   : > { %9111 = vpow2.f32 %v5501_v58  ;;  %v7604_v58 = vld [vmem:[%s1339_s23] ss:$0 sm:$0xff] }
0x36fd   : > { %v9110_v56 = vpop.eup %9109 }
0x36fe   : > { %5508 = vrot.lane.b32.xlu0 %v9110_v56, %s9193_s28 }
0x3701   : > { %v9112_v59 = vpop.eup %9111 }
0x3702   : > { %v5503_v61 = vadd.f32 1.0, %v9112_v59 }
0x3704   : > { %9113 = vrcp.f32 %v5503_v61 }
0x3711   : > { %v9114_v44 = vpop.eup %9113 }
0x3712   : > { %v5506_v60 = vmul.f32 %v9114_v44, %v5315_v38 }
0x3770   : > { %v5509_v63 = vpop.permute.xlu0 %5508 }
0x3771   : > { %v5511_v18 = vmul.f32 %v9114_v44, %v5509_v63 }
0x3773   : > { %5513 = vrot.lane.b32.xlu1 %v5511_v18, %s9193_s28 }
0x37e5   : > { %v5514_v47 = vpop.permute.xlu1 %5513 }
0x37e6   : > { %v5516_v19 = vadd.f32 %v5514_v47, %v5506_v60 }
0x37e8   : > { %9115 = vtanh.f32 %v5516_v19 }
0x37f5   : > { %v9116_v62 = vpop.eup %9115 }
0x37f6   : > { %5519 = vrot.lane.b32.xlu0 %v9116_v62, %s9193_s28  ;;  %s1328_s28 = scalar_lea.vmem %s9265_s30, %s9374_s0 }
0x37f7   : > { %v5743_v50 = vld [vmem:[%s1328_s28 + $0x18] sm:$0xff]  ;;  %v5742_v16 = vld [vmem:[%s1328_s28 + $0x10] sm:$0xff]  ;;  %v5741_v38 = vld [vmem:[%s1328_s28 + $0x8] sm:$0xff] }
0x37f8   : > { %8710 = vmatpush3.msra.mxu1 %v5743_v50  ;;  %v5740_v53 = vld [vmem:[%s1328_s28] sm:$0xff] }
0x37f9   : > { %8711 = vmatprep.subr.mxu1 %v9191_v0 }
0x37fa   : > { %8712 = vmatpush3.msra.mxu1 %v5742_v16 }
0x37fb   : > { %8713 = vmatprep.subr.mxu1 %v9191_v0 }
0x37fc   : > { %8714 = vmatpush3.msra.mxu1 %v5741_v38 }
0x37fd   : > { %8715 = vmatprep.subr.mxu1 %v9191_v0 }
0x37fe   : > { %8716 = vmatpush3.msra.mxu1 %v5740_v53 }
0x37ff   : > { %8731 = vmatprep.subr.mxu1 %v9191_v0 }
0x3868   : > { %v5520_v20 = vpop.permute.xlu0 %5519 }
0x3869   : > { %v5522_v21 = vmul.f32 %v9114_v44, %v5520_v20  ;;  %v7602_v44 = vld [vmem:[%s1331_s26] ss:$0 sm:$0xff]  ;;  %s10884_s26 = sld [smem:[#allocation12_spill]] }
0x386b   : > { %5526 = vrot.lane.b32.xlu1 %v5522_v21, %s9194_s7 }
0x38dd   : > { %v5527_v22 = vpop.permute.xlu1 %5526 }
0x38de   : > { %v5530_v23 = vsel %vm5529_vm4, %v5527_v22, 0.0 }
0x38df   : > { %5531 = vadd.xlane.f32.xlu0 %v5530_v23 }
0x38f5   : > { %5553 = vrot.lane.b32.xlu0 %v7596_v24, %s9194_s7 }
0x3968   : > { %v5532_v30 = vpop.xlane.xlu0 %5531 }
0x3969   : > { %v5534_v34 = vmul.f32 0.03125, %v5532_v30 }
0x396b   : > { %v5535_v35 = vsub.f32 %v5522_v21, %v5534_v34 }
0x396c   : > { %v5554_v40 = vpop.permute.xlu0 %5553 }
0x396d   : > { %v5536_v36 = vmul.f32 %v5535_v35, %v5535_v35 }
0x396f   : > { %5538 = vrot.lane.b32.xlu1 %v5536_v36, %s9194_s7 }
0x39e1   : > { %v5539_v3 = vpop.permute.xlu1 %5538 }
0x39e2   : > { %v5541_v4 = vsel %vm5529_vm4, %v5539_v3, 0.0 }
0x39e3   : > { %5542 = vadd.xlane.f32.xlu1 %v5541_v4 }
0x39f4   : > { %5562 = vrot.lane.b32.xlu1 %v7597_v7, %s9194_s7 }
0x3a6c   : > { %v5543_v15 = vpop.xlane.xlu1 %5542 }
0x3a6d   : > { %v5544_v37 = vmul.f32 0.03125, %v5543_v15 }
0x3a6f   : > { %v5545_v39 = vadd.f32 1e-05, %v5544_v37 }
0x3a70   : > { %v5563_v42 = vpop.permute.xlu1 %5562 }
0x3a71   : > { %9117 = vrsqrt.f32 %v5545_v39 }
0x3a7e   : > { %v9118_v2 = vpop.eup %9117 }
0x3a7f   : > { %v5547_v41 = vmul.f32 %v9118_v2, %v5535_v35 }
0x3a81   : > { %v5556_v43 = vmul.f32 %v5554_v40, %v5547_v41 }
0x3a83   : > { %v5565_v9 = vadd.f32 %v5563_v42, %v5556_v43 }
0x3a85   : > { %5578 = vrot.lane.b32.xlu0 %v5565_v9, %s9194_s7  ;;  %s10877_s7 = sld [smem:[#allocation4_spill]] }
0x3a8b   : > { %s1344_s11 = scalar_lea.vmem %s10877_s7, %s9374_s0  ;;  %s10880_s0 = sld [smem:[#allocation5_spill]] }
0x3a8c   : > { %v5908_v51 = vld [vmem:[%s1344_s11 + $0x18] sm:$0xff]  ;;  %v5907_v52 = vld [vmem:[%s1344_s11 + $0x10] sm:$0xff]  ;;  %v5906_v56 = vld [vmem:[%s1344_s11 + $0x8] sm:$0xff]  ;;  %s10554_s7 = scalar_lea.vmem %s10881_s1, %s7627_s2  ;;  %s10886_s1 = sld [smem:[#allocation9_spill]] }
0x3a8d   : > { %v5905_v57 = vld [vmem:[%s1344_s11] sm:$0xff]  ;;  %v6166_v7 = vld [vmem:[%s10554_s7 + $0x68] sm:$0xff]  ;;  %v6168_v8 = vld [vmem:[%s10554_s7 + $0x78] sm:$0xff]  ;;  %s10580_s11 = sshll.u32 %s10891_s16, 2 }
0x3a8e   : > { %v6165_v10 = vld [vmem:[%s10554_s7 + $0x60] sm:$0xff]  ;;  %v6162_v11 = vld [vmem:[%s10554_s7 + $0x48] sm:$0xff]  ;;  %v6167_v42 = vld [vmem:[%s10554_s7 + $0x70] sm:$0xff]  ;;  %s1356_s18 = scalar_lea.vmem %s10882_s10, %s10580_s11 }
0x3a8f   : > { %v6161_v13 = vld [vmem:[%s10554_s7 + $0x40] sm:$0xff]  ;;  %v6158_v15 = vld [vmem:[%s10554_s7 + $0x28] sm:$0xff]  ;;  %v6164_v43 = vld [vmem:[%s10554_s7 + $0x58] sm:$0xff] }
0x3a90   : > { %v6157_v37 = vld [vmem:[%s10554_s7 + $0x20] sm:$0xff]  ;;  %v6154_v39 = vld [vmem:[%s10554_s7 + $0x8] sm:$0xff]  ;;  %v6163_v9 = vld [vmem:[%s10554_s7 + $0x50] sm:$0xff] }
0x3a91   : > { %s1347_s28 = scalar_lea.vmem %s10880_s0, %s10891_s16  ;;  %s7628_s0 = sshll.u32 %s10891_s16, 9 }
0x3a92   : > { %v7606_v19 = vld [vmem:[%s1347_s28] ss:$0 sm:$0xff]  ;;  %s10604_s23 = scalar_lea.vmem %s10883_s22, %s7628_s0  ;;  %s10885_s28 = sld [smem:[#allocation8_spill]] }
0x3a93   : > { %s10888_s22 = sld [smem:[#allocation11_spill]] }
0x3a98   : > { %s1360_s10 = scalar_lea.vmem %s10885_s28, %s10580_s11  ;;  %s10752_s28 = scalar_lea.vmem %s9345_s27, %s7628_s0 }
0x3a99   : > { %s10889_s0 = sld [smem:[#allocation14_spill]] }
0x3af7   : > { %v5579_v45 = vpop.permute.xlu0 %5578 }
0x3af8   : > { %8696 = vmatmul.mubr.msk.f32.vlgmr.msra.gmra.mxu0 %vm1498_vm2, %v5579_v45 }
0x3af9   : > { %8699 = vmatpush3.msra.mxu0 %v5656_v25  ;;  %8706 = vmatprep.mubr.msk.f32.mxu0 %vm9192_vm0, %v9191_v0  ;;  %v6160_v25 = vld [vmem:[%s10554_s7 + $0x38] sm:$0xff] }
0x3afa   : > { %8700 = vmatprep.subr.mxu0 %v9191_v0 }
0x3afb   : > { %8701 = vmatpush3.msra.mxu0 %v5655_v46  ;;  %v6156_v46 = vld [vmem:[%s10554_s7 + $0x18] sm:$0xff] }
0x3afc   : > { %8702 = vmatprep.subr.mxu0 %v9191_v0 }
0x3afd   : > { %8703 = vmatpush3.msra.mxu0 %v5654_v48  ;;  %v6153_v48 = vld [vmem:[%s10554_s7] sm:$0xff] }
0x3afe   : > { %8704 = vmatprep.subr.mxu0 %v9191_v0 }
0x3aff   : > { %8705 = vmatpush3.msra.mxu0 %v5653_v49  ;;  %v6155_v49 = vld [vmem:[%s10554_s7 + $0x10] sm:$0xff] }
0x3b00   : > { %8720 = vmatprep.subr.mxu0 %v9191_v0 }
0x3bb8   : > { %v5648_v55 = vpop.f32.mrf.mxu0 }
0x3bb9   : > { %v5649_v12 = vadd.f32 %v7598_v54, %v5648_v55  ;;  %v6171_v55 = vlaneseq }
0x3bba   : > { %v8697_v14 = vpop.f32.mrf.mxu0 }
0x3bbb   : > { %v5652_v5 = vmax.f32 %v5649_v12, 0.0  ;;  %v6172_v12 = vshrl.u32 %v6171_v55, 7  ;;  %v6470_v55 = vld [vmem:[%s10604_s23 + $0x158] sm:$0xff] }
0x3bbd   : > { %8707 = vmatmul.mubr.msk.f32.vlgmr.msra.gmra.mxu0 %vm1498_vm2, %v5652_v5  ;;  %v10584_v14 = vsub.s32 0, %v6172_v12  ;;  %v6169_v5 = vld [vmem:[%s1356_s18] sm:$0xf]  ;;  %v10588_v16 = vsub.s32 1, %v6172_v12  ;;  %v10591_v38 = vsub.s32 3, %v6172_v12  ;;  %s1364_s18 = scalar_lea.vmem %s10886_s1, %s10580_s11  ;;  %s1385_s1 = scalar_lea.vmem %s10889_s0, %s10580_s11 }
0x3bbe   : > { %8728 = vmatprep.mubr.msk.f32.mxu0 %vm9192_vm0, %v9191_v0  ;;  %8721 = vmatpush3.msra.mxu0 %v5827_v26  ;;  %v10586_v26 = vsub.s32 2, %v6172_v12  ;;  %v6453_v12 = vld [vmem:[%s10604_s23 + $0xd0] sm:$0xff] }
0x3bbf   : > { %8722 = vmatprep.subr.mxu0 %v9191_v0  ;;  %v6178_v53 = vrot.slane %v6169_v5, %v10588_v16 }
0x3bc0   : > { %8723 = vmatpush3.msra.mxu0 %v5826_v27  ;;  %v6174_v27 = vrot.slane %v6169_v5, %v10584_v14 }
0x3bc1   : > { %8724 = vmatprep.subr.mxu0 %v9191_v0 }
0x3bc2   : > { %8725 = vmatpush3.msra.mxu0 %v5825_v28  ;;  %v6182_v28 = vrot.slane %v6169_v5, %v10586_v26 }
0x3bc3   : > { %8726 = vmatprep.subr.mxu0 %v9191_v0 }
0x3bc4   : > { %8727 = vmatpush3.msra.mxu0 %v5824_v29 }
0x3bc5   : > { %8742 = vmatprep.subr.mxu0 %v9191_v0 }
0x3c7d   : > { %v5733_v6 = vpop.f32.mrf.mxu0 }
0x3c7e   : > { %v5734_v1 = vadd.f32 %v7600_v17, %v5733_v6 }
0x3c7f   : > { %v8708_v31 = vpop.f32.mrf.mxu0 }
0x3c80   : > { %v5738_v32 = vadd.f32 %v5734_v1, %v5579_v45  ;;  %v6159_v45 = vld [vmem:[%s10554_s7 + $0x30] sm:$0xff]  ;;  %v6186_v1 = vrot.slane %v6169_v5, %v10591_v38  ;;  %s10693_s7 = scalar_lea.vmem %s10884_s26, %s7627_s2  ;;  %s10887_s2 = sld [smem:[#allocation13_spill]] }
0x3c81   : > { %v6485_v5 = vld [vmem:[%s10604_s23 + $0x1d0] sm:$0xff]  ;;  %s1372_s26 = scalar_lea.vmem %s10888_s22, %s10891_s16 }
0x3c82   : > { %v5739_v33 = vmax.f32 %v5738_v32, 0.0 }
0x3c84   : > { %8718 = vmatmul.mubr.msk.f32.vlgmr.msra.gmra.mxu1 %vm1498_vm2, %v5739_v33  ;;  %8729 = vmatmul.mubr.msk.f32.vlgmr.msra.gmra.mxu0 %vm1498_vm2, %v5739_v33 }
0x3c85   : > { %8732 = vmatpush3.msra.mxu1 %v5908_v51  ;;  %8739 = vmatprep.mubr.msk.f32.mxu1 %vm9192_vm0, %v9191_v0 }
0x3c86   : > { %8733 = vmatprep.subr.mxu1 %v9191_v0  ;;  %8744 = vmatprep.mubr.msk.f32.mxu0 %vm9192_vm0, %v9191_v0 }
0x3c87   : > { %8734 = vmatpush3.msra.mxu1 %v5907_v52 }
0x3c88   : > { %8735 = vmatprep.subr.mxu1 %v9191_v0 }
0x3c89   : > { %8736 = vmatpush3.msra.mxu1 %v5906_v56 }
0x3c8a   : > { %8737 = vmatprep.subr.mxu1 %v9191_v0 }
0x3c8b   : > { %8738 = vmatpush3.msra.mxu1 %v5905_v57 }
0x3c8c   : > { %8740 = vmatmul.mubr.msk.f32.vlgmr.msra.gmra.mxu1 %vm1498_vm2, %v5739_v33  ;;  %6218 = vmatprep.subr.mxu1 %v6166_v7 }
0x3c8d   : > { %6258 = vmatprep.mubr.f32.mxu1 %v9191_v0  ;;  %6219 = vmatpush1.msra.mxu1 %v6165_v10 }
0x3c8e   : > { %6220 = vmatprep.subr.mxu1 %v6162_v11 }
0x3c8f   : > { %6221 = vmatpush1.msra.mxu1 %v6161_v13 }
0x3c90   : > { %6222 = vmatprep.subr.mxu1 %v6158_v15 }
0x3c91   : > { %6223 = vmatpush1.msra.mxu1 %v6157_v37 }
0x3c92   : > { %6224 = vmatprep.subr.mxu1 %v6154_v39 }
0x3c93   : > { %6225 = vmatpush1.msra.mxu1 %v6153_v48  ;;  %v6454_v48 = vld [vmem:[%s10604_s23 + $0xd8] sm:$0xff] }
0x3d44   : > { %v5820_v59 = vpop.f32.mrf.mxu1  ;;  %v5901_v61 = vpop.f32.mrf.mxu0 }
0x3d45   : > { %v5902_v63 = vadd.f32 %v7604_v58, %v5901_v61  ;;  %v5821_v47 = vadd.f32 %v7602_v44, %v5820_v59 }
0x3d46   : > { %v8719_v18 = vpop.f32.mrf.mxu1  ;;  %v8730_v60 = vpop.f32.mrf.mxu0 }
0x3d47   : > { %8743 = vmatpush3.xpose.msk.msra.mxu0 %vm1498_vm2, %v5902_v63  ;;  %v6458_v18 = vld [vmem:[%s10604_s23 + $0xf8] sm:$0xff] }
0x3d48   : > { %8747 = vmatprep.subr.mxu0 %v9191_v0  ;;  %v6490_v60 = vld [vmem:[%s10604_s23 + $0x1f8] sm:$0xff]  ;;  %7942 = vmatprep.subr.mxu1 %v6458_v18  ;;  %v6480_v18 = vld [vmem:[%s10604_s23 + $0x1a8] sm:$0xff] }
0x3d4a   : > { %8745 = vmatmul.mubr.msk.f32.vlgmr.msra.gmra.mxu0 %vm1498_vm2, %v5821_v47  ;;  %v6442_v47 = vld [vmem:[%s10604_s23 + $0x78] sm:$0xff] }
0x3d4b   : > { %8749 = vmatprep.mubr.msk.f32.mxu0 %vm9192_vm0, %v9191_v0 }
0x3d4c   : > { %v5982_v62 = vpop.f32.mrf.mxu1 }
0x3d4d   : > { %v5983_v20 = vadd.f32 %v7606_v19, %v5982_v62  ;;  %v6474_v19 = vld [vmem:[%s10604_s23 + $0x178] sm:$0xff]  ;;  %v6457_v62 = vld [vmem:[%s10604_s23 + $0xf0] sm:$0xff] }
0x3d4e   : > { %v8741_v21 = vpop.f32.mrf.mxu1 }
0x3d4f   : > { %8748 = vmatpush3.msk.msra.mxu0 %vm6079_vm5, %v5983_v20  ;;  %v6489_v20 = vld [vmem:[%s10604_s23 + $0x1f0] sm:$0xff] }
0x3d50   : > { %6289 = vmatprep.subr.mxu0 %v6168_v8  ;;  %v6441_v21 = vld [vmem:[%s10604_s23 + $0x70] sm:$0xff] }
0x3e0a   : > { %v6058_v22 = vpop.f32.mrf.mxu0 }
0x3e0b   : > { %v6062_v23 = vmul.f32 0.17677669, %v6058_v22  ;;  %v6473_v22 = vld [vmem:[%s10604_s23 + $0x170] sm:$0xff] }
0x3e0c   : > { %v8746_v24 = vpop.f32.mrf.mxu0 }
0x3e0d   : > { %v6064_v30 = vsel %vm6063_vm6, %v6062_v23, -inf  ;;  %v6488_v24 = vld [vmem:[%s10604_s23 + $0x1e8] sm:$0xff] }
0x3e0e   : > { %6065 = vmax.xlane.f32.xlu0 %v6064_v30  ;;  %v6440_v30 = vld [vmem:[%s10604_s23 + $0x68] sm:$0xff] }
0x3e97   : > { %v6066_v34 = vpop.xlane.xlu0 %6065 }
0x3e98   : > { %v6067_v35 = vsub.f32 %v6062_v23, %v6066_v34  ;;  %v6456_v23 = vld [vmem:[%s10604_s23 + $0xe8] sm:$0xff] }
0x3e99   : > { %v6472_v34 = vld [vmem:[%s10604_s23 + $0x168] sm:$0xff] }
0x3e9a   : > { %v6068_v36 = vmul.f32 1.442695, %v6067_v35 }
0x3e9c   : > { %9119 = vpow2.f32 %v6068_v36 }
0x3ea9   : > { %v9120_v3 = vpop.eup %9119 }
0x3eaa   : > { %v6070_v4 = vsel %vm6063_vm6, %v9120_v3, 0.0 }
0x3eab   : > { %6071 = vadd.xlane.f32.xlu1 %v6070_v4 }
0x3f34   : > { %v6072_v2 = vpop.xlane.xlu1 %6071 }
0x3f35   : > { %9121 = vrcp.f32 %v6072_v2 }
0x3f42   : > { %v9122_v40 = vpop.eup %9121 }
0x3f43   : > { %v6074_v41 = vmul.f32 %v9122_v40, %v9120_v3 }
0x3f45   : > { %8750 = vmatmul.mubr.msk.f32.vlgmr.msra.gmra.mxu0 %vm6075_vm7, %v6074_v41 }
0x3f46   : > { %6290 = vmatpush1.msra.mxu0 %v6167_v42  ;;  %6329 = vmatprep.mubr.f32.mxu0 %v9191_v0 }
0x3f47   : > { %6291 = vmatprep.subr.mxu0 %v6164_v43 }
0x3f48   : > { %6292 = vmatpush1.msra.mxu0 %v6163_v9  ;;  %v6455_v9 = vld [vmem:[%s10604_s23 + $0xe0] sm:$0xff] }
0x3f49   : > { %6293 = vmatprep.subr.mxu0 %v6160_v25  ;;  %v6487_v25 = vld [vmem:[%s10604_s23 + $0x1e0] sm:$0xff] }
0x3f4a   : > { %6294 = vmatpush1.msra.mxu0 %v6159_v45  ;;  %v6439_v45 = vld [vmem:[%s10604_s23 + $0x60] sm:$0xff] }
0x3f4b   : > { %6295 = vmatprep.subr.mxu0 %v6156_v46  ;;  %v6471_v46 = vld [vmem:[%s10604_s23 + $0x160] sm:$0xff] }
0x3f4c   : > { %6296 = vmatpush1.msra.mxu0 %v6155_v49  ;;  %v6486_v49 = vld [vmem:[%s10604_s23 + $0x1d8] sm:$0xff] }
0x3f4d   : > { %7977 = vmatprep.subr.mxu0 %v6490_v60  ;;  %v6432_v60 = vld [vmem:[%s10604_s23 + $0x28] sm:$0xff] }
0x4005   : > { %v10573_v50 = vpop.f32.mrf.mxu0 }
0x4006   : > { %7612 = vmatmul.mubr.msk.f32.vlgmr.msra.gmra.mxu1 %vm1498_vm2, %v10573_v50  ;;  %7613 = vmatmul.mubr.msk.f32.vlgmr.msra.gmra.mxu0 %vm1498_vm2, %v10573_v50 }
0x4007   : > { %v8751_v54 = vpop.f32.mrf.mxu0  ;;  %7943 = vmatpush3.msra.mxu1 %v6442_v47  ;;  %7978 = vmatpush3.msra.mxu0 %v6474_v19  ;;  %v6464_v47 = vld [vmem:[%s10604_s23 + $0x128] sm:$0xff]  ;;  %v6447_v19 = vld [vmem:[%s10604_s23 + $0xa0] sm:$0xff] }
0x4008   : > { %7944 = vmatprep.subr.mxu1 %v6457_v62  ;;  %7979 = vmatprep.subr.mxu0 %v6489_v20  ;;  %v6438_v54 = vld [vmem:[%s10604_s23 + $0x58] sm:$0xff]  ;;  %v6479_v62 = vld [vmem:[%s10604_s23 + $0x1a0] sm:$0xff] }
0x4009   : > { %7945 = vmatpush3.msra.mxu1 %v6441_v21  ;;  %7980 = vmatpush3.msra.mxu0 %v6473_v22  ;;  %v6431_v20 = vld [vmem:[%s10604_s23 + $0x20] sm:$0xff]  ;;  %v6446_v22 = vld [vmem:[%s10604_s23 + $0x98] sm:$0xff] }
0x400a   : > { %7946 = vmatprep.subr.mxu1 %v6456_v23  ;;  %7981 = vmatprep.subr.mxu0 %v6488_v24  ;;  %v6463_v21 = vld [vmem:[%s10604_s23 + $0x120] sm:$0xff]  ;;  %v6478_v23 = vld [vmem:[%s10604_s23 + $0x198] sm:$0xff] }
0x400b   : > { %7947 = vmatpush3.msra.mxu1 %v6440_v30  ;;  %7982 = vmatpush3.msra.mxu0 %v6472_v34  ;;  %v6430_v24 = vld [vmem:[%s10604_s23 + $0x18] sm:$0xff]  ;;  %v6445_v34 = vld [vmem:[%s10604_s23 + $0x90] sm:$0xff] }
0x400c   : > { %7948 = vmatprep.subr.mxu1 %v6455_v9  ;;  %7983 = vmatprep.subr.mxu0 %v6487_v25  ;;  %v6462_v30 = vld [vmem:[%s10604_s23 + $0x118] sm:$0xff] }
0x400d   : > { %7949 = vmatpush3.msra.mxu1 %v6439_v45  ;;  %7984 = vmatpush3.msra.mxu0 %v6471_v46  ;;  %v6336_v46 = vld [vmem:[%s1360_s10] sm:$0xf]  ;;  %s7553_s10 = sshll.u32 %s10891_s16, 1 }
0x400e   : > { %7950 = vmatprep.subr.mxu1 %v6454_v48  ;;  %7985 = vmatprep.subr.mxu0 %v6486_v49  ;;  %v6337_v48 = vld [vmem:[%s1364_s18] sm:$0xf]  ;;  %v6381_v49 = vrot.slane %v6336_v46, %v10588_v16  ;;  %s1401_s18 = scalar_lea.vmem %s9355_s6, %s7553_s10 }
0x400f   : > { %7951 = vmatpush3.msra.mxu1 %v6438_v54  ;;  %7986 = vmatpush3.msra.mxu0 %v6470_v55  ;;  %v6389_v54 = vrot.slane %v6336_v46, %v10591_v38  ;;  %v6377_v55 = vrot.slane %v6336_v46, %v10584_v14 }
0x4010   : > { %7952 = vmatprep.subr.mxu1 %v6453_v12  ;;  %7987 = vmatprep.subr.mxu0 %v6485_v5  ;;  %v6385_v12 = vrot.slane %v6336_v46, %v10586_v26 }
0x40c6   : > { %v6260_v29 = vpop.f32.mrf.mxu1  ;;  %v6331_v17 = vpop.f32.mrf.mxu0 }
0x40c7   : > { %v6261_v6 = vadd.f32 %v6260_v29, %v6174_v27  ;;  %v6332_v33 = vadd.f32 %v6331_v17, %v6182_v28  ;;  %v6437_v27 = vld [vmem:[%s10604_s23 + $0x50] sm:$0xff]  ;;  %v6484_v29 = vld [vmem:[%s10604_s23 + $0x1c8] sm:$0xff] }
0x40c8   : > { %v6262_v31 = vpop.f32.mrf.mxu1  ;;  %v6333_v32 = vpop.f32.mrf.mxu0  ;;  %v6469_v28 = vld [vmem:[%s10604_s23 + $0x150] sm:$0xff]  ;;  %7953 = vmatpush3.msra.mxu1 %v6437_v27  ;;  %v6436_v17 = vld [vmem:[%s10604_s23 + $0x48] sm:$0xff]  ;;  %v6406_v27 = vrot.slane %v6337_v48, %v10588_v16 }
0x40c9   : > { %v6263_v51 = vadd.f32 %v6262_v31, %v6178_v53  ;;  %v6338_v52 = vsel %vm6079_vm5, %v6261_v6, 0.0  ;;  %v6334_v57 = vadd.f32 %v6333_v32, %v6186_v1  ;;  %v6341_v59 = vsel %vm6079_vm5, %v6332_v33, 0.0  ;;  %v6452_v53 = vld [vmem:[%s10604_s23 + $0xc8] sm:$0xff]  ;;  %7988 = vmatpush3.msra.mxu0 %v6469_v28  ;;  %v6451_v1 = vld [vmem:[%s10604_s23 + $0xc0] sm:$0xff] }
0x40ca   : > { %7954 = vmatprep.subr.mxu1 %v6452_v53  ;;  %7989 = vmatprep.subr.mxu0 %v6484_v29  ;;  %v6483_v31 = vld [vmem:[%s10604_s23 + $0x1c0] sm:$0xff]  ;;  %v6414_v28 = vrot.slane %v6337_v48, %v10591_v38  ;;  %v6402_v53 = vrot.slane %v6337_v48, %v10584_v14  ;;  %v6410_v29 = vrot.slane %v6337_v48, %v10586_v26 }
0x40cb   : > { %v6339_v56 = vsel %vm6079_vm5, %v6263_v51, 0.0  ;;  %v6343_v44 = vsel %vm6079_vm5, %v6334_v57, 0.0  ;;  %v6435_v32 = vld [vmem:[%s10604_s23 + $0x40] sm:$0xff]  ;;  %7955 = vmatpush3.msra.mxu1 %v6436_v17 }
0x40cc   : > { %v6340_v58 = vadd.f32 %v6339_v56, %v6338_v52  ;;  %v6482_v52 = vld [vmem:[%s10604_s23 + $0x1b8] sm:$0xff]  ;;  %7956 = vmatprep.subr.mxu1 %v6451_v1 }
0x40cd   : > { %v6434_v56 = vld [vmem:[%s10604_s23 + $0x38] sm:$0xff]  ;;  %7957 = vmatpush3.msra.mxu1 %v6435_v32 }
0x40ce   : > { %v6342_v61 = vadd.f32 %v6341_v59, %v6340_v58  ;;  %v6449_v58 = vld [vmem:[%s10604_s23 + $0xb0] sm:$0xff] }
0x40cf   : > { %v6481_v59 = vld [vmem:[%s10604_s23 + $0x1b0] sm:$0xff] }
0x40d0   : > { %v6344_v63 = vadd.f32 %v6343_v44, %v6342_v61  ;;  %v6433_v61 = vld [vmem:[%s10604_s23 + $0x30] sm:$0xff] }
0x40d1   : > { %v6465_v44 = vld [vmem:[%s10604_s23 + $0x130] sm:$0xff] }
0x40d2   : > { %6345 = vadd.xlane.f32.xlu0 %v6344_v63  ;;  %v6448_v63 = vld [vmem:[%s10604_s23 + $0xa8] sm:$0xff] }
0x415b   : > { %v6346_v35 = vpop.xlane.xlu0 %6345 }
0x415c   : > { %v6348_v36 = vmul.f32 0.001953125, %v6346_v35  ;;  %v6477_v35 = vld [vmem:[%s10604_s23 + $0x190] sm:$0xff] }
0x415e   : > { %v10618_v3 = vsub.f32 %v6261_v6, %v6348_v36  ;;  %v10620_v4 = vsub.f32 %v6263_v51, %v6348_v36  ;;  %v10622_v7 = vsub.f32 %v6332_v33, %v6348_v36  ;;  %v10624_v8 = vsub.f32 %v6334_v57, %v6348_v36  ;;  %v6468_v6 = vld [vmem:[%s10604_s23 + $0x148] sm:$0xff]  ;;  %v6467_v33 = vld [vmem:[%s10604_s23 + $0x140] sm:$0xff]  ;;  %v6450_v51 = vld [vmem:[%s10604_s23 + $0xb8] sm:$0xff] }
0x415f   : > { %7990 = vmatpush3.msra.mxu0 %v6468_v6  ;;  %v6466_v57 = vld [vmem:[%s10604_s23 + $0x138] sm:$0xff]  ;;  %7958 = vmatprep.subr.mxu1 %v6450_v51  ;;  %v6429_v36 = vld [vmem:[%s10604_s23 + $0x10] sm:$0xff] }
0x4160   : > { %v6353_v10 = vmul.f32 %v10618_v3, %v10618_v3  ;;  %v6354_v11 = vmul.f32 %v10620_v4, %v10620_v4  ;;  %v6355_v13 = vmul.f32 %v10622_v7, %v10622_v7  ;;  %v6356_v15 = vmul.f32 %v10624_v8, %v10624_v8  ;;  %7991 = vmatprep.subr.mxu0 %v6483_v31 }
0x4161   : > { %7992 = vmatpush3.msra.mxu0 %v6467_v33  ;;  %7959 = vmatpush3.msra.mxu1 %v6434_v56 }
0x4162   : > { %v6357_v37 = vsel %vm6079_vm5, %v6353_v10, 0.0  ;;  %v6358_v39 = vsel %vm6079_vm5, %v6354_v11, 0.0  ;;  %v6360_v40 = vsel %vm6079_vm5, %v6355_v13, 0.0  ;;  %v6362_v42 = vsel %vm6079_vm5, %v6356_v15, 0.0  ;;  %7993 = vmatprep.subr.mxu0 %v6482_v52  ;;  %7960 = vmatprep.subr.mxu1 %v6449_v58  ;;  %v6461_v10 = vld [vmem:[%s10604_s23 + $0x110] sm:$0xff]  ;;  %v6444_v11 = vld [vmem:[%s10604_s23 + $0x88] sm:$0xff] }
0x4163   : > { %v6359_v2 = vadd.f32 %v6358_v39, %v6357_v37  ;;  %7994 = vmatpush3.msra.mxu0 %v6466_v57  ;;  %7961 = vmatpush3.msra.mxu1 %v6433_v61  ;;  %v6476_v13 = vld [vmem:[%s10604_s23 + $0x188] sm:$0xff]  ;;  %v6443_v39 = vld [vmem:[%s10604_s23 + $0x80] sm:$0xff] }
0x4164   : > { %7995 = vmatprep.subr.mxu0 %v6481_v59  ;;  %7962 = vmatprep.subr.mxu1 %v6448_v63  ;;  %v6428_v15 = vld [vmem:[%s10604_s23 + $0x8] sm:$0xff] }
0x4165   : > { %v6361_v41 = vadd.f32 %v6360_v40, %v6359_v2  ;;  %7996 = vmatpush3.msra.mxu0 %v6465_v44  ;;  %7963 = vmatpush3.msra.mxu1 %v6432_v60  ;;  %v6460_v37 = vld [vmem:[%s10604_s23 + $0x108] sm:$0xff]  ;;  %v6475_v2 = vld [vmem:[%s10604_s23 + $0x180] sm:$0xff] }
0x4166   : > { %7997 = vmatprep.subr.mxu0 %v6480_v18  ;;  %7964 = vmatprep.subr.mxu1 %v6447_v19  ;;  %v6427_v40 = vld [vmem:[%s10604_s23] sm:$0xff]  ;;  %v6647_v63 = vld [vmem:[%s10693_s7 + $0x48] sm:$0xff]  ;;  %v6649_v18 = vld [vmem:[%s10693_s7 + $0x58] sm:$0xff] }
0x4167   : > { %v6363_v43 = vadd.f32 %v6362_v42, %v6361_v41  ;;  %7998 = vmatpush3.msra.mxu0 %v6464_v47  ;;  %7965 = vmatpush3.msra.mxu1 %v6431_v20  ;;  %v6459_v41 = vld [vmem:[%s10604_s23 + $0x100] sm:$0xff]  ;;  %v6651_v42 = vld [vmem:[%s10693_s7 + $0x68] sm:$0xff]  ;;  %v6648_v47 = vld [vmem:[%s10693_s7 + $0x50] sm:$0xff]  ;;  %s1381_s23 = scalar_lea.vmem %s10887_s2, %s10580_s11 }
0x4168   : > { %7999 = vmatprep.subr.mxu0 %v6479_v62  ;;  %7966 = vmatprep.subr.mxu1 %v6446_v22  ;;  %v6650_v44 = vld [vmem:[%s10693_s7 + $0x60] sm:$0xff]  ;;  %v6643_v19 = vld [vmem:[%s10693_s7 + $0x28] sm:$0xff]  ;;  %v6645_v62 = vld [vmem:[%s10693_s7 + $0x38] sm:$0xff] }
0x4169   : > { %6364 = vadd.xlane.f32.xlu0 %v6363_v43  ;;  %8000 = vmatpush3.msra.mxu0 %v6463_v21  ;;  %v6653_v43 = vld [vmem:[%s10693_s7 + $0x78] sm:$0xff]  ;;  %v6646_v60 = vld [vmem:[%s10693_s7 + $0x40] sm:$0xff]  ;;  %v6644_v21 = vld [vmem:[%s10693_s7 + $0x30] sm:$0xff] }
0x416a   : > { %8001 = vmatprep.subr.mxu0 %v6478_v23  ;;  %7967 = vmatpush3.msra.mxu1 %v6430_v24  ;;  %v6642_v20 = vld [vmem:[%s10693_s7 + $0x20] sm:$0xff]  ;;  %v6639_v22 = vld [vmem:[%s10693_s7 + $0x8] sm:$0xff]  ;;  %v6641_v23 = vld [vmem:[%s10693_s7 + $0x18] sm:$0xff] }
0x416b   : > { %8002 = vmatpush3.msra.mxu0 %v6462_v30  ;;  %7968 = vmatprep.subr.mxu1 %v6445_v34  ;;  %v6638_v24 = vld [vmem:[%s10693_s7] sm:$0xff]  ;;  %v6640_v30 = vld [vmem:[%s10693_s7 + $0x10] sm:$0xff] }
0x416c   : > { %8003 = vmatprep.subr.mxu0 %v6477_v35  ;;  %7969 = vmatpush3.msra.mxu1 %v6429_v36  ;;  %v6654_v36 = vld [vmem:[%s1381_s23] sm:$0xf] }
0x416d   : > { %8004 = vmatpush3.msra.mxu0 %v6461_v10  ;;  %7970 = vmatprep.subr.mxu1 %v6444_v11  ;;  %v6659_v10 = vrot.slane %v6654_v36, %v10584_v14 }
0x416e   : > { %8005 = vmatprep.subr.mxu0 %v6476_v13  ;;  %7971 = vmatpush3.msra.mxu1 %v6428_v15  ;;  %v6667_v15 = vrot.slane %v6654_v36, %v10586_v26 }
0x416f   : > { %8006 = vmatpush3.msra.mxu0 %v6460_v37  ;;  %7972 = vmatprep.subr.mxu1 %v6443_v39  ;;  %v6663_v37 = vrot.slane %v6654_v36, %v10588_v16 }
0x4170   : > { %8007 = vmatprep.subr.mxu0 %v6475_v2  ;;  %7973 = vmatpush3.msra.mxu1 %v6427_v40  ;;  %v6671_v40 = vrot.slane %v6654_v36, %v10591_v38  ;;  %v6952_v36 = vld [vmem:[%s10752_s28 + $0x160] sm:$0xff] }
0x4171   : > { %8008 = vmatpush3.msra.mxu0 %v6459_v41  ;;  %6700 = vmatprep.subr.mxu1 %v6651_v42 }
0x4172   : > { %6771 = vmatprep.subr.mxu0 %v6653_v43 }
0x41f2   : > { %v6365_v9 = vpop.xlane.xlu0 %6364 }
0x41f3   : > { %v6366_v25 = vmul.f32 0.001953125, %v6365_v9 }
0x41f5   : > { %v6367_v45 = vadd.f32 1e-05, %v6366_v25  ;;  %v7614_v25 = vld [vmem:[%s1372_s26] ss:$0 sm:$0xff] }
0x41f7   : > { %9123 = vrsqrt.f32 %v6367_v45 }
0x4204   : > { %v9124_v5 = vpop.eup %9123 }
0x4205   : > { %v6370_v17 = vmul.f32 %v9124_v5, %v10620_v4  ;;  %v6372_v6 = vmul.f32 %v9124_v5, %v10624_v8  ;;  %v6369_v1 = vmul.f32 %v9124_v5, %v10618_v3  ;;  %v6371_v31 = vmul.f32 %v9124_v5, %v10622_v7  ;;  %v6652_v7 = vld [vmem:[%s10693_s7 + $0x70] sm:$0xff]  ;;  %s1389_s7 = scalar_lea.vmem %s9340_s20, %s10580_s11  ;;  %s1397_s11 = scalar_lea.vmem %s9350_s4, %s10891_s16 }
0x4207   : > { %v6395_v32 = vmul.f32 %v6381_v49, %v6370_v17  ;;  %v6397_v33 = vmul.f32 %v6389_v54, %v6372_v6  ;;  %v6394_v51 = vmul.f32 %v6377_v55, %v6369_v1  ;;  %v6396_v52 = vmul.f32 %v6385_v12, %v6371_v31  ;;  %v6939_v17 = vld [vmem:[%s10752_s28 + $0xf8] sm:$0xff] }
0x4208   : > { %v6971_v6 = vld [vmem:[%s10752_s28 + $0x1f8] sm:$0xff] }
0x4209   : > { %v6420_v56 = vadd.f32 %v6406_v27, %v6395_v32  ;;  %v6422_v57 = vadd.f32 %v6414_v28, %v6397_v33  ;;  %v6419_v58 = vadd.f32 %v6402_v53, %v6394_v51  ;;  %v6421_v4 = vadd.f32 %v6410_v29, %v6396_v52  ;;  %v6923_v1 = vld [vmem:[%s10752_s28 + $0x78] sm:$0xff]  ;;  %v6938_v32 = vld [vmem:[%s10752_s28 + $0xf0] sm:$0xff] }
0x420a   : > { %v6955_v31 = vld [vmem:[%s10752_s28 + $0x178] sm:$0xff]  ;;  %v6970_v33 = vld [vmem:[%s10752_s28 + $0x1f0] sm:$0xff] }
0x420b   : > { %v6424_v59 = vmax.f32 %v6420_v56, 0.0  ;;  %v6426_v8 = vmax.f32 %v6422_v57, 0.0  ;;  %v6423_v61 = vmax.f32 %v6419_v58, 0.0  ;;  %v6425_v3 = vmax.f32 %v6421_v4, 0.0  ;;  %v6922_v51 = vld [vmem:[%s10752_s28 + $0x70] sm:$0xff]  ;;  %v6937_v56 = vld [vmem:[%s10752_s28 + $0xe8] sm:$0xff] }
0x420c   : > { %v6954_v52 = vld [vmem:[%s10752_s28 + $0x170] sm:$0xff]  ;;  %v6969_v57 = vld [vmem:[%s10752_s28 + $0x1e8] sm:$0xff] }
0x420d   : > { %6562 = vmatprep.mubr.f32.mxu1 %v6424_v59  ;;  %6632 = vmatprep.mubr.f32.mxu0 %v6426_v8 }
0x420e   : > { %6563 = vmatmul.mubr.f32.vlgmr.msra.gmra.mxu1 %v6423_v61  ;;  %6633 = vmatmul.mubr.f32.vlgmr.msra.gmra.mxu0 %v6425_v3 }
0x420f   : > { %6701 = vmatpush1.msra.mxu1 %v6650_v44  ;;  %6772 = vmatpush1.msra.mxu0 %v6652_v7 }
0x4210   : > { %6702 = vmatprep.subr.mxu1 %v6647_v63  ;;  %6773 = vmatprep.subr.mxu0 %v6649_v18 }
0x4211   : > { %6703 = vmatpush1.msra.mxu1 %v6646_v60  ;;  %6774 = vmatpush1.msra.mxu0 %v6648_v47 }
0x4212   : > { %6704 = vmatprep.subr.mxu1 %v6643_v19  ;;  %6775 = vmatprep.subr.mxu0 %v6645_v62 }
0x4213   : > { %6705 = vmatpush1.msra.mxu1 %v6642_v20  ;;  %6776 = vmatpush1.msra.mxu0 %v6644_v21 }
0x4214   : > { %6706 = vmatprep.subr.mxu1 %v6639_v22  ;;  %6777 = vmatprep.subr.mxu0 %v6641_v23  ;;  %v6921_v23 = vld [vmem:[%s10752_s28 + $0x68] sm:$0xff] }
0x4215   : > { %6707 = vmatpush1.msra.mxu1 %v6638_v24  ;;  %6740 = vmatprep.mubr.f32.mxu1 %v9191_v0  ;;  %v6953_v24 = vld [vmem:[%s10752_s28 + $0x168] sm:$0xff] }
0x4216   : > { %6778 = vmatpush1.msra.mxu0 %v6640_v30  ;;  %6811 = vmatprep.mubr.f32.mxu0 %v9191_v0  ;;  %v6936_v30 = vld [vmem:[%s10752_s28 + $0xe0] sm:$0xff] }
0x4217   : > { %7615 = vmatmul.mubr.msk.f32.vlgmr.msra.gmra.mxu1 %vm1498_vm2, %v10573_v50  ;;  %7616 = vmatmul.mubr.msk.f32.vlgmr.msra.gmra.mxu0 %vm1498_vm2, %v10573_v50 }
0x4218   : > { %8012 = vmatprep.subr.mxu1 %v6939_v17  ;;  %8047 = vmatprep.subr.mxu0 %v6971_v6  ;;  %v6913_v17 = vld [vmem:[%s10752_s28 + $0x28] sm:$0xff] }
0x4219   : > { %8013 = vmatpush3.msra.mxu1 %v6923_v1  ;;  %8048 = vmatpush3.msra.mxu0 %v6955_v31  ;;  %v6945_v6 = vld [vmem:[%s10752_s28 + $0x128] sm:$0xff]  ;;  %v6928_v1 = vld [vmem:[%s10752_s28 + $0xa0] sm:$0xff] }
0x421a   : > { %8014 = vmatprep.subr.mxu1 %v6938_v32  ;;  %8049 = vmatprep.subr.mxu0 %v6970_v33  ;;  %v6960_v31 = vld [vmem:[%s10752_s28 + $0x1a0] sm:$0xff] }
0x421b   : > { %8015 = vmatpush3.msra.mxu1 %v6922_v51  ;;  %8050 = vmatpush3.msra.mxu0 %v6954_v52  ;;  %v6912_v32 = vld [vmem:[%s10752_s28 + $0x20] sm:$0xff]  ;;  %v6927_v51 = vld [vmem:[%s10752_s28 + $0x98] sm:$0xff] }
0x421c   : > { %8016 = vmatprep.subr.mxu1 %v6937_v56  ;;  %8051 = vmatprep.subr.mxu0 %v6969_v57  ;;  %v6944_v33 = vld [vmem:[%s10752_s28 + $0x120] sm:$0xff]  ;;  %v6959_v52 = vld [vmem:[%s10752_s28 + $0x198] sm:$0xff] }
0x421d   : > { %8017 = vmatpush3.msra.mxu1 %v6921_v23  ;;  %8052 = vmatpush3.msra.mxu0 %v6953_v24  ;;  %v6911_v56 = vld [vmem:[%s10752_s28 + $0x18] sm:$0xff] }
0x421e   : > { %8018 = vmatprep.subr.mxu1 %v6936_v30  ;;  %v6943_v57 = vld [vmem:[%s10752_s28 + $0x118] sm:$0xff]  ;;  %v6818_v30 = vld [vmem:[%s1385_s1] sm:$0xf] }
0x42ce   : > { %v7974_v34 = vpop.f32.mrf.mxu1  ;;  %v8009_v35 = vpop.f32.mrf.mxu0 }
0x42d0   : > { %v7975_v11 = vpop.f32.mrf.mxu1  ;;  %v8010_v13 = vpop.f32.mrf.mxu0 }
0x42d1   : > { %v7976_v42 = vadd.f32 %v7975_v11, %v7974_v34  ;;  %v8011_v5 = vadd.f32 %v8010_v13, %v8009_v35  ;;  %v6968_v34 = vld [vmem:[%s10752_s28 + $0x1e0] sm:$0xff]  ;;  %v6967_v11 = vld [vmem:[%s10752_s28 + $0x1d8] sm:$0xff] }
0x42d2   : > { %8053 = vmatprep.subr.mxu0 %v6968_v34  ;;  %v6920_v35 = vld [vmem:[%s10752_s28 + $0x60] sm:$0xff]  ;;  %v6919_v13 = vld [vmem:[%s10752_s28 + $0x58] sm:$0xff] }
0x42d3   : > { %v6565_v54 = vadd.f32 %v7976_v42, %v7614_v25  ;;  %8019 = vmatpush3.msra.mxu1 %v6920_v35  ;;  %8054 = vmatpush3.msra.mxu0 %v6952_v36  ;;  %v6949_v42 = vld [vmem:[%s10752_s28 + $0x148] sm:$0xff]  ;;  %v6916_v25 = vld [vmem:[%s10752_s28 + $0x40] sm:$0xff]  ;;  %v6862_v35 = vrot.slane %v6818_v30, %v10588_v16  ;;  %v6870_v36 = vrot.slane %v6818_v30, %v10591_v38 }
0x42d4   : > { %8055 = vmatprep.subr.mxu0 %v6967_v11  ;;  %v6819_v34 = vld [vmem:[%s1389_s7] sm:$0xf]  ;;  %v6866_v11 = vrot.slane %v6818_v30, %v10586_v26 }
0x42d5   : > { %v10745_v53 = vadd.f32 %v8011_v5, %v6565_v54  ;;  %v6947_v54 = vld [vmem:[%s10752_s28 + $0x138] sm:$0xff]  ;;  %v6914_v5 = vld [vmem:[%s10752_s28 + $0x30] sm:$0xff] }
0x42d7   : > { %v6742_v39 = vpop.f32.mrf.mxu1  ;;  %v6813_v0 = vpop.f32.mrf.mxu0  ;;  %v7126_v29 = vsel %vm7125_vm8, %v10745_v53, 0.0 }
0x42d8   : > { %v6743_v2 = vadd.f32 %v6742_v39, %v6659_v10  ;;  %v6814_v43 = vadd.f32 %v6813_v0, %v6667_v15  ;;  %v6935_v10 = vld [vmem:[%s10752_s28 + $0xd8] sm:$0xff]  ;;  %v6966_v39 = vld [vmem:[%s10752_s28 + $0x1d0] sm:$0xff] }
0x42d9   : > { %v6744_v41 = vpop.f32.mrf.mxu1  ;;  %v6815_v50 = vpop.f32.mrf.mxu0  ;;  %8020 = vmatprep.subr.mxu1 %v6935_v10  ;;  %v6951_v15 = vld [vmem:[%s10752_s28 + $0x158] sm:$0xff]  ;;  %v6918_v0 = vld [vmem:[%s10752_s28 + $0x50] sm:$0xff]  ;;  %v6858_v10 = vrot.slane %v6818_v30, %v10584_v14 }
0x42da   : > { %v6745_v9 = vadd.f32 %v6744_v41, %v6663_v37  ;;  %v6820_v45 = vsel %vm6079_vm5, %v6743_v2, 0.0  ;;  %v6816_v48 = vadd.f32 %v6815_v50, %v6671_v40  ;;  %v6823_v55 = vsel %vm6079_vm5, %v6814_v43, 0.0  ;;  %v6934_v37 = vld [vmem:[%s10752_s28 + $0xd0] sm:$0xff]  ;;  %8021 = vmatpush3.msra.mxu1 %v6919_v13  ;;  %8056 = vmatpush3.msra.mxu0 %v6951_v15  ;;  %v6933_v40 = vld [vmem:[%s10752_s28 + $0xc8] sm:$0xff] }
0x42db   : > { %8022 = vmatprep.subr.mxu1 %v6934_v37  ;;  %8057 = vmatprep.subr.mxu0 %v6966_v39  ;;  %v6965_v41 = vld [vmem:[%s10752_s28 + $0x1c8] sm:$0xff]  ;;  %v6887_v15 = vrot.slane %v6819_v34, %v10588_v16  ;;  %v6895_v37 = vrot.slane %v6819_v34, %v10591_v38  ;;  %v6883_v39 = vrot.slane %v6819_v34, %v10584_v14 }
0x42dc   : > { %v6821_v46 = vsel %vm6079_vm5, %v6745_v9, 0.0  ;;  %v6825_v27 = vsel %vm6079_vm5, %v6816_v48, 0.0  ;;  %v6917_v50 = vld [vmem:[%s10752_s28 + $0x48] sm:$0xff]  ;;  %8023 = vmatpush3.msra.mxu1 %v6918_v0  ;;  %v6891_v0 = vrot.slane %v6819_v34, %v10586_v26 }
0x42dd   : > { %v6822_v49 = vadd.f32 %v6821_v46, %v6820_v45  ;;  %8024 = vmatprep.subr.mxu1 %v6933_v40  ;;  %v6948_v45 = vld [vmem:[%s10752_s28 + $0x140] sm:$0xff]  ;;  %v6931_v46 = vld [vmem:[%s10752_s28 + $0xb8] sm:$0xff] }
0x42de   : > { %8025 = vmatpush3.msra.mxu1 %v6917_v50 }
0x42df   : > { %v6824_v12 = vadd.f32 %v6823_v55, %v6822_v49  ;;  %v6915_v49 = vld [vmem:[%s10752_s28 + $0x38] sm:$0xff]  ;;  %v6930_v55 = vld [vmem:[%s10752_s28 + $0xb0] sm:$0xff] }
0x42e1   : > { %v6826_v28 = vadd.f32 %v6825_v27, %v6824_v12  ;;  %v6962_v12 = vld [vmem:[%s10752_s28 + $0x1b0] sm:$0xff] }
0x42e2   : > { %v6946_v27 = vld [vmem:[%s10752_s28 + $0x130] sm:$0xff] }
0x42e3   : > { %6827 = vadd.xlane.f32.xlu1 %v6826_v28  ;;  %v6929_v28 = vld [vmem:[%s10752_s28 + $0xa8] sm:$0xff] }
0x42e7   : > { %7127 = vadd.xlane.f32.xlu1 %v7126_v29  ;;  %v6961_v29 = vld [vmem:[%s10752_s28 + $0x1a8] sm:$0xff] }
0x436c   : > { %v6828_v58 = vpop.xlane.xlu1 %6827 }
0x436d   : > { %v6829_v4 = vmul.f32 0.001953125, %v6828_v58  ;;  %v6926_v58 = vld [vmem:[%s10752_s28 + $0x90] sm:$0xff] }
0x436f   : > { %v10764_v59 = vsub.f32 %v6743_v2, %v6829_v4  ;;  %v10766_v8 = vsub.f32 %v6745_v9, %v6829_v4  ;;  %v10768_v61 = vsub.f32 %v6814_v43, %v6829_v4  ;;  %v10770_v3 = vsub.f32 %v6816_v48, %v6829_v4  ;;  %v6950_v2 = vld [vmem:[%s10752_s28 + $0x150] sm:$0xff]  ;;  %v6932_v43 = vld [vmem:[%s10752_s28 + $0xc0] sm:$0xff]  ;;  %v6963_v48 = vld [vmem:[%s10752_s28 + $0x1b8] sm:$0xff] }
0x4370   : > { %8058 = vmatpush3.msra.mxu0 %v6950_v2  ;;  %v6964_v9 = vld [vmem:[%s10752_s28 + $0x1c0] sm:$0xff]  ;;  %8026 = vmatprep.subr.mxu1 %v6932_v43  ;;  %v6958_v4 = vld [vmem:[%s10752_s28 + $0x190] sm:$0xff] }
0x4371   : > { %v6834_v44 = vmul.f32 %v10764_v59, %v10764_v59  ;;  %v6835_v7 = vmul.f32 %v10766_v8, %v10766_v8  ;;  %v6836_v63 = vmul.f32 %v10768_v61, %v10768_v61  ;;  %v6837_v18 = vmul.f32 %v10770_v3, %v10770_v3  ;;  %8059 = vmatprep.subr.mxu0 %v6965_v41 }
0x4372   : > { %8060 = vmatpush3.msra.mxu0 %v6949_v42  ;;  %8027 = vmatpush3.msra.mxu1 %v6916_v25 }
0x4373   : > { %v6838_v60 = vsel %vm6079_vm5, %v6834_v44, 0.0  ;;  %v6839_v47 = vsel %vm6079_vm5, %v6835_v7, 0.0  ;;  %v6841_v62 = vsel %vm6079_vm5, %v6836_v63, 0.0  ;;  %v6843_v21 = vsel %vm6079_vm5, %v6837_v18, 0.0  ;;  %8061 = vmatprep.subr.mxu0 %v6964_v9  ;;  %8028 = vmatprep.subr.mxu1 %v6931_v46  ;;  %v6910_v44 = vld [vmem:[%s10752_s28 + $0x10] sm:$0xff]  ;;  %v6925_v63 = vld [vmem:[%s10752_s28 + $0x88] sm:$0xff] }
0x4374   : > { %v6840_v19 = vadd.f32 %v6839_v47, %v6838_v60  ;;  %8062 = vmatpush3.msra.mxu0 %v6948_v45  ;;  %8029 = vmatpush3.msra.mxu1 %v6915_v49  ;;  %v6942_v7 = vld [vmem:[%s10752_s28 + $0x110] sm:$0xff]  ;;  %v6957_v18 = vld [vmem:[%s10752_s28 + $0x188] sm:$0xff]  ;;  %v7617_v49 = vld [vmem:[%s1397_s11] ss:$0 sm:$0xff] }
0x4375   : > { %8063 = vmatprep.subr.mxu0 %v6963_v48  ;;  %8030 = vmatprep.subr.mxu1 %v6930_v55  ;;  %v6909_v60 = vld [vmem:[%s10752_s28 + $0x8] sm:$0xff] }
0x4376   : > { %v6842_v20 = vadd.f32 %v6841_v62, %v6840_v19  ;;  %8064 = vmatpush3.msra.mxu0 %v6947_v54  ;;  %8031 = vmatpush3.msra.mxu1 %v6914_v5  ;;  %v6941_v47 = vld [vmem:[%s10752_s28 + $0x108] sm:$0xff]  ;;  %v6924_v19 = vld [vmem:[%s10752_s28 + $0x80] sm:$0xff] }
0x4377   : > { %8065 = vmatprep.subr.mxu0 %v6962_v12  ;;  %8032 = vmatprep.subr.mxu1 %v6929_v28  ;;  %v6956_v62 = vld [vmem:[%s10752_s28 + $0x180] sm:$0xff] }
0x4378   : > { %v6844_v22 = vadd.f32 %v6843_v21, %v6842_v20  ;;  %8066 = vmatpush3.msra.mxu0 %v6946_v27  ;;  %8033 = vmatpush3.msra.mxu1 %v6913_v17  ;;  %v6908_v20 = vld [vmem:[%s10752_s28] sm:$0xff] }
0x4379   : > { %8067 = vmatprep.subr.mxu0 %v6961_v29  ;;  %8034 = vmatprep.subr.mxu1 %v6928_v1  ;;  %v6940_v21 = vld [vmem:[%s10752_s28 + $0x100] sm:$0xff]  ;;  %v7128_v29 = vpop.xlane.xlu1 %7127 }
0x437a   : > { %6845 = vadd.xlane.f32.xlu0 %v6844_v22  ;;  %8068 = vmatpush3.msra.mxu0 %v6945_v6  ;;  %v7130_v6 = vmul.f32 0.25, %v7128_v29 }
0x437b   : > { %8069 = vmatprep.subr.mxu0 %v6960_v31  ;;  %8035 = vmatpush3.msra.mxu1 %v6912_v32 }
0x437c   : > { %8070 = vmatpush3.msra.mxu0 %v6944_v33  ;;  %8036 = vmatprep.subr.mxu1 %v6927_v51 }
0x437d   : > { %8071 = vmatprep.subr.mxu0 %v6959_v52  ;;  %8037 = vmatpush3.msra.mxu1 %v6911_v56 }
0x437e   : > { %8072 = vmatpush3.msra.mxu0 %v6943_v57  ;;  %8038 = vmatprep.subr.mxu1 %v6926_v58 }
0x437f   : > { %8073 = vmatprep.subr.mxu0 %v6958_v4  ;;  %8039 = vmatpush3.msra.mxu1 %v6910_v44 }
0x4380   : > { %8074 = vmatpush3.msra.mxu0 %v6942_v7  ;;  %8040 = vmatprep.subr.mxu1 %v6925_v63 }
0x4381   : > { %8075 = vmatprep.subr.mxu0 %v6957_v18  ;;  %8041 = vmatpush3.msra.mxu1 %v6909_v60 }
0x4382   : > { %8076 = vmatpush3.msra.mxu0 %v6941_v47  ;;  %8042 = vmatprep.subr.mxu1 %v6924_v19 }
0x4383   : > { %8077 = vmatprep.subr.mxu0 %v6956_v62  ;;  %8043 = vmatpush3.msra.mxu1 %v6908_v20 }
0x4384   : > { %8078 = vmatpush3.msra.mxu0 %v6940_v21 }
0x4403   : > { %v6846_v22 = vpop.xlane.xlu0 %6845 }
0x4404   : > { %v6847_v23 = vmul.f32 0.001953125, %v6846_v22 }
0x4406   : > { %v6848_v24 = vadd.f32 1e-05, %v6847_v23 }
0x4408   : > { %9125 = vrsqrt.f32 %v6848_v24 }
0x4415   : > { %v9126_v13 = vpop.eup %9125 }
0x4416   : > { %v6851_v2 = vmul.f32 %v9126_v13, %v10766_v8  ;;  %v6853_v40 = vmul.f32 %v9126_v13, %v10770_v3  ;;  %v6850_v41 = vmul.f32 %v9126_v13, %v10764_v59  ;;  %v6852_v50 = vmul.f32 %v9126_v13, %v10768_v61 }
0x4417   : > { %v9196_v59 = vmov 0  }
0x4418   : > { %v6876_v42 = vmul.f32 %v6862_v35, %v6851_v2  ;;  %v6878_v43 = vmul.f32 %v6870_v36, %v6853_v40  ;;  %v6875_v9 = vmul.f32 %v6858_v10, %v6850_v41  ;;  %v6877_v16 = vmul.f32 %v6866_v11, %v6852_v50  ;;  %8796 = vset.pattern.permute.xlu0 %v9196_v59 }
0x441a   : > { %v6901_v25 = vadd.f32 %v6887_v15, %v6876_v42  ;;  %v6903_v38 = vadd.f32 %v6895_v37, %v6878_v43  ;;  %v6900_v45 = vadd.f32 %v6883_v39, %v6875_v9  ;;  %v6902_v14 = vadd.f32 %v6891_v0, %v6877_v16 }
0x441c   : > { %v6905_v46 = vmax.f32 %v6901_v25, 0.0  ;;  %v6907_v26 = vmax.f32 %v6903_v38, 0.0  ;;  %v6904_v48 = vmax.f32 %v6900_v45, 0.0  ;;  %v6906_v8 = vmax.f32 %v6902_v14, 0.0 }
0x441e   : > { %7043 = vmatprep.mubr.f32.mxu1 %v6905_v46  ;;  %7113 = vmatprep.mubr.f32.mxu0 %v6907_v26 }
0x441f   : > { %7044 = vmatmul.mubr.f32.vlgmr.msra.gmra.mxu1 %v6904_v48  ;;  %7114 = vmatmul.mubr.f32.vlgmr.msra.gmra.mxu0 %v6906_v8 }
0x44df   : > { %v8044_v61 = vpop.f32.mrf.mxu1  ;;  %v8079_v3 = vpop.f32.mrf.mxu0 }
0x44e1   : > { %v8045_v54 = vpop.f32.mrf.mxu1  ;;  %v8080_v55 = vpop.f32.mrf.mxu0 }
0x44e2   : > { %v8046_v12 = vadd.f32 %v8045_v54, %v8044_v61  ;;  %v8081_v27 = vadd.f32 %v8080_v55, %v8079_v3 }
0x44e4   : > { %v7046_v5 = vadd.f32 %v8046_v12, %v7617_v49 }
0x44e6   : > { %v7116_v28 = vadd.f32 %v8081_v27, %v7046_v5 }
0x44e8   : > { %7121 = vperm.xlu0 %8796, %v7116_v28  }
0x4563   : > { %v7122_v17 = vpop.permute.xlu0 %7121 }
0x4564   : > { %v7124_v1 = vadd.f32 %v7122_v17, %v10745_v53 }
0x4566   : > { %v7131_v31 = vsub.f32 %v7124_v1, %v7130_v6 }
0x4568   : > { %7132 = vst.msk [vmem:[%s1401_s18] sm:$0x3] %vm7125_vm8, %v7131_v31 }
0x4569 PF: > { %s71_s15 = sadd.s32 1, %s9159_s15  }
0x456a   : > { %p68_p4 = scmp.ge.s32.totalorder %s71_s15, 4  }
0x456c   :  { %70 = sbr.rel (!%p68_p4) target bundleno = 48 (0x30), region = 284 }

</bundles_post_ra>
